<compile_context>
chip_gen: v5e
topology: v5e:2x2
jax: 0.10.0
libtpu: 0.0.40
codegen_flags: <defaults>
</compile_context>

<pallas_src>
import math

import jax
import jax.numpy as jnp
from jax import lax
from jax.experimental import pallas as pl
from jax.experimental.pallas import tpu as pltpu


# ------------------------------ helpers ------------------------------------ #

def _round_up(n, m):
    return (n + m - 1) // m * m


def _pack_gate_matrix(w, in_dim, in_pad, h, h_pad, dtype):
    """PyTorch (4H, in_dim) gate-stacked weight -> (in_pad, 4*h_pad), per-gate padded."""
    w4 = w.reshape(4, h, in_dim)                  # (4, H, in)   gate order i,f,g,o
    w4 = jnp.transpose(w4, (2, 0, 1))             # (in, 4, H)
    w4 = jnp.pad(w4, ((0, in_pad - in_dim), (0, 0), (0, h_pad - h)))
    return w4.reshape(in_pad, 4 * h_pad).astype(dtype)


def _pack_gate_bias(b_ih, b_hh, h, h_pad):
    b = (b_ih + b_hh).reshape(4, h)
    b = jnp.pad(b, ((0, 0), (0, h_pad - h)))
    return b.reshape(1, 4 * h_pad)                # f32 (added after the f32-acc dot)


def _choose_seq_chunk(S, bb, h_pad, gate_bytes, max_gate_scratch=4 << 20):
    """Pick seq_chunk: gates scratch <= ~4 MiB, prefer n_chunks>=2 and seq_chunk*bb>=256."""
    divs = [d for d in range(1, S + 1) if S % d == 0]
    fits = [d for d in divs if d * bb * 4 * h_pad * gate_bytes <= max_gate_scratch]
    if not fits:
        fits = [1]
    multi = [d for d in fits if S // d >= 2] or fits
    good = [d for d in multi if d * bb >= 256]
    return min(good) if good else max(multi)


# ------------------------------ Pallas kernel ------------------------------- #

def _make_fused_lstm_kernel(num_layers, seq_chunk, n_chunks, bb, feat_in, h_pad):
    """Fused multi-layer LSTM + linear head.

    Ref order: x, [wih_l, whh_l, b_l]*L, w_lin, b_lin, out,
               gates_scratch, hseq_scratch*n_ping, h_state, c_state
    """
    n_ping = min(max(num_layers - 1, 0), 2)
    gdim = 4 * h_pad
    # Full unroll only when the per-step working set is small (pre is bb x 4*h_pad f32);
    # otherwise a bounded-unroll fori_loop keeps live ranges inside the 64-vreg file.
    full_unroll = (seq_chunk <= 8) and (bb * 4 * h_pad * 4 <= 64 * 1024)

    def _sigmoid(v):
        # sigmoid(x) = 0.5*tanh(0.5*x) + 0.5 : one EUP op per gate (shorter serial path).
        return 0.5 * jnp.tanh(0.5 * v) + 0.5

    def kernel(*refs):
        x_ref = refs[0]
        pos = 1
        layers = []
        for _ in range(num_layers):
            layers.append(tuple(refs[pos:pos + 3]))        # (wih, whh, bias)
            pos += 3
        wlin_ref, blin_ref, out_ref = refs[pos:pos + 3]
        pos += 3
        gates_ref = refs[pos]
        pos += 1
        hseq_refs = refs[pos:pos + n_ping]
        pos += n_ping
        h_state, c_state = refs[pos], refs[pos + 1]

        # NOTE: the (h, c) carry requires the sequence axis to be the INNERMOST,
        # sequentially iterated ("arbitrary") grid axis.  Do not reorder the grid.
        s = pl.program_id(1)

        @pl.when(s == 0)
        def _init_state():
            h_state[...] = jnp.zeros_like(h_state)
            c_state[...] = jnp.zeros_like(c_state)

        def run_layer(layer, in_ref, in_dim, hseq_out):
            wih_ref, whh_ref, b_ref = layers[layer]

            # Hoisted input projection (bf16 MXU, f32 accumulate), bias folded in,
            # done once per chunk outside the serial dependency chain.
            inp = in_ref[...].reshape(seq_chunk * bb, in_dim)
            xw = (jnp.dot(inp, wih_ref[...], preferred_element_type=jnp.float32)
                  + b_ref[...])
            gates_ref[...] = xw.reshape(seq_chunk, bb, gdim).astype(gates_ref.dtype)

            whh = whh_ref[...]                     # bf16, resident for the chunk
            h0 = h_state[layer]
            c0 = c_state[layer]

            def step(t, h, c):
                pre = gates_ref[t].astype(jnp.float32) + jnp.dot(
                    h.astype(whh.dtype), whh, preferred_element_type=jnp.float32)
                i = _sigmoid(pre[:, 0 * h_pad:1 * h_pad])
                f = _sigmoid(pre[:, 1 * h_pad:2 * h_pad])
                g = jnp.tanh(pre[:, 2 * h_pad:3 * h_pad])
                o = _sigmoid(pre[:, 3 * h_pad:4 * h_pad])
                c = f * c + i * g
                h = o * jnp.tanh(c)
                if hseq_out is not None:
                    hseq_out[t] = h.astype(hseq_out.dtype)   # lane-dense bf16 store
                return h, c

            if full_unroll:
                h, c = h0, c0
                for t in range(seq_chunk):
                    h, c = step(t, h, c)
            else:
                h, c = lax.fori_loop(
                    0, seq_chunk,
                    lambda t, hc: step(t, hc[0], hc[1]),
                    (h0, c0), unroll=2)

            h_state[layer] = h
            c_state[layer] = c
            return h

        # Layer 0 reads the streamed x chunk; later layers ping-pong between VMEM
        # hseq buffers; the last layer stores no hidden sequence.
        in_ref, in_dim = x_ref, feat_in
        h_last = None
        for layer in range(num_layers):
            is_last = layer == num_layers - 1
            hseq_out = None if is_last else hseq_refs[layer % n_ping]
            h_last = run_layer(layer, in_ref, in_dim, hseq_out)
            if not is_last:
                in_ref, in_dim = hseq_out, h_pad

        # Linear head, only once the whole sequence has been consumed.
        # (out_spec index is independent of s -> relies on output-revisit semantics.)
        @pl.when(s == n_chunks - 1)
        def _head():
            out_ref[...] = (jnp.dot(h_last.astype(wlin_ref.dtype), wlin_ref[...],
                                    preferred_element_type=jnp.float32)
                            + blin_ref[...]).astype(out_ref.dtype)

    return kernel


# ------------------------------ Model wrapper ------------------------------- #

class LSTMModelPallas:
    """Pallas re-implementation of LSTMMdel(n_features, hidden_size, output_size, num_layers)."""

    def __init__(self, n_features, hidden_size, output_size, num_layers, key):
        self.n_features = n_features
        self.hidden_size = hidden_size
        self.output_size = output_size
        self.num_layers = num_layers

        self.h_pad = _round_up(hidden_size, 128)
        self.o_pad = _round_up(output_size, 128)

        stdv = 1.0 / math.sqrt(hidden_size)
        self.lstm_params = []          # raw PyTorch layout (f32, used by the reference)
        self._wih, self._whh, self._bias = [], [], []
        for layer in range(num_layers):
            in_size = n_features if layer == 0 else hidden_size
            in_pad = n_features if layer == 0 else self.h_pad   # no K padding for layer 0
            key, k1, k2, k3, k4 = jax.random.split(key, 5)
            w_ih = jax.random.uniform(k1, (4 * hidden_size, in_size),
                                      jnp.float32, -stdv, stdv)
            w_hh = jax.random.uniform(k2, (4 * hidden_size, hidden_size),
                                      jnp.float32, -stdv, stdv)
            b_ih = jax.random.uniform(k3, (4 * hidden_size,), jnp.float32, -stdv, stdv)
            b_hh = jax.random.uniform(k4, (4 * hidden_size,), jnp.float32, -stdv, stdv)
            self.lstm_params.append((w_ih, w_hh, b_ih, b_hh))
            # Kernel layout (transposed, per-gate lane-padded, bf16 MXU operands) — built ONCE.
            self._wih.append(_pack_gate_matrix(w_ih, in_size, in_pad,
                                               hidden_size, self.h_pad, jnp.bfloat16))
            self._whh.append(_pack_gate_matrix(w_hh, hidden_size, self.h_pad,
                                               hidden_size, self.h_pad, jnp.bfloat16))
            self._bias.append(_pack_gate_bias(b_ih, b_hh, hidden_size, self.h_pad))

        key, k5, k6 = jax.random.split(key, 3)
        self.w_lin = jax.random.uniform(k5, (output_size, hidden_size),
                                        jnp.float32, -stdv, stdv)
        self.b_lin = jax.random.uniform(k6, (output_size,), jnp.float32, -stdv, stdv)
        self._wlin = jnp.pad(jnp.transpose(self.w_lin),
                             ((0, self.h_pad - hidden_size),
                              (0, self.o_pad - output_size))).astype(jnp.bfloat16)
        self._blin = jnp.pad(self.b_lin,
                             (0, self.o_pad - output_size)).reshape(1, self.o_pad)

    # ------------------------------------------------------------------ #

    def forward(self, x, seq_chunk=None):
        # x: (B, S, n_features), batch_first like the PyTorch module.
        B, S, F = x.shape
        assert F == self.n_features

        # Batch padded to sublane width.  bb up to 128 rows: the serial h@W_hh matmul
        # pushes bb MXU rows per step (single-TC chips want it big).
        # TODO(synk): on v7x pick bb so n_bblocks >= 2 to feed both TensorCores.
        b_pad = _round_up(B, 8)
        bb = min(b_pad, 128)
        if b_pad % bb:
            b_pad = _round_up(b_pad, bb)
        n_bblocks = b_pad // bb

        if seq_chunk is None:
            seq_chunk = _choose_seq_chunk(S, bb, self.h_pad, gate_bytes=2)
        if S % seq_chunk != 0:
            raise ValueError("sequence length must be divisible by seq_chunk")
        n_chunks = S // seq_chunk

        # time-major, batch zero-padded; feature dim kept at its REAL width (bf16 stream).
        x_tm = jnp.transpose(x, (1, 0, 2)).astype(jnp.bfloat16)
        x_tm = jnp.pad(x_tm, ((0, 0), (0, b_pad - B), (0, 0)))

        kernel = _make_fused_lstm_kernel(self.num_layers, seq_chunk, n_chunks,
                                         bb, self.n_features, self.h_pad)

        n_ping = min(max(self.num_layers - 1, 0), 2)
        scratch = [pltpu.VMEM((seq_chunk, bb, 4 * self.h_pad), jnp.bfloat16)]       # gates
        scratch += [pltpu.VMEM((seq_chunk, bb, self.h_pad), jnp.bfloat16)] * n_ping  # hseq
        scratch += [pltpu.VMEM((self.num_layers, bb, self.h_pad), jnp.float32)] * 2  # h, c

        weight_arrays = []
        for l in range(self.num_layers):
            weight_arrays += [self._wih[l], self._whh[l], self._bias[l]]
        weight_arrays += [self._wlin, self._blin]
        args = [x_tm] + weight_arrays

        # Per-chip VMEM policy: query capacity, leave compiler-scratch headroom
        # (~112 MiB on 128-MiB chips, ~56 MiB on v7x's 64 MiB).
        cap = 64 * 2**20
        try:
            info = pltpu.get_tpu_info()
            cap = int(getattr(info, "vmem_capacity_bytes", cap))
        except Exception:
            pass
        hard_cap = max(cap - (16 << 20), (cap * 7) // 8)

        def build(single_buffer_weights):
            weight_bufs = 1 if single_buffer_weights else 2
            wkw = {"pipeline_mode": pl.Buffered(1)} if single_buffer_weights else {}
            const = lambda b, s: (0, 0)     # weights stay VMEM-resident across the grid

            in_specs = [pl.BlockSpec((seq_chunk, bb, self.n_features),
                                     lambda b, s: (s, b, 0))]
            for w in weight_arrays:
                in_specs.append(pl.BlockSpec(w.shape, const, **wkw))
            out_spec = pl.BlockSpec((bb, self.o_pad), lambda b, s: (b, 0))

            wbytes = sum(int(a.size) * a.dtype.itemsize for a in weight_arrays)
            xblk = seq_chunk * bb * self.n_features * 2           # bf16, double-buffered
            oblk = bb * self.o_pad * 4
            scratch_bytes = (seq_chunk * bb * 4 * self.h_pad * 2
                             + n_ping * seq_chunk * bb * self.h_pad * 2
                             + 2 * self.num_layers * bb * self.h_pad * 4)
            est = weight_bufs * wbytes + 2 * xblk + 2 * oblk + scratch_bytes
            vmem_limit = int(min(max(int(est * 1.25) + (4 << 20), 32 << 20), hard_cap))

            return pl.pallas_call(
                kernel,
                out_shape=jax.ShapeDtypeStruct((b_pad, self.o_pad), jnp.float32),
                # grid: batch blocks (parallel / megacore) x sequence chunks
                # (arbitrary, MUST stay innermost: it carries the (h, c) state).
                grid=(n_bblocks, n_chunks),
                in_specs=in_specs,
                out_specs=out_spec,
                scratch_shapes=scratch,
                compiler_params=pltpu.CompilerParams(
                    dimension_semantics=("parallel", "arbitrary"),
                    vmem_limit_bytes=vmem_limit),
            )

        try:
            out_padded = build(True)(*args)
        except Exception:
            # pipeline_mode=pl.Buffered(1) not supported on this jax -> default buffering.
            out_padded = build(False)(*args)

        out = out_padded[:B, :self.output_size]
        return out.reshape(-1, self.output_size, 1)


# --------------------------- Pure-JAX reference ----------------------------- #

def reference_forward(model, x):
    B = x.shape[0]
    h_seq = jnp.transpose(x, (1, 0, 2))  # (S, B, F)
    h_last = None
    for (w_ih, w_hh, b_ih, b_hh) in model.lstm_params:
        H = w_hh.shape[1]

        def step(carry, x_t):
            h, c = carry
            gates = x_t @ w_ih.T + h @ w_hh.T + b_ih + b_hh
            i, f, g, o = jnp.split(gates, 4, axis=-1)
            i, f, o = jax.nn.sigmoid(i), jax.nn.sigmoid(f), jax.nn.sigmoid(o)
            g = jnp.tanh(g)
            c = f * c + i * g
            h = o * jnp.tanh(c)
            return (h, c), h

        (h_last, _), h_seq = lax.scan(
            step,
            (jnp.zeros((B, H), jnp.float32), jnp.zeros((B, H), jnp.float32)),
            h_seq)
    out = h_last @ model.w_lin.T + model.b_lin
    return out.reshape(-1, model.output_size, 1)


# ---------------------------------- Main ------------------------------------ #

if __name__ == "__main__":
    B, S, n_features, hidden_size, output_size, num_layers = 2, 8, 4, 32, 4, 2

    key = jax.random.PRNGKey(0)
    key_x, key_params = jax.random.split(key)
    x = jax.random.normal(key_x, (B, S, n_features), jnp.float32)

    model = LSTMModelPallas(n_features, hidden_size, output_size, num_layers,
                            key_params)

    # Auto seq_chunk (-> 4, i.e. two sequence chunks) exercises the carried (h, c) state.
    out = model.forward(x)
    out = jax.block_until_ready(out)

    assert out.shape == (B, output_size, 1), out.shape

    ref = reference_forward(model, x)
    err = float(jnp.max(jnp.abs(out - ref)))
    # bf16 MXU operands / bf16 gate scratch vs f32 reference -> loosened tolerance.
    assert err < 5e-2, f"max abs err = {err}"

    print("KERNEL_OK")
</pallas_src>

<mosaic_0001>
module attributes {stable_mosaic.version = 11 : i64} {
  func.func @kernel(%arg0: i32, %arg1: i32, %arg2: memref<4x8x4xbf16, #tpu.memory_space<vmem>>, %arg3: memref<4x512xbf16, #tpu.memory_space<vmem>>, %arg4: memref<128x512xbf16, #tpu.memory_space<vmem>>, %arg5: memref<1x512xf32, #tpu.memory_space<vmem>>, %arg6: memref<128x512xbf16, #tpu.memory_space<vmem>>, %arg7: memref<128x512xbf16, #tpu.memory_space<vmem>>, %arg8: memref<1x512xf32, #tpu.memory_space<vmem>>, %arg9: memref<128x128xbf16, #tpu.memory_space<vmem>>, %arg10: memref<1x128xf32, #tpu.memory_space<vmem>>, %arg11: memref<8x128xf32, #tpu.memory_space<vmem>>, %arg12: memref<4x8x512xbf16, #tpu.memory_space<vmem>>, %arg13: memref<4x8x128xbf16, #tpu.memory_space<vmem>>, %arg14: memref<2x8x128xf32, #tpu.memory_space<vmem>>, %arg15: memref<2x8x128xf32, #tpu.memory_space<vmem>>) attributes {dimension_semantics = [#tpu.dimension_semantics<parallel>, #tpu.dimension_semantics<arbitrary>], iteration_bounds = array<i64: 1, 2>, scalar_prefetch = 0 : i64, scratch_operands = 4 : i64, tpu.core_type = #tpu.core_type<tc>, window_params = [{transform_indices = @transform_0, window_bounds = array<i64: 4, 8, 4>}, {pipeline_mode = #tpu.pipeline_mode<synchronous>, transform_indices = @transform_1, window_bounds = array<i64: 4, 512>}, {pipeline_mode = #tpu.pipeline_mode<synchronous>, transform_indices = @transform_2, window_bounds = array<i64: 128, 512>}, {pipeline_mode = #tpu.pipeline_mode<synchronous>, transform_indices = @transform_3, window_bounds = array<i64: 1, 512>}, {pipeline_mode = #tpu.pipeline_mode<synchronous>, transform_indices = @transform_4, window_bounds = array<i64: 128, 512>}, {pipeline_mode = #tpu.pipeline_mode<synchronous>, transform_indices = @transform_5, window_bounds = array<i64: 128, 512>}, {pipeline_mode = #tpu.pipeline_mode<synchronous>, transform_indices = @transform_6, window_bounds = array<i64: 1, 512>}, {pipeline_mode = #tpu.pipeline_mode<synchronous>, transform_indices = @transform_7, window_bounds = array<i64: 128, 128>}, {pipeline_mode = #tpu.pipeline_mode<synchronous>, transform_indices = @transform_8, window_bounds = array<i64: 1, 128>}, {transform_indices = @transform_9, window_bounds = array<i64: 8, 128>}]} {
    %c0_i32 = arith.constant 0 : i32
    %0 = arith.cmpi eq, %arg1, %c0_i32 : i32
    %1 = arith.extui %0 : i1 to i32
    %c0_i32_0 = arith.constant 0 : i32
    %2 = arith.cmpi ne, %1, %c0_i32_0 : i32
    scf.if %2 {
      %cst_163 = arith.constant 0.000000e+00 : f32
      %360 = vector.broadcast %cst_163 : f32 to vector<2x8x128xf32>
      %c0_164 = arith.constant 0 : index
      %c0_165 = arith.constant 0 : index
      %c0_166 = arith.constant 0 : index
      %361 = vector.load %arg14[%c0_164, %c0_165, %c0_166] : memref<2x8x128xf32, #tpu.memory_space<vmem>>, vector<2x8x128xf32>
      tpu.vector_store %arg14[%c0_164, %c0_165, %c0_166], %360 {strides = array<i32>} : memref<2x8x128xf32, #tpu.memory_space<vmem>>, vector<2x8x128xf32>,
      %cst_167 = arith.constant 0.000000e+00 : f32
      %362 = vector.broadcast %cst_167 : f32 to vector<2x8x128xf32>
      %c0_168 = arith.constant 0 : index
      %c0_169 = arith.constant 0 : index
      %c0_170 = arith.constant 0 : index
      %363 = vector.load %arg15[%c0_168, %c0_169, %c0_170] : memref<2x8x128xf32, #tpu.memory_space<vmem>>, vector<2x8x128xf32>
      tpu.vector_store %arg15[%c0_168, %c0_169, %c0_170], %362 {strides = array<i32>} : memref<2x8x128xf32, #tpu.memory_space<vmem>>, vector<2x8x128xf32>,
    } else {
    }
    %c0 = arith.constant 0 : index
    %c0_1 = arith.constant 0 : index
    %c0_2 = arith.constant 0 : index
    %3 = vector.load %arg2[%c0, %c0_1, %c0_2] : memref<4x8x4xbf16, #tpu.memory_space<vmem>>, vector<4x8x4xbf16>
    %4 = vector.shape_cast %3 : vector<4x8x4xbf16> to vector<32x4xbf16>
    %c0_3 = arith.constant 0 : index
    %c0_4 = arith.constant 0 : index
    %5 = vector.load %arg3[%c0_3, %c0_4] : memref<4x512xbf16, #tpu.memory_space<vmem>>, vector<4x512xbf16>
    %cst = arith.constant dense<0.000000e+00> : vector<32x512xf32>
    %6 = tpu.matmul %4, %5, %cst {dimension_numbers = #tpu.dot_dimension_numbers<[1], [0], [0], [1], [0, 0, 1, 1], [], []>} : vector<32x4xbf16>, vector<4x512xbf16>, vector<32x512xf32> -> vector<32x512xf32>
    %c0_5 = arith.constant 0 : index
    %c0_6 = arith.constant 0 : index
    %7 = vector.load %arg5[%c0_5, %c0_6] : memref<1x512xf32, #tpu.memory_space<vmem>>, vector<1x512xf32>
    %8 = vector.broadcast %7 : vector<1x512xf32> to vector<32x512xf32>
    %9 = arith.addf %6, %8 : vector<32x512xf32>
    %10 = vector.shape_cast %9 : vector<32x512xf32> to vector<4x8x512xf32>
    %11 = arith.truncf %10 : vector<4x8x512xf32> to vector<4x8x512xbf16>
    %c0_7 = arith.constant 0 : index
    %c0_8 = arith.constant 0 : index
    %c0_9 = arith.constant 0 : index
    %12 = vector.load %arg12[%c0_7, %c0_8, %c0_9] : memref<4x8x512xbf16, #tpu.memory_space<vmem>>, vector<4x8x512xbf16>
    tpu.vector_store %arg12[%c0_7, %c0_8, %c0_9], %11 {strides = array<i32>} : memref<4x8x512xbf16, #tpu.memory_space<vmem>>, vector<4x8x512xbf16>,
    %c0_10 = arith.constant 0 : index
    %c0_11 = arith.constant 0 : index
    %13 = vector.load %arg4[%c0_10, %c0_11] : memref<128x512xbf16, #tpu.memory_space<vmem>>, vector<128x512xbf16>
    %c0_12 = arith.constant 0 : index
    %c0_13 = arith.constant 0 : index
    %c0_14 = arith.constant 0 : index
    %14 = vector.load %arg14[%c0_12, %c0_13, %c0_14] : memref<2x8x128xf32, #tpu.memory_space<vmem>>, vector<1x8x128xf32>
    %15 = vector.shape_cast %14 : vector<1x8x128xf32> to vector<8x128xf32>
    %c0_15 = arith.constant 0 : index
    %c0_16 = arith.constant 0 : index
    %c0_17 = arith.constant 0 : index
    %16 = vector.load %arg15[%c0_15, %c0_16, %c0_17] : memref<2x8x128xf32, #tpu.memory_space<vmem>>, vector<1x8x128xf32>
    %17 = vector.shape_cast %16 : vector<1x8x128xf32> to vector<8x128xf32>
    %c0_18 = arith.constant 0 : index
    %c0_19 = arith.constant 0 : index
    %c0_20 = arith.constant 0 : index
    %18 = vector.load %arg12[%c0_18, %c0_19, %c0_20] : memref<4x8x512xbf16, #tpu.memory_space<vmem>>, vector<1x8x512xbf16>
    %19 = vector.shape_cast %18 : vector<1x8x512xbf16> to vector<8x512xbf16>
    %20 = arith.extf %19 : vector<8x512xbf16> to vector<8x512xf32>
    %21 = arith.truncf %15 : vector<8x128xf32> to vector<8x128xbf16>
    %cst_21 = arith.constant dense<0.000000e+00> : vector<8x512xf32>
    %22 = tpu.matmul %21, %13, %cst_21 {dimension_numbers = #tpu.dot_dimension_numbers<[1], [0], [0], [1], [0, 0, 1, 1], [], []>} : vector<8x128xbf16>, vector<128x512xbf16>, vector<8x512xf32> -> vector<8x512xf32>
    %23 = arith.addf %20, %22 : vector<8x512xf32>
    %24 = vector.extract_strided_slice %23 {offsets = [0, 0], sizes = [8, 128], strides = [1, 1]} : vector<8x512xf32> to vector<8x128xf32>
    %cst_22 = arith.constant 5.000000e-01 : f32
    %25 = vector.broadcast %cst_22 : f32 to vector<8x128xf32>
    %26 = arith.mulf %25, %24 : vector<8x128xf32>
    %27 = math.tanh %26 : vector<8x128xf32>
    %cst_23 = arith.constant 5.000000e-01 : f32
    %28 = vector.broadcast %cst_23 : f32 to vector<8x128xf32>
    %29 = arith.mulf %28, %27 : vector<8x128xf32>
    %cst_24 = arith.constant 5.000000e-01 : f32
    %30 = vector.broadcast %cst_24 : f32 to vector<8x128xf32>
    %31 = arith.addf %29, %30 : vector<8x128xf32>
    %32 = vector.extract_strided_slice %23 {offsets = [0, 128], sizes = [8, 128], strides = [1, 1]} : vector<8x512xf32> to vector<8x128xf32>
    %cst_25 = arith.constant 5.000000e-01 : f32
    %33 = vector.broadcast %cst_25 : f32 to vector<8x128xf32>
    %34 = arith.mulf %33, %32 : vector<8x128xf32>
    %35 = math.tanh %34 : vector<8x128xf32>
    %cst_26 = arith.constant 5.000000e-01 : f32
    %36 = vector.broadcast %cst_26 : f32 to vector<8x128xf32>
    %37 = arith.mulf %36, %35 : vector<8x128xf32>
    %cst_27 = arith.constant 5.000000e-01 : f32
    %38 = vector.broadcast %cst_27 : f32 to vector<8x128xf32>
    %39 = arith.addf %37, %38 : vector<8x128xf32>
    %40 = vector.extract_strided_slice %23 {offsets = [0, 256], sizes = [8, 128], strides = [1, 1]} : vector<8x512xf32> to vector<8x128xf32>
    %41 = math.tanh %40 : vector<8x128xf32>
    %42 = vector.extract_strided_slice %23 {offsets = [0, 384], sizes = [8, 128], strides = [1, 1]} : vector<8x512xf32> to vector<8x128xf32>
    %cst_28 = arith.constant 5.000000e-01 : f32
    %43 = vector.broadcast %cst_28 : f32 to vector<8x128xf32>
    %44 = arith.mulf %43, %42 : vector<8x128xf32>
    %45 = math.tanh %44 : vector<8x128xf32>
    %cst_29 = arith.constant 5.000000e-01 : f32
    %46 = vector.broadcast %cst_29 : f32 to vector<8x128xf32>
    %47 = arith.mulf %46, %45 : vector<8x128xf32>
    %cst_30 = arith.constant 5.000000e-01 : f32
    %48 = vector.broadcast %cst_30 : f32 to vector<8x128xf32>
    %49 = arith.addf %47, %48 : vector<8x128xf32>
    %50 = arith.mulf %39, %17 : vector<8x128xf32>
    %51 = arith.mulf %31, %41 : vector<8x128xf32>
    %52 = arith.addf %50, %51 : vector<8x128xf32>
    %53 = math.tanh %52 : vector<8x128xf32>
    %54 = arith.mulf %49, %53 : vector<8x128xf32>
    %55 = arith.truncf %54 : vector<8x128xf32> to vector<8x128xbf16>
    %c0_31 = arith.constant 0 : index
    %c0_32 = arith.constant 0 : index
    %c0_33 = arith.constant 0 : index
    %56 = vector.load %arg13[%c0_31, %c0_32, %c0_33] : memref<4x8x128xbf16, #tpu.memory_space<vmem>>, vector<1x8x128xbf16>
    %57 = vector.shape_cast %56 : vector<1x8x128xbf16> to vector<8x128xbf16>
    %58 = vector.shape_cast %55 : vector<8x128xbf16> to vector<1x8x128xbf16>
    tpu.vector_store %arg13[%c0_31, %c0_32, %c0_33], %58 {strides = array<i32>} : memref<4x8x128xbf16, #tpu.memory_space<vmem>>, vector<1x8x128xbf16>,
    %c1 = arith.constant 1 : index
    %c0_34 = arith.constant 0 : index
    %c0_35 = arith.constant 0 : index
    %59 = vector.load %arg12[%c1, %c0_34, %c0_35] : memref<4x8x512xbf16, #tpu.memory_space<vmem>>, vector<1x8x512xbf16>
    %60 = vector.shape_cast %59 : vector<1x8x512xbf16> to vector<8x512xbf16>
    %61 = arith.extf %60 : vector<8x512xbf16> to vector<8x512xf32>
    %62 = arith.truncf %54 : vector<8x128xf32> to vector<8x128xbf16>
    %cst_36 = arith.constant dense<0.000000e+00> : vector<8x512xf32>
    %63 = tpu.matmul %62, %13, %cst_36 {dimension_numbers = #tpu.dot_dimension_numbers<[1], [0], [0], [1], [0, 0, 1, 1], [], []>} : vector<8x128xbf16>, vector<128x512xbf16>, vector<8x512xf32> -> vector<8x512xf32>
    %64 = arith.addf %61, %63 : vector<8x512xf32>
    %65 = vector.extract_strided_slice %64 {offsets = [0, 0], sizes = [8, 128], strides = [1, 1]} : vector<8x512xf32> to vector<8x128xf32>
    %cst_37 = arith.constant 5.000000e-01 : f32
    %66 = vector.broadcast %cst_37 : f32 to vector<8x128xf32>
    %67 = arith.mulf %66, %65 : vector<8x128xf32>
    %68 = math.tanh %67 : vector<8x128xf32>
    %cst_38 = arith.constant 5.000000e-01 : f32
    %69 = vector.broadcast %cst_38 : f32 to vector<8x128xf32>
    %70 = arith.mulf %69, %68 : vector<8x128xf32>
    %cst_39 = arith.constant 5.000000e-01 : f32
    %71 = vector.broadcast %cst_39 : f32 to vector<8x128xf32>
    %72 = arith.addf %70, %71 : vector<8x128xf32>
    %73 = vector.extract_strided_slice %64 {offsets = [0, 128], sizes = [8, 128], strides = [1, 1]} : vector<8x512xf32> to vector<8x128xf32>
    %cst_40 = arith.constant 5.000000e-01 : f32
    %74 = vector.broadcast %cst_40 : f32 to vector<8x128xf32>
    %75 = arith.mulf %74, %73 : vector<8x128xf32>
    %76 = math.tanh %75 : vector<8x128xf32>
    %cst_41 = arith.constant 5.000000e-01 : f32
    %77 = vector.broadcast %cst_41 : f32 to vector<8x128xf32>
    %78 = arith.mulf %77, %76 : vector<8x128xf32>
    %cst_42 = arith.constant 5.000000e-01 : f32
    %79 = vector.broadcast %cst_42 : f32 to vector<8x128xf32>
    %80 = arith.addf %78, %79 : vector<8x128xf32>
    %81 = vector.extract_strided_slice %64 {offsets = [0, 256], sizes = [8, 128], strides = [1, 1]} : vector<8x512xf32> to vector<8x128xf32>
    %82 = math.tanh %81 : vector<8x128xf32>
    %83 = vector.extract_strided_slice %64 {offsets = [0, 384], sizes = [8, 128], strides = [1, 1]} : vector<8x512xf32> to vector<8x128xf32>
    %cst_43 = arith.constant 5.000000e-01 : f32
    %84 = vector.broadcast %cst_43 : f32 to vector<8x128xf32>
    %85 = arith.mulf %84, %83 : vector<8x128xf32>
    %86 = math.tanh %85 : vector<8x128xf32>
    %cst_44 = arith.constant 5.000000e-01 : f32
    %87 = vector.broadcast %cst_44 : f32 to vector<8x128xf32>
    %88 = arith.mulf %87, %86 : vector<8x128xf32>
    %cst_45 = arith.constant 5.000000e-01 : f32
    %89 = vector.broadcast %cst_45 : f32 to vector<8x128xf32>
    %90 = arith.addf %88, %89 : vector<8x128xf32>
    %91 = arith.mulf %80, %52 : vector<8x128xf32>
    %92 = arith.mulf %72, %82 : vector<8x128xf32>
    %93 = arith.addf %91, %92 : vector<8x128xf32>
    %94 = math.tanh %93 : vector<8x128xf32>
    %95 = arith.mulf %90, %94 : vector<8x128xf32>
    %96 = arith.truncf %95 : vector<8x128xf32> to vector<8x128xbf16>
    %c1_46 = arith.constant 1 : index
    %c0_47 = arith.constant 0 : index
    %c0_48 = arith.constant 0 : index
    %97 = vector.load %arg13[%c1_46, %c0_47, %c0_48] : memref<4x8x128xbf16, #tpu.memory_space<vmem>>, vector<1x8x128xbf16>
    %98 = vector.shape_cast %97 : vector<1x8x128xbf16> to vector<8x128xbf16>
    %99 = vector.shape_cast %96 : vector<8x128xbf16> to vector<1x8x128xbf16>
    tpu.vector_store %arg13[%c1_46, %c0_47, %c0_48], %99 {strides = array<i32>} : memref<4x8x128xbf16, #tpu.memory_space<vmem>>, vector<1x8x128xbf16>,
    %c2 = arith.constant 2 : index
    %c0_49 = arith.constant 0 : index
    %c0_50 = arith.constant 0 : index
    %100 = vector.load %arg12[%c2, %c0_49, %c0_50] : memref<4x8x512xbf16, #tpu.memory_space<vmem>>, vector<1x8x512xbf16>
    %101 = vector.shape_cast %100 : vector<1x8x512xbf16> to vector<8x512xbf16>
    %102 = arith.extf %101 : vector<8x512xbf16> to vector<8x512xf32>
    %103 = arith.truncf %95 : vector<8x128xf32> to vector<8x128xbf16>
    %cst_51 = arith.constant dense<0.000000e+00> : vector<8x512xf32>
    %104 = tpu.matmul %103, %13, %cst_51 {dimension_numbers = #tpu.dot_dimension_numbers<[1], [0], [0], [1], [0, 0, 1, 1], [], []>} : vector<8x128xbf16>, vector<128x512xbf16>, vector<8x512xf32> -> vector<8x512xf32>
    %105 = arith.addf %102, %104 : vector<8x512xf32>
    %106 = vector.extract_strided_slice %105 {offsets = [0, 0], sizes = [8, 128], strides = [1, 1]} : vector<8x512xf32> to vector<8x128xf32>
    %cst_52 = arith.constant 5.000000e-01 : f32
    %107 = vector.broadcast %cst_52 : f32 to vector<8x128xf32>
    %108 = arith.mulf %107, %106 : vector<8x128xf32>
    %109 = math.tanh %108 : vector<8x128xf32>
    %cst_53 = arith.constant 5.000000e-01 : f32
    %110 = vector.broadcast %cst_53 : f32 to vector<8x128xf32>
    %111 = arith.mulf %110, %109 : vector<8x128xf32>
    %cst_54 = arith.constant 5.000000e-01 : f32
    %112 = vector.broadcast %cst_54 : f32 to vector<8x128xf32>
    %113 = arith.addf %111, %112 : vector<8x128xf32>
    %114 = vector.extract_strided_slice %105 {offsets = [0, 128], sizes = [8, 128], strides = [1, 1]} : vector<8x512xf32> to vector<8x128xf32>
    %cst_55 = arith.constant 5.000000e-01 : f32
    %115 = vector.broadcast %cst_55 : f32 to vector<8x128xf32>
    %116 = arith.mulf %115, %114 : vector<8x128xf32>
    %117 = math.tanh %116 : vector<8x128xf32>
    %cst_56 = arith.constant 5.000000e-01 : f32
    %118 = vector.broadcast %cst_56 : f32 to vector<8x128xf32>
    %119 = arith.mulf %118, %117 : vector<8x128xf32>
    %cst_57 = arith.constant 5.000000e-01 : f32
    %120 = vector.broadcast %cst_57 : f32 to vector<8x128xf32>
    %121 = arith.addf %119, %120 : vector<8x128xf32>
    %122 = vector.extract_strided_slice %105 {offsets = [0, 256], sizes = [8, 128], strides = [1, 1]} : vector<8x512xf32> to vector<8x128xf32>
    %123 = math.tanh %122 : vector<8x128xf32>
    %124 = vector.extract_strided_slice %105 {offsets = [0, 384], sizes = [8, 128], strides = [1, 1]} : vector<8x512xf32> to vector<8x128xf32>
    %cst_58 = arith.constant 5.000000e-01 : f32
    %125 = vector.broadcast %cst_58 : f32 to vector<8x128xf32>
    %126 = arith.mulf %125, %124 : vector<8x128xf32>
    %127 = math.tanh %126 : vector<8x128xf32>
    %cst_59 = arith.constant 5.000000e-01 : f32
    %128 = vector.broadcast %cst_59 : f32 to vector<8x128xf32>
    %129 = arith.mulf %128, %127 : vector<8x128xf32>
    %cst_60 = arith.constant 5.000000e-01 : f32
    %130 = vector.broadcast %cst_60 : f32 to vector<8x128xf32>
    %131 = arith.addf %129, %130 : vector<8x128xf32>
    %132 = arith.mulf %121, %93 : vector<8x128xf32>
    %133 = arith.mulf %113, %123 : vector<8x128xf32>
    %134 = arith.addf %132, %133 : vector<8x128xf32>
    %135 = math.tanh %134 : vector<8x128xf32>
    %136 = arith.mulf %131, %135 : vector<8x128xf32>
    %137 = arith.truncf %136 : vector<8x128xf32> to vector<8x128xbf16>
    %c2_61 = arith.constant 2 : index
    %c0_62 = arith.constant 0 : index
    %c0_63 = arith.constant 0 : index
    %138 = vector.load %arg13[%c2_61, %c0_62, %c0_63] : memref<4x8x128xbf16, #tpu.memory_space<vmem>>, vector<1x8x128xbf16>
    %139 = vector.shape_cast %138 : vector<1x8x128xbf16> to vector<8x128xbf16>
    %140 = vector.shape_cast %137 : vector<8x128xbf16> to vector<1x8x128xbf16>
    tpu.vector_store %arg13[%c2_61, %c0_62, %c0_63], %140 {strides = array<i32>} : memref<4x8x128xbf16, #tpu.memory_space<vmem>>, vector<1x8x128xbf16>,
    %c3 = arith.constant 3 : index
    %c0_64 = arith.constant 0 : index
    %c0_65 = arith.constant 0 : index
    %141 = vector.load %arg12[%c3, %c0_64, %c0_65] : memref<4x8x512xbf16, #tpu.memory_space<vmem>>, vector<1x8x512xbf16>
    %142 = vector.shape_cast %141 : vector<1x8x512xbf16> to vector<8x512xbf16>
    %143 = arith.extf %142 : vector<8x512xbf16> to vector<8x512xf32>
    %144 = arith.truncf %136 : vector<8x128xf32> to vector<8x128xbf16>
    %cst_66 = arith.constant dense<0.000000e+00> : vector<8x512xf32>
    %145 = tpu.matmul %144, %13, %cst_66 {dimension_numbers = #tpu.dot_dimension_numbers<[1], [0], [0], [1], [0, 0, 1, 1], [], []>} : vector<8x128xbf16>, vector<128x512xbf16>, vector<8x512xf32> -> vector<8x512xf32>
    %146 = arith.addf %143, %145 : vector<8x512xf32>
    %147 = vector.extract_strided_slice %146 {offsets = [0, 0], sizes = [8, 128], strides = [1, 1]} : vector<8x512xf32> to vector<8x128xf32>
    %cst_67 = arith.constant 5.000000e-01 : f32
    %148 = vector.broadcast %cst_67 : f32 to vector<8x128xf32>
    %149 = arith.mulf %148, %147 : vector<8x128xf32>
    %150 = math.tanh %149 : vector<8x128xf32>
    %cst_68 = arith.constant 5.000000e-01 : f32
    %151 = vector.broadcast %cst_68 : f32 to vector<8x128xf32>
    %152 = arith.mulf %151, %150 : vector<8x128xf32>
    %cst_69 = arith.constant 5.000000e-01 : f32
    %153 = vector.broadcast %cst_69 : f32 to vector<8x128xf32>
    %154 = arith.addf %152, %153 : vector<8x128xf32>
    %155 = vector.extract_strided_slice %146 {offsets = [0, 128], sizes = [8, 128], strides = [1, 1]} : vector<8x512xf32> to vector<8x128xf32>
    %cst_70 = arith.constant 5.000000e-01 : f32
    %156 = vector.broadcast %cst_70 : f32 to vector<8x128xf32>
    %157 = arith.mulf %156, %155 : vector<8x128xf32>
    %158 = math.tanh %157 : vector<8x128xf32>
    %cst_71 = arith.constant 5.000000e-01 : f32
    %159 = vector.broadcast %cst_71 : f32 to vector<8x128xf32>
    %160 = arith.mulf %159, %158 : vector<8x128xf32>
    %cst_72 = arith.constant 5.000000e-01 : f32
    %161 = vector.broadcast %cst_72 : f32 to vector<8x128xf32>
    %162 = arith.addf %160, %161 : vector<8x128xf32>
    %163 = vector.extract_strided_slice %146 {offsets = [0, 256], sizes = [8, 128], strides = [1, 1]} : vector<8x512xf32> to vector<8x128xf32>
    %164 = math.tanh %163 : vector<8x128xf32>
    %165 = vector.extract_strided_slice %146 {offsets = [0, 384], sizes = [8, 128], strides = [1, 1]} : vector<8x512xf32> to vector<8x128xf32>
    %cst_73 = arith.constant 5.000000e-01 : f32
    %166 = vector.broadcast %cst_73 : f32 to vector<8x128xf32>
    %167 = arith.mulf %166, %165 : vector<8x128xf32>
    %168 = math.tanh %167 : vector<8x128xf32>
    %cst_74 = arith.constant 5.000000e-01 : f32
    %169 = vector.broadcast %cst_74 : f32 to vector<8x128xf32>
    %170 = arith.mulf %169, %168 : vector<8x128xf32>
    %cst_75 = arith.constant 5.000000e-01 : f32
    %171 = vector.broadcast %cst_75 : f32 to vector<8x128xf32>
    %172 = arith.addf %170, %171 : vector<8x128xf32>
    %173 = arith.mulf %162, %134 : vector<8x128xf32>
    %174 = arith.mulf %154, %164 : vector<8x128xf32>
    %175 = arith.addf %173, %174 : vector<8x128xf32>
    %176 = math.tanh %175 : vector<8x128xf32>
    %177 = arith.mulf %172, %176 : vector<8x128xf32>
    %178 = arith.truncf %177 : vector<8x128xf32> to vector<8x128xbf16>
    %c3_76 = arith.constant 3 : index
    %c0_77 = arith.constant 0 : index
    %c0_78 = arith.constant 0 : index
    %179 = vector.load %arg13[%c3_76, %c0_77, %c0_78] : memref<4x8x128xbf16, #tpu.memory_space<vmem>>, vector<1x8x128xbf16>
    %180 = vector.shape_cast %179 : vector<1x8x128xbf16> to vector<8x128xbf16>
    %181 = vector.shape_cast %178 : vector<8x128xbf16> to vector<1x8x128xbf16>
    tpu.vector_store %arg13[%c3_76, %c0_77, %c0_78], %181 {strides = array<i32>} : memref<4x8x128xbf16, #tpu.memory_space<vmem>>, vector<1x8x128xbf16>,
    %c0_79 = arith.constant 0 : index
    %c0_80 = arith.constant 0 : index
    %c0_81 = arith.constant 0 : index
    %182 = vector.load %arg14[%c0_79, %c0_80, %c0_81] : memref<2x8x128xf32, #tpu.memory_space<vmem>>, vector<1x8x128xf32>
    %183 = vector.shape_cast %182 : vector<1x8x128xf32> to vector<8x128xf32>
    %184 = vector.shape_cast %177 : vector<8x128xf32> to vector<1x8x128xf32>
    tpu.vector_store %arg14[%c0_79, %c0_80, %c0_81], %184 {strides = array<i32>} : memref<2x8x128xf32, #tpu.memory_space<vmem>>, vector<1x8x128xf32>,
    %c0_82 = arith.constant 0 : index
    %c0_83 = arith.constant 0 : index
    %c0_84 = arith.constant 0 : index
    %185 = vector.load %arg15[%c0_82, %c0_83, %c0_84] : memref<2x8x128xf32, #tpu.memory_space<vmem>>, vector<1x8x128xf32>
    %186 = vector.shape_cast %185 : vector<1x8x128xf32> to vector<8x128xf32>
    %187 = vector.shape_cast %175 : vector<8x128xf32> to vector<1x8x128xf32>
    tpu.vector_store %arg15[%c0_82, %c0_83, %c0_84], %187 {strides = array<i32>} : memref<2x8x128xf32, #tpu.memory_space<vmem>>, vector<1x8x128xf32>,
    %c0_85 = arith.constant 0 : index
    %c0_86 = arith.constant 0 : index
    %c0_87 = arith.constant 0 : index
    %188 = vector.load %arg13[%c0_85, %c0_86, %c0_87] : memref<4x8x128xbf16, #tpu.memory_space<vmem>>, vector<4x8x128xbf16>
    %189 = vector.shape_cast %188 : vector<4x8x128xbf16> to vector<32x128xbf16>
    %c0_88 = arith.constant 0 : index
    %c0_89 = arith.constant 0 : index
    %190 = vector.load %arg6[%c0_88, %c0_89] : memref<128x512xbf16, #tpu.memory_space<vmem>>, vector<128x512xbf16>
    %cst_90 = arith.constant dense<0.000000e+00> : vector<32x512xf32>
    %191 = tpu.matmul %189, %190, %cst_90 {dimension_numbers = #tpu.dot_dimension_numbers<[1], [0], [0], [1], [0, 0, 1, 1], [], []>} : vector<32x128xbf16>, vector<128x512xbf16>, vector<32x512xf32> -> vector<32x512xf32>
    %c0_91 = arith.constant 0 : index
    %c0_92 = arith.constant 0 : index
    %192 = vector.load %arg8[%c0_91, %c0_92] : memref<1x512xf32, #tpu.memory_space<vmem>>, vector<1x512xf32>
    %193 = vector.broadcast %192 : vector<1x512xf32> to vector<32x512xf32>
    %194 = arith.addf %191, %193 : vector<32x512xf32>
    %195 = vector.shape_cast %194 : vector<32x512xf32> to vector<4x8x512xf32>
    %196 = arith.truncf %195 : vector<4x8x512xf32> to vector<4x8x512xbf16>
    %c0_93 = arith.constant 0 : index
    %c0_94 = arith.constant 0 : index
    %c0_95 = arith.constant 0 : index
    %197 = vector.load %arg12[%c0_93, %c0_94, %c0_95] : memref<4x8x512xbf16, #tpu.memory_space<vmem>>, vector<4x8x512xbf16>
    tpu.vector_store %arg12[%c0_93, %c0_94, %c0_95], %196 {strides = array<i32>} : memref<4x8x512xbf16, #tpu.memory_space<vmem>>, vector<4x8x512xbf16>,
    %c0_96 = arith.constant 0 : index
    %c0_97 = arith.constant 0 : index
    %198 = vector.load %arg7[%c0_96, %c0_97] : memref<128x512xbf16, #tpu.memory_space<vmem>>, vector<128x512xbf16>
    %c1_98 = arith.constant 1 : index
    %c0_99 = arith.constant 0 : index
    %c0_100 = arith.constant 0 : index
    %199 = vector.load %arg14[%c1_98, %c0_99, %c0_100] : memref<2x8x128xf32, #tpu.memory_space<vmem>>, vector<1x8x128xf32>
    %200 = vector.shape_cast %199 : vector<1x8x128xf32> to vector<8x128xf32>
    %c1_101 = arith.constant 1 : index
    %c0_102 = arith.constant 0 : index
    %c0_103 = arith.constant 0 : index
    %201 = vector.load %arg15[%c1_101, %c0_102, %c0_103] : memref<2x8x128xf32, #tpu.memory_space<vmem>>, vector<1x8x128xf32>
    %202 = vector.shape_cast %201 : vector<1x8x128xf32> to vector<8x128xf32>
    %c0_104 = arith.constant 0 : index
    %c0_105 = arith.constant 0 : index
    %c0_106 = arith.constant 0 : index
    %203 = vector.load %arg12[%c0_104, %c0_105, %c0_106] : memref<4x8x512xbf16, #tpu.memory_space<vmem>>, vector<1x8x512xbf16>
    %204 = vector.shape_cast %203 : vector<1x8x512xbf16> to vector<8x512xbf16>
    %205 = arith.extf %204 : vector<8x512xbf16> to vector<8x512xf32>
    %206 = arith.truncf %200 : vector<8x128xf32> to vector<8x128xbf16>
    %cst_107 = arith.constant dense<0.000000e+00> : vector<8x512xf32>
    %207 = tpu.matmul %206, %198, %cst_107 {dimension_numbers = #tpu.dot_dimension_numbers<[1], [0], [0], [1], [0, 0, 1, 1], [], []>} : vector<8x128xbf16>, vector<128x512xbf16>, vector<8x512xf32> -> vector<8x512xf32>
    %208 = arith.addf %205, %207 : vector<8x512xf32>
    %209 = vector.extract_strided_slice %208 {offsets = [0, 0], sizes = [8, 128], strides = [1, 1]} : vector<8x512xf32> to vector<8x128xf32>
    %cst_108 = arith.constant 5.000000e-01 : f32
    %210 = vector.broadcast %cst_108 : f32 to vector<8x128xf32>
    %211 = arith.mulf %210, %209 : vector<8x128xf32>
    %212 = math.tanh %211 : vector<8x128xf32>
    %cst_109 = arith.constant 5.000000e-01 : f32
    %213 = vector.broadcast %cst_109 : f32 to vector<8x128xf32>
    %214 = arith.mulf %213, %212 : vector<8x128xf32>
    %cst_110 = arith.constant 5.000000e-01 : f32
    %215 = vector.broadcast %cst_110 : f32 to vector<8x128xf32>
    %216 = arith.addf %214, %215 : vector<8x128xf32>
    %217 = vector.extract_strided_slice %208 {offsets = [0, 128], sizes = [8, 128], strides = [1, 1]} : vector<8x512xf32> to vector<8x128xf32>
    %cst_111 = arith.constant 5.000000e-01 : f32
    %218 = vector.broadcast %cst_111 : f32 to vector<8x128xf32>
    %219 = arith.mulf %218, %217 : vector<8x128xf32>
    %220 = math.tanh %219 : vector<8x128xf32>
    %cst_112 = arith.constant 5.000000e-01 : f32
    %221 = vector.broadcast %cst_112 : f32 to vector<8x128xf32>
    %222 = arith.mulf %221, %220 : vector<8x128xf32>
    %cst_113 = arith.constant 5.000000e-01 : f32
    %223 = vector.broadcast %cst_113 : f32 to vector<8x128xf32>
    %224 = arith.addf %222, %223 : vector<8x128xf32>
    %225 = vector.extract_strided_slice %208 {offsets = [0, 256], sizes = [8, 128], strides = [1, 1]} : vector<8x512xf32> to vector<8x128xf32>
    %226 = math.tanh %225 : vector<8x128xf32>
    %227 = vector.extract_strided_slice %208 {offsets = [0, 384], sizes = [8, 128], strides = [1, 1]} : vector<8x512xf32> to vector<8x128xf32>
    %cst_114 = arith.constant 5.000000e-01 : f32
    %228 = vector.broadcast %cst_114 : f32 to vector<8x128xf32>
    %229 = arith.mulf %228, %227 : vector<8x128xf32>
    %230 = math.tanh %229 : vector<8x128xf32>
    %cst_115 = arith.constant 5.000000e-01 : f32
    %231 = vector.broadcast %cst_115 : f32 to vector<8x128xf32>
    %232 = arith.mulf %231, %230 : vector<8x128xf32>
    %cst_116 = arith.constant 5.000000e-01 : f32
    %233 = vector.broadcast %cst_116 : f32 to vector<8x128xf32>
    %234 = arith.addf %232, %233 : vector<8x128xf32>
    %235 = arith.mulf %224, %202 : vector<8x128xf32>
    %236 = arith.mulf %216, %226 : vector<8x128xf32>
    %237 = arith.addf %235, %236 : vector<8x128xf32>
    %238 = math.tanh %237 : vector<8x128xf32>
    %239 = arith.mulf %234, %238 : vector<8x128xf32>
    %c1_117 = arith.constant 1 : index
    %c0_118 = arith.constant 0 : index
    %c0_119 = arith.constant 0 : index
    %240 = vector.load %arg12[%c1_117, %c0_118, %c0_119] : memref<4x8x512xbf16, #tpu.memory_space<vmem>>, vector<1x8x512xbf16>
    %241 = vector.shape_cast %240 : vector<1x8x512xbf16> to vector<8x512xbf16>
    %242 = arith.extf %241 : vector<8x512xbf16> to vector<8x512xf32>
    %243 = arith.truncf %239 : vector<8x128xf32> to vector<8x128xbf16>
    %cst_120 = arith.constant dense<0.000000e+00> : vector<8x512xf32>
    %244 = tpu.matmul %243, %198, %cst_120 {dimension_numbers = #tpu.dot_dimension_numbers<[1], [0], [0], [1], [0, 0, 1, 1], [], []>} : vector<8x128xbf16>, vector<128x512xbf16>, vector<8x512xf32> -> vector<8x512xf32>
    %245 = arith.addf %242, %244 : vector<8x512xf32>
    %246 = vector.extract_strided_slice %245 {offsets = [0, 0], sizes = [8, 128], strides = [1, 1]} : vector<8x512xf32> to vector<8x128xf32>
    %cst_121 = arith.constant 5.000000e-01 : f32
    %247 = vector.broadcast %cst_121 : f32 to vector<8x128xf32>
    %248 = arith.mulf %247, %246 : vector<8x128xf32>
    %249 = math.tanh %248 : vector<8x128xf32>
    %cst_122 = arith.constant 5.000000e-01 : f32
    %250 = vector.broadcast %cst_122 : f32 to vector<8x128xf32>
    %251 = arith.mulf %250, %249 : vector<8x128xf32>
    %cst_123 = arith.constant 5.000000e-01 : f32
    %252 = vector.broadcast %cst_123 : f32 to vector<8x128xf32>
    %253 = arith.addf %251, %252 : vector<8x128xf32>
    %254 = vector.extract_strided_slice %245 {offsets = [0, 128], sizes = [8, 128], strides = [1, 1]} : vector<8x512xf32> to vector<8x128xf32>
    %cst_124 = arith.constant 5.000000e-01 : f32
    %255 = vector.broadcast %cst_124 : f32 to vector<8x128xf32>
    %256 = arith.mulf %255, %254 : vector<8x128xf32>
    %257 = math.tanh %256 : vector<8x128xf32>
    %cst_125 = arith.constant 5.000000e-01 : f32
    %258 = vector.broadcast %cst_125 : f32 to vector<8x128xf32>
    %259 = arith.mulf %258, %257 : vector<8x128xf32>
    %cst_126 = arith.constant 5.000000e-01 : f32
    %260 = vector.broadcast %cst_126 : f32 to vector<8x128xf32>
    %261 = arith.addf %259, %260 : vector<8x128xf32>
    %262 = vector.extract_strided_slice %245 {offsets = [0, 256], sizes = [8, 128], strides = [1, 1]} : vector<8x512xf32> to vector<8x128xf32>
    %263 = math.tanh %262 : vector<8x128xf32>
    %264 = vector.extract_strided_slice %245 {offsets = [0, 384], sizes = [8, 128], strides = [1, 1]} : vector<8x512xf32> to vector<8x128xf32>
    %cst_127 = arith.constant 5.000000e-01 : f32
    %265 = vector.broadcast %cst_127 : f32 to vector<8x128xf32>
    %266 = arith.mulf %265, %264 : vector<8x128xf32>
    %267 = math.tanh %266 : vector<8x128xf32>
    %cst_128 = arith.constant 5.000000e-01 : f32
    %268 = vector.broadcast %cst_128 : f32 to vector<8x128xf32>
    %269 = arith.mulf %268, %267 : vector<8x128xf32>
    %cst_129 = arith.constant 5.000000e-01 : f32
    %270 = vector.broadcast %cst_129 : f32 to vector<8x128xf32>
    %271 = arith.addf %269, %270 : vector<8x128xf32>
    %272 = arith.mulf %261, %237 : vector<8x128xf32>
    %273 = arith.mulf %253, %263 : vector<8x128xf32>
    %274 = arith.addf %272, %273 : vector<8x128xf32>
    %275 = math.tanh %274 : vector<8x128xf32>
    %276 = arith.mulf %271, %275 : vector<8x128xf32>
    %c2_130 = arith.constant 2 : index
    %c0_131 = arith.constant 0 : index
    %c0_132 = arith.constant 0 : index
    %277 = vector.load %arg12[%c2_130, %c0_131, %c0_132] : memref<4x8x512xbf16, #tpu.memory_space<vmem>>, vector<1x8x512xbf16>
    %278 = vector.shape_cast %277 : vector<1x8x512xbf16> to vector<8x512xbf16>
    %279 = arith.extf %278 : vector<8x512xbf16> to vector<8x512xf32>
    %280 = arith.truncf %276 : vector<8x128xf32> to vector<8x128xbf16>
    %cst_133 = arith.constant dense<0.000000e+00> : vector<8x512xf32>
    %281 = tpu.matmul %280, %198, %cst_133 {dimension_numbers = #tpu.dot_dimension_numbers<[1], [0], [0], [1], [0, 0, 1, 1], [], []>} : vector<8x128xbf16>, vector<128x512xbf16>, vector<8x512xf32> -> vector<8x512xf32>
    %282 = arith.addf %279, %281 : vector<8x512xf32>
    %283 = vector.extract_strided_slice %282 {offsets = [0, 0], sizes = [8, 128], strides = [1, 1]} : vector<8x512xf32> to vector<8x128xf32>
    %cst_134 = arith.constant 5.000000e-01 : f32
    %284 = vector.broadcast %cst_134 : f32 to vector<8x128xf32>
    %285 = arith.mulf %284, %283 : vector<8x128xf32>
    %286 = math.tanh %285 : vector<8x128xf32>
    %cst_135 = arith.constant 5.000000e-01 : f32
    %287 = vector.broadcast %cst_135 : f32 to vector<8x128xf32>
    %288 = arith.mulf %287, %286 : vector<8x128xf32>
    %cst_136 = arith.constant 5.000000e-01 : f32
    %289 = vector.broadcast %cst_136 : f32 to vector<8x128xf32>
    %290 = arith.addf %288, %289 : vector<8x128xf32>
    %291 = vector.extract_strided_slice %282 {offsets = [0, 128], sizes = [8, 128], strides = [1, 1]} : vector<8x512xf32> to vector<8x128xf32>
    %cst_137 = arith.constant 5.000000e-01 : f32
    %292 = vector.broadcast %cst_137 : f32 to vector<8x128xf32>
    %293 = arith.mulf %292, %291 : vector<8x128xf32>
    %294 = math.tanh %293 : vector<8x128xf32>
    %cst_138 = arith.constant 5.000000e-01 : f32
    %295 = vector.broadcast %cst_138 : f32 to vector<8x128xf32>
    %296 = arith.mulf %295, %294 : vector<8x128xf32>
    %cst_139 = arith.constant 5.000000e-01 : f32
    %297 = vector.broadcast %cst_139 : f32 to vector<8x128xf32>
    %298 = arith.addf %296, %297 : vector<8x128xf32>
    %299 = vector.extract_strided_slice %282 {offsets = [0, 256], sizes = [8, 128], strides = [1, 1]} : vector<8x512xf32> to vector<8x128xf32>
    %300 = math.tanh %299 : vector<8x128xf32>
    %301 = vector.extract_strided_slice %282 {offsets = [0, 384], sizes = [8, 128], strides = [1, 1]} : vector<8x512xf32> to vector<8x128xf32>
    %cst_140 = arith.constant 5.000000e-01 : f32
    %302 = vector.broadcast %cst_140 : f32 to vector<8x128xf32>
    %303 = arith.mulf %302, %301 : vector<8x128xf32>
    %304 = math.tanh %303 : vector<8x128xf32>
    %cst_141 = arith.constant 5.000000e-01 : f32
    %305 = vector.broadcast %cst_141 : f32 to vector<8x128xf32>
    %306 = arith.mulf %305, %304 : vector<8x128xf32>
    %cst_142 = arith.constant 5.000000e-01 : f32
    %307 = vector.broadcast %cst_142 : f32 to vector<8x128xf32>
    %308 = arith.addf %306, %307 : vector<8x128xf32>
    %309 = arith.mulf %298, %274 : vector<8x128xf32>
    %310 = arith.mulf %290, %300 : vector<8x128xf32>
    %311 = arith.addf %309, %310 : vector<8x128xf32>
    %312 = math.tanh %311 : vector<8x128xf32>
    %313 = arith.mulf %308, %312 : vector<8x128xf32>
    %c3_143 = arith.constant 3 : index
    %c0_144 = arith.constant 0 : index
    %c0_145 = arith.constant 0 : index
    %314 = vector.load %arg12[%c3_143, %c0_144, %c0_145] : memref<4x8x512xbf16, #tpu.memory_space<vmem>>, vector<1x8x512xbf16>
    %315 = vector.shape_cast %314 : vector<1x8x512xbf16> to vector<8x512xbf16>
    %316 = arith.extf %315 : vector<8x512xbf16> to vector<8x512xf32>
    %317 = arith.truncf %313 : vector<8x128xf32> to vector<8x128xbf16>
    %cst_146 = arith.constant dense<0.000000e+00> : vector<8x512xf32>
    %318 = tpu.matmul %317, %198, %cst_146 {dimension_numbers = #tpu.dot_dimension_numbers<[1], [0], [0], [1], [0, 0, 1, 1], [], []>} : vector<8x128xbf16>, vector<128x512xbf16>, vector<8x512xf32> -> vector<8x512xf32>
    %319 = arith.addf %316, %318 : vector<8x512xf32>
    %320 = vector.extract_strided_slice %319 {offsets = [0, 0], sizes = [8, 128], strides = [1, 1]} : vector<8x512xf32> to vector<8x128xf32>
    %cst_147 = arith.constant 5.000000e-01 : f32
    %321 = vector.broadcast %cst_147 : f32 to vector<8x128xf32>
    %322 = arith.mulf %321, %320 : vector<8x128xf32>
    %323 = math.tanh %322 : vector<8x128xf32>
    %cst_148 = arith.constant 5.000000e-01 : f32
    %324 = vector.broadcast %cst_148 : f32 to vector<8x128xf32>
    %325 = arith.mulf %324, %323 : vector<8x128xf32>
    %cst_149 = arith.constant 5.000000e-01 : f32
    %326 = vector.broadcast %cst_149 : f32 to vector<8x128xf32>
    %327 = arith.addf %325, %326 : vector<8x128xf32>
    %328 = vector.extract_strided_slice %319 {offsets = [0, 128], sizes = [8, 128], strides = [1, 1]} : vector<8x512xf32> to vector<8x128xf32>
    %cst_150 = arith.constant 5.000000e-01 : f32
    %329 = vector.broadcast %cst_150 : f32 to vector<8x128xf32>
    %330 = arith.mulf %329, %328 : vector<8x128xf32>
    %331 = math.tanh %330 : vector<8x128xf32>
    %cst_151 = arith.constant 5.000000e-01 : f32
    %332 = vector.broadcast %cst_151 : f32 to vector<8x128xf32>
    %333 = arith.mulf %332, %331 : vector<8x128xf32>
    %cst_152 = arith.constant 5.000000e-01 : f32
    %334 = vector.broadcast %cst_152 : f32 to vector<8x128xf32>
    %335 = arith.addf %333, %334 : vector<8x128xf32>
    %336 = vector.extract_strided_slice %319 {offsets = [0, 256], sizes = [8, 128], strides = [1, 1]} : vector<8x512xf32> to vector<8x128xf32>
    %337 = math.tanh %336 : vector<8x128xf32>
    %338 = vector.extract_strided_slice %319 {offsets = [0, 384], sizes = [8, 128], strides = [1, 1]} : vector<8x512xf32> to vector<8x128xf32>
    %cst_153 = arith.constant 5.000000e-01 : f32
    %339 = vector.broadcast %cst_153 : f32 to vector<8x128xf32>
    %340 = arith.mulf %339, %338 : vector<8x128xf32>
    %341 = math.tanh %340 : vector<8x128xf32>
    %cst_154 = arith.constant 5.000000e-01 : f32
    %342 = vector.broadcast %cst_154 : f32 to vector<8x128xf32>
    %343 = arith.mulf %342, %341 : vector<8x128xf32>
    %cst_155 = arith.constant 5.000000e-01 : f32
    %344 = vector.broadcast %cst_155 : f32 to vector<8x128xf32>
    %345 = arith.addf %343, %344 : vector<8x128xf32>
    %346 = arith.mulf %335, %311 : vector<8x128xf32>
    %347 = arith.mulf %327, %337 : vector<8x128xf32>
    %348 = arith.addf %346, %347 : vector<8x128xf32>
    %349 = math.tanh %348 : vector<8x128xf32>
    %350 = arith.mulf %345, %349 : vector<8x128xf32>
    %c1_156 = arith.constant 1 : index
    %c0_157 = arith.constant 0 : index
    %c0_158 = arith.constant 0 : index
    %351 = vector.load %arg14[%c1_156, %c0_157, %c0_158] : memref<2x8x128xf32, #tpu.memory_space<vmem>>, vector<1x8x128xf32>
    %352 = vector.shape_cast %351 : vector<1x8x128xf32> to vector<8x128xf32>
    %353 = vector.shape_cast %350 : vector<8x128xf32> to vector<1x8x128xf32>
    tpu.vector_store %arg14[%c1_156, %c0_157, %c0_158], %353 {strides = array<i32>} : memref<2x8x128xf32, #tpu.memory_space<vmem>>, vector<1x8x128xf32>,
    %c1_159 = arith.constant 1 : index
    %c0_160 = arith.constant 0 : index
    %c0_161 = arith.constant 0 : index
    %354 = vector.load %arg15[%c1_159, %c0_160, %c0_161] : memref<2x8x128xf32, #tpu.memory_space<vmem>>, vector<1x8x128xf32>
    %355 = vector.shape_cast %354 : vector<1x8x128xf32> to vector<8x128xf32>
    %356 = vector.shape_cast %348 : vector<8x128xf32> to vector<1x8x128xf32>
    tpu.vector_store %arg15[%c1_159, %c0_160, %c0_161], %356 {strides = array<i32>} : memref<2x8x128xf32, #tpu.memory_space<vmem>>, vector<1x8x128xf32>,
    %c1_i32 = arith.constant 1 : i32
    %357 = arith.cmpi eq, %arg1, %c1_i32 : i32
    %358 = arith.extui %357 : i1 to i32
    %c0_i32_162 = arith.constant 0 : i32
    %359 = arith.cmpi ne, %358, %c0_i32_162 : i32
    scf.if %359 {
      %360 = arith.truncf %350 : vector<8x128xf32> to vector<8x128xbf16>
      %c0_163 = arith.constant 0 : index
      %c0_164 = arith.constant 0 : index
      %361 = vector.load %arg9[%c0_163, %c0_164] : memref<128x128xbf16, #tpu.memory_space<vmem>>, vector<128x128xbf16>
      %cst_165 = arith.constant dense<0.000000e+00> : vector<8x128xf32>
      %362 = tpu.matmul %360, %361, %cst_165 {dimension_numbers = #tpu.dot_dimension_numbers<[1], [0], [0], [1], [0, 0, 1, 1], [], []>} : vector<8x128xbf16>, vector<128x128xbf16>, vector<8x128xf32> -> vector<8x128xf32>
      %c0_166 = arith.constant 0 : index
      %c0_167 = arith.constant 0 : index
      %363 = vector.load %arg10[%c0_166, %c0_167] : memref<1x128xf32, #tpu.memory_space<vmem>>, vector<1x128xf32>
      %364 = vector.broadcast %363 : vector<1x128xf32> to vector<8x128xf32>
      %365 = arith.addf %362, %364 : vector<8x128xf32>
      %c0_168 = arith.constant 0 : index
      %c0_169 = arith.constant 0 : index
      %366 = vector.load %arg11[%c0_168, %c0_169] : memref<8x128xf32, #tpu.memory_space<vmem>>, vector<8x128xf32>
      tpu.vector_store %arg11[%c0_168, %c0_169], %365 {strides = array<i32>} : memref<8x128xf32, #tpu.memory_space<vmem>>, vector<8x128xf32>,
    } else {
    }
    return
  }
  func.func @transform_0(%arg0: i32, %arg1: i32) -> (i32, i32, i32) {
    %c0_i32 = arith.constant 0 : i32
    %c0_i32_0 = arith.constant 0 : i32
    return %arg1, %arg0, %c0_i32 : i32, i32, i32
  }
  func.func @transform_1(%arg0: i32, %arg1: i32) -> (i32, i32) {
    %c0_i32 = arith.constant 0 : i32
    %c0_i32_0 = arith.constant 0 : i32
    %c0_i32_1 = arith.constant 0 : i32
    return %c0_i32, %c0_i32_0 : i32, i32
  }
  func.func @transform_2(%arg0: i32, %arg1: i32) -> (i32, i32) {
    %c0_i32 = arith.constant 0 : i32
    %c0_i32_0 = arith.constant 0 : i32
    %c0_i32_1 = arith.constant 0 : i32
    return %c0_i32, %c0_i32_0 : i32, i32
  }
  func.func @transform_3(%arg0: i32, %arg1: i32) -> (i32, i32) {
    %c0_i32 = arith.constant 0 : i32
    %c0_i32_0 = arith.constant 0 : i32
    %c0_i32_1 = arith.constant 0 : i32
    return %c0_i32, %c0_i32_0 : i32, i32
  }
  func.func @transform_4(%arg0: i32, %arg1: i32) -> (i32, i32) {
    %c0_i32 = arith.constant 0 : i32
    %c0_i32_0 = arith.constant 0 : i32
    %c0_i32_1 = arith.constant 0 : i32
    return %c0_i32, %c0_i32_0 : i32, i32
  }
  func.func @transform_5(%arg0: i32, %arg1: i32) -> (i32, i32) {
    %c0_i32 = arith.constant 0 : i32
    %c0_i32_0 = arith.constant 0 : i32
    %c0_i32_1 = arith.constant 0 : i32
    return %c0_i32, %c0_i32_0 : i32, i32
  }
  func.func @transform_6(%arg0: i32, %arg1: i32) -> (i32, i32) {
    %c0_i32 = arith.constant 0 : i32
    %c0_i32_0 = arith.constant 0 : i32
    %c0_i32_1 = arith.constant 0 : i32
    return %c0_i32, %c0_i32_0 : i32, i32
  }
  func.func @transform_7(%arg0: i32, %arg1: i32) -> (i32, i32) {
    %c0_i32 = arith.constant 0 : i32
    %c0_i32_0 = arith.constant 0 : i32
    %c0_i32_1 = arith.constant 0 : i32
    return %c0_i32, %c0_i32_0 : i32, i32
  }
  func.func @transform_8(%arg0: i32, %arg1: i32) -> (i32, i32) {
    %c0_i32 = arith.constant 0 : i32
    %c0_i32_0 = arith.constant 0 : i32
    %c0_i32_1 = arith.constant 0 : i32
    return %c0_i32, %c0_i32_0 : i32, i32
  }
  func.func @transform_9(%arg0: i32, %arg1: i32) -> (i32, i32) {
    %c0_i32 = arith.constant 0 : i32
    %c0_i32_0 = arith.constant 0 : i32
    return %arg0, %c0_i32 : i32, i32
  }
}

module attributes {stable_mosaic.version = 11 : i64} {
  func.func @kernel(%arg0: i32, %arg1: i32, %arg2: memref<4x8x4xbf16, #tpu.memory_space<vmem>>, %arg3: memref<4x512xbf16, #tpu.memory_space<vmem>>, %arg4: memref<128x512xbf16, #tpu.memory_space<vmem>>, %arg5: memref<1x512xf32, #tpu.memory_space<vmem>>, %arg6: memref<128x512xbf16, #tpu.memory_space<vmem>>, %arg7: memref<128x512xbf16, #tpu.memory_space<vmem>>, %arg8: memref<1x512xf32, #tpu.memory_space<vmem>>, %arg9: memref<128x128xbf16, #tpu.memory_space<vmem>>, %arg10: memref<1x128xf32, #tpu.memory_space<vmem>>, %arg11: memref<8x128xf32, #tpu.memory_space<vmem>>, %arg12: memref<4x8x512xbf16, #tpu.memory_space<vmem>>, %arg13: memref<4x8x128xbf16, #tpu.memory_space<vmem>>, %arg14: memref<2x8x128xf32, #tpu.memory_space<vmem>>, %arg15: memref<2x8x128xf32, #tpu.memory_space<vmem>>) attributes {dimension_semantics = [#tpu.dimension_semantics<parallel>, #tpu.dimension_semantics<arbitrary>], iteration_bounds = array<i64: 1, 2>, scalar_prefetch = 0 : i64, scratch_operands = 4 : i64, tpu.core_type = #tpu.core_type<tc>, window_params = [{transform_indices = @transform_0, window_bounds = array<i64: 4, 8, 4>}, {pipeline_mode = #tpu.pipeline_mode<synchronous>, transform_indices = @transform_1, window_bounds = array<i64: 4, 512>}, {pipeline_mode = #tpu.pipeline_mode<synchronous>, transform_indices = @transform_2, window_bounds = array<i64: 128, 512>}, {pipeline_mode = #tpu.pipeline_mode<synchronous>, transform_indices = @transform_3, window_bounds = array<i64: 1, 512>}, {pipeline_mode = #tpu.pipeline_mode<synchronous>, transform_indices = @transform_4, window_bounds = array<i64: 128, 512>}, {pipeline_mode = #tpu.pipeline_mode<synchronous>, transform_indices = @transform_5, window_bounds = array<i64: 128, 512>}, {pipeline_mode = #tpu.pipeline_mode<synchronous>, transform_indices = @transform_6, window_bounds = array<i64: 1, 512>}, {pipeline_mode = #tpu.pipeline_mode<synchronous>, transform_indices = @transform_7, window_bounds = array<i64: 128, 128>}, {pipeline_mode = #tpu.pipeline_mode<synchronous>, transform_indices = @transform_8, window_bounds = array<i64: 1, 128>}, {transform_indices = @transform_9, window_bounds = array<i64: 8, 128>}]} {
    %c0_i32 = arith.constant 0 : i32
    %0 = arith.cmpi eq, %arg1, %c0_i32 : i32
    %1 = arith.extui %0 : i1 to i32
    %c0_i32_0 = arith.constant 0 : i32
    %2 = arith.cmpi ne, %1, %c0_i32_0 : i32
    scf.if %2 {
      %cst_163 = arith.constant 0.000000e+00 : f32
      %360 = vector.broadcast %cst_163 : f32 to vector<2x8x128xf32>
      %c0_164 = arith.constant 0 : index
      %c0_165 = arith.constant 0 : index
      %c0_166 = arith.constant 0 : index
      %361 = vector.load %arg14[%c0_164, %c0_165, %c0_166] : memref<2x8x128xf32, #tpu.memory_space<vmem>>, vector<2x8x128xf32>
      tpu.vector_store %arg14[%c0_164, %c0_165, %c0_166], %360 {strides = array<i32>} : memref<2x8x128xf32, #tpu.memory_space<vmem>>, vector<2x8x128xf32>,
      %cst_167 = arith.constant 0.000000e+00 : f32
      %362 = vector.broadcast %cst_167 : f32 to vector<2x8x128xf32>
      %c0_168 = arith.constant 0 : index
      %c0_169 = arith.constant 0 : index
      %c0_170 = arith.constant 0 : index
      %363 = vector.load %arg15[%c0_168, %c0_169, %c0_170] : memref<2x8x128xf32, #tpu.memory_space<vmem>>, vector<2x8x128xf32>
      tpu.vector_store %arg15[%c0_168, %c0_169, %c0_170], %362 {strides = array<i32>} : memref<2x8x128xf32, #tpu.memory_space<vmem>>, vector<2x8x128xf32>,
    } else {
    }
    %c0 = arith.constant 0 : index
    %c0_1 = arith.constant 0 : index
    %c0_2 = arith.constant 0 : index
    %3 = vector.load %arg2[%c0, %c0_1, %c0_2] : memref<4x8x4xbf16, #tpu.memory_space<vmem>>, vector<4x8x4xbf16>
    %4 = vector.shape_cast %3 : vector<4x8x4xbf16> to vector<32x4xbf16>
    %c0_3 = arith.constant 0 : index
    %c0_4 = arith.constant 0 : index
    %5 = vector.load %arg3[%c0_3, %c0_4] : memref<4x512xbf16, #tpu.memory_space<vmem>>, vector<4x512xbf16>
    %cst = arith.constant dense<0.000000e+00> : vector<32x512xf32>
    %6 = tpu.matmul %4, %5, %cst {dimension_numbers = #tpu.dot_dimension_numbers<[1], [0], [0], [1], [0, 0, 1, 1], [], []>} : vector<32x4xbf16>, vector<4x512xbf16>, vector<32x512xf32> -> vector<32x512xf32>
    %c0_5 = arith.constant 0 : index
    %c0_6 = arith.constant 0 : index
    %7 = vector.load %arg5[%c0_5, %c0_6] : memref<1x512xf32, #tpu.memory_space<vmem>>, vector<1x512xf32>
    %8 = vector.broadcast %7 : vector<1x512xf32> to vector<32x512xf32>
    %9 = arith.addf %6, %8 : vector<32x512xf32>
    %10 = vector.shape_cast %9 : vector<32x512xf32> to vector<4x8x512xf32>
    %11 = arith.truncf %10 : vector<4x8x512xf32> to vector<4x8x512xbf16>
    %c0_7 = arith.constant 0 : index
    %c0_8 = arith.constant 0 : index
    %c0_9 = arith.constant 0 : index
    %12 = vector.load %arg12[%c0_7, %c0_8, %c0_9] : memref<4x8x512xbf16, #tpu.memory_space<vmem>>, vector<4x8x512xbf16>
    tpu.vector_store %arg12[%c0_7, %c0_8, %c0_9], %11 {strides = array<i32>} : memref<4x8x512xbf16, #tpu.memory_space<vmem>>, vector<4x8x512xbf16>,
    %c0_10 = arith.constant 0 : index
    %c0_11 = arith.constant 0 : index
    %13 = vector.load %arg4[%c0_10, %c0_11] : memref<128x512xbf16, #tpu.memory_space<vmem>>, vector<128x512xbf16>
    %c0_12 = arith.constant 0 : index
    %c0_13 = arith.constant 0 : index
    %c0_14 = arith.constant 0 : index
    %14 = vector.load %arg14[%c0_12, %c0_13, %c0_14] : memref<2x8x128xf32, #tpu.memory_space<vmem>>, vector<1x8x128xf32>
    %15 = vector.shape_cast %14 : vector<1x8x128xf32> to vector<8x128xf32>
    %c0_15 = arith.constant 0 : index
    %c0_16 = arith.constant 0 : index
    %c0_17 = arith.constant 0 : index
    %16 = vector.load %arg15[%c0_15, %c0_16, %c0_17] : memref<2x8x128xf32, #tpu.memory_space<vmem>>, vector<1x8x128xf32>
    %17 = vector.shape_cast %16 : vector<1x8x128xf32> to vector<8x128xf32>
    %c0_18 = arith.constant 0 : index
    %c0_19 = arith.constant 0 : index
    %c0_20 = arith.constant 0 : index
    %18 = vector.load %arg12[%c0_18, %c0_19, %c0_20] : memref<4x8x512xbf16, #tpu.memory_space<vmem>>, vector<1x8x512xbf16>
    %19 = vector.shape_cast %18 : vector<1x8x512xbf16> to vector<8x512xbf16>
    %20 = arith.extf %19 : vector<8x512xbf16> to vector<8x512xf32>
    %21 = arith.truncf %15 : vector<8x128xf32> to vector<8x128xbf16>
    %cst_21 = arith.constant dense<0.000000e+00> : vector<8x512xf32>
    %22 = tpu.matmul %21, %13, %cst_21 {dimension_numbers = #tpu.dot_dimension_numbers<[1], [0], [0], [1], [0, 0, 1, 1], [], []>} : vector<8x128xbf16>, vector<128x512xbf16>, vector<8x512xf32> -> vector<8x512xf32>
    %23 = arith.addf %20, %22 : vector<8x512xf32>
    %24 = vector.extract_strided_slice %23 {offsets = [0, 0], sizes = [8, 128], strides = [1, 1]} : vector<8x512xf32> to vector<8x128xf32>
    %cst_22 = arith.constant 5.000000e-01 : f32
    %25 = vector.broadcast %cst_22 : f32 to vector<8x128xf32>
    %26 = arith.mulf %25, %24 : vector<8x128xf32>
    %27 = math.tanh %26 : vector<8x128xf32>
    %cst_23 = arith.constant 5.000000e-01 : f32
    %28 = vector.broadcast %cst_23 : f32 to vector<8x128xf32>
    %29 = arith.mulf %28, %27 : vector<8x128xf32>
    %cst_24 = arith.constant 5.000000e-01 : f32
    %30 = vector.broadcast %cst_24 : f32 to vector<8x128xf32>
    %31 = arith.addf %29, %30 : vector<8x128xf32>
    %32 = vector.extract_strided_slice %23 {offsets = [0, 128], sizes = [8, 128], strides = [1, 1]} : vector<8x512xf32> to vector<8x128xf32>
    %cst_25 = arith.constant 5.000000e-01 : f32
    %33 = vector.broadcast %cst_25 : f32 to vector<8x128xf32>
    %34 = arith.mulf %33, %32 : vector<8x128xf32>
    %35 = math.tanh %34 : vector<8x128xf32>
    %cst_26 = arith.constant 5.000000e-01 : f32
    %36 = vector.broadcast %cst_26 : f32 to vector<8x128xf32>
    %37 = arith.mulf %36, %35 : vector<8x128xf32>
    %cst_27 = arith.constant 5.000000e-01 : f32
    %38 = vector.broadcast %cst_27 : f32 to vector<8x128xf32>
    %39 = arith.addf %37, %38 : vector<8x128xf32>
    %40 = vector.extract_strided_slice %23 {offsets = [0, 256], sizes = [8, 128], strides = [1, 1]} : vector<8x512xf32> to vector<8x128xf32>
    %41 = math.tanh %40 : vector<8x128xf32>
    %42 = vector.extract_strided_slice %23 {offsets = [0, 384], sizes = [8, 128], strides = [1, 1]} : vector<8x512xf32> to vector<8x128xf32>
    %cst_28 = arith.constant 5.000000e-01 : f32
    %43 = vector.broadcast %cst_28 : f32 to vector<8x128xf32>
    %44 = arith.mulf %43, %42 : vector<8x128xf32>
    %45 = math.tanh %44 : vector<8x128xf32>
    %cst_29 = arith.constant 5.000000e-01 : f32
    %46 = vector.broadcast %cst_29 : f32 to vector<8x128xf32>
    %47 = arith.mulf %46, %45 : vector<8x128xf32>
    %cst_30 = arith.constant 5.000000e-01 : f32
    %48 = vector.broadcast %cst_30 : f32 to vector<8x128xf32>
    %49 = arith.addf %47, %48 : vector<8x128xf32>
    %50 = arith.mulf %39, %17 : vector<8x128xf32>
    %51 = arith.mulf %31, %41 : vector<8x128xf32>
    %52 = arith.addf %50, %51 : vector<8x128xf32>
    %53 = math.tanh %52 : vector<8x128xf32>
    %54 = arith.mulf %49, %53 : vector<8x128xf32>
    %55 = arith.truncf %54 : vector<8x128xf32> to vector<8x128xbf16>
    %c0_31 = arith.constant 0 : index
    %c0_32 = arith.constant 0 : index
    %c0_33 = arith.constant 0 : index
    %56 = vector.load %arg13[%c0_31, %c0_32, %c0_33] : memref<4x8x128xbf16, #tpu.memory_space<vmem>>, vector<1x8x128xbf16>
    %57 = vector.shape_cast %56 : vector<1x8x128xbf16> to vector<8x128xbf16>
    %58 = vector.shape_cast %55 : vector<8x128xbf16> to vector<1x8x128xbf16>
    tpu.vector_store %arg13[%c0_31, %c0_32, %c0_33], %58 {strides = array<i32>} : memref<4x8x128xbf16, #tpu.memory_space<vmem>>, vector<1x8x128xbf16>,
    %c1 = arith.constant 1 : index
    %c0_34 = arith.constant 0 : index
    %c0_35 = arith.constant 0 : index
    %59 = vector.load %arg12[%c1, %c0_34, %c0_35] : memref<4x8x512xbf16, #tpu.memory_space<vmem>>, vector<1x8x512xbf16>
    %60 = vector.shape_cast %59 : vector<1x8x512xbf16> to vector<8x512xbf16>
    %61 = arith.extf %60 : vector<8x512xbf16> to vector<8x512xf32>
    %62 = arith.truncf %54 : vector<8x128xf32> to vector<8x128xbf16>
    %cst_36 = arith.constant dense<0.000000e+00> : vector<8x512xf32>
    %63 = tpu.matmul %62, %13, %cst_36 {dimension_numbers = #tpu.dot_dimension_numbers<[1], [0], [0], [1], [0, 0, 1, 1], [], []>} : vector<8x128xbf16>, vector<128x512xbf16>, vector<8x512xf32> -> vector<8x512xf32>
    %64 = arith.addf %61, %63 : vector<8x512xf32>
    %65 = vector.extract_strided_slice %64 {offsets = [0, 0], sizes = [8, 128], strides = [1, 1]} : vector<8x512xf32> to vector<8x128xf32>
    %cst_37 = arith.constant 5.000000e-01 : f32
    %66 = vector.broadcast %cst_37 : f32 to vector<8x128xf32>
    %67 = arith.mulf %66, %65 : vector<8x128xf32>
    %68 = math.tanh %67 : vector<8x128xf32>
    %cst_38 = arith.constant 5.000000e-01 : f32
    %69 = vector.broadcast %cst_38 : f32 to vector<8x128xf32>
    %70 = arith.mulf %69, %68 : vector<8x128xf32>
    %cst_39 = arith.constant 5.000000e-01 : f32
    %71 = vector.broadcast %cst_39 : f32 to vector<8x128xf32>
    %72 = arith.addf %70, %71 : vector<8x128xf32>
    %73 = vector.extract_strided_slice %64 {offsets = [0, 128], sizes = [8, 128], strides = [1, 1]} : vector<8x512xf32> to vector<8x128xf32>
    %cst_40 = arith.constant 5.000000e-01 : f32
    %74 = vector.broadcast %cst_40 : f32 to vector<8x128xf32>
    %75 = arith.mulf %74, %73 : vector<8x128xf32>
    %76 = math.tanh %75 : vector<8x128xf32>
    %cst_41 = arith.constant 5.000000e-01 : f32
    %77 = vector.broadcast %cst_41 : f32 to vector<8x128xf32>
    %78 = arith.mulf %77, %76 : vector<8x128xf32>
    %cst_42 = arith.constant 5.000000e-01 : f32
    %79 = vector.broadcast %cst_42 : f32 to vector<8x128xf32>
    %80 = arith.addf %78, %79 : vector<8x128xf32>
    %81 = vector.extract_strided_slice %64 {offsets = [0, 256], sizes = [8, 128], strides = [1, 1]} : vector<8x512xf32> to vector<8x128xf32>
    %82 = math.tanh %81 : vector<8x128xf32>
    %83 = vector.extract_strided_slice %64 {offsets = [0, 384], sizes = [8, 128], strides = [1, 1]} : vector<8x512xf32> to vector<8x128xf32>
    %cst_43 = arith.constant 5.000000e-01 : f32
    %84 = vector.broadcast %cst_43 : f32 to vector<8x128xf32>
    %85 = arith.mulf %84, %83 : vector<8x128xf32>
    %86 = math.tanh %85 : vector<8x128xf32>
    %cst_44 = arith.constant 5.000000e-01 : f32
    %87 = vector.broadcast %cst_44 : f32 to vector<8x128xf32>
    %88 = arith.mulf %87, %86 : vector<8x128xf32>
    %cst_45 = arith.constant 5.000000e-01 : f32
    %89 = vector.broadcast %cst_45 : f32 to vector<8x128xf32>
    %90 = arith.addf %88, %89 : vector<8x128xf32>
    %91 = arith.mulf %80, %52 : vector<8x128xf32>
    %92 = arith.mulf %72, %82 : vector<8x128xf32>
    %93 = arith.addf %91, %92 : vector<8x128xf32>
    %94 = math.tanh %93 : vector<8x128xf32>
    %95 = arith.mulf %90, %94 : vector<8x128xf32>
    %96 = arith.truncf %95 : vector<8x128xf32> to vector<8x128xbf16>
    %c1_46 = arith.constant 1 : index
    %c0_47 = arith.constant 0 : index
    %c0_48 = arith.constant 0 : index
    %97 = vector.load %arg13[%c1_46, %c0_47, %c0_48] : memref<4x8x128xbf16, #tpu.memory_space<vmem>>, vector<1x8x128xbf16>
    %98 = vector.shape_cast %97 : vector<1x8x128xbf16> to vector<8x128xbf16>
    %99 = vector.shape_cast %96 : vector<8x128xbf16> to vector<1x8x128xbf16>
    tpu.vector_store %arg13[%c1_46, %c0_47, %c0_48], %99 {strides = array<i32>} : memref<4x8x128xbf16, #tpu.memory_space<vmem>>, vector<1x8x128xbf16>,
    %c2 = arith.constant 2 : index
    %c0_49 = arith.constant 0 : index
    %c0_50 = arith.constant 0 : index
    %100 = vector.load %arg12[%c2, %c0_49, %c0_50] : memref<4x8x512xbf16, #tpu.memory_space<vmem>>, vector<1x8x512xbf16>
    %101 = vector.shape_cast %100 : vector<1x8x512xbf16> to vector<8x512xbf16>
    %102 = arith.extf %101 : vector<8x512xbf16> to vector<8x512xf32>
    %103 = arith.truncf %95 : vector<8x128xf32> to vector<8x128xbf16>
    %cst_51 = arith.constant dense<0.000000e+00> : vector<8x512xf32>
    %104 = tpu.matmul %103, %13, %cst_51 {dimension_numbers = #tpu.dot_dimension_numbers<[1], [0], [0], [1], [0, 0, 1, 1], [], []>} : vector<8x128xbf16>, vector<128x512xbf16>, vector<8x512xf32> -> vector<8x512xf32>
    %105 = arith.addf %102, %104 : vector<8x512xf32>
    %106 = vector.extract_strided_slice %105 {offsets = [0, 0], sizes = [8, 128], strides = [1, 1]} : vector<8x512xf32> to vector<8x128xf32>
    %cst_52 = arith.constant 5.000000e-01 : f32
    %107 = vector.broadcast %cst_52 : f32 to vector<8x128xf32>
    %108 = arith.mulf %107, %106 : vector<8x128xf32>
    %109 = math.tanh %108 : vector<8x128xf32>
    %cst_53 = arith.constant 5.000000e-01 : f32
    %110 = vector.broadcast %cst_53 : f32 to vector<8x128xf32>
    %111 = arith.mulf %110, %109 : vector<8x128xf32>
    %cst_54 = arith.constant 5.000000e-01 : f32
    %112 = vector.broadcast %cst_54 : f32 to vector<8x128xf32>
    %113 = arith.addf %111, %112 : vector<8x128xf32>
    %114 = vector.extract_strided_slice %105 {offsets = [0, 128], sizes = [8, 128], strides = [1, 1]} : vector<8x512xf32> to vector<8x128xf32>
    %cst_55 = arith.constant 5.000000e-01 : f32
    %115 = vector.broadcast %cst_55 : f32 to vector<8x128xf32>
    %116 = arith.mulf %115, %114 : vector<8x128xf32>
    %117 = math.tanh %116 : vector<8x128xf32>
    %cst_56 = arith.constant 5.000000e-01 : f32
    %118 = vector.broadcast %cst_56 : f32 to vector<8x128xf32>
    %119 = arith.mulf %118, %117 : vector<8x128xf32>
    %cst_57 = arith.constant 5.000000e-01 : f32
    %120 = vector.broadcast %cst_57 : f32 to vector<8x128xf32>
    %121 = arith.addf %119, %120 : vector<8x128xf32>
    %122 = vector.extract_strided_slice %105 {offsets = [0, 256], sizes = [8, 128], strides = [1, 1]} : vector<8x512xf32> to vector<8x128xf32>
    %123 = math.tanh %122 : vector<8x128xf32>
    %124 = vector.extract_strided_slice %105 {offsets = [0, 384], sizes = [8, 128], strides = [1, 1]} : vector<8x512xf32> to vector<8x128xf32>
    %cst_58 = arith.constant 5.000000e-01 : f32
    %125 = vector.broadcast %cst_58 : f32 to vector<8x128xf32>
    %126 = arith.mulf %125, %124 : vector<8x128xf32>
    %127 = math.tanh %126 : vector<8x128xf32>
    %cst_59 = arith.constant 5.000000e-01 : f32
    %128 = vector.broadcast %cst_59 : f32 to vector<8x128xf32>
    %129 = arith.mulf %128, %127 : vector<8x128xf32>
    %cst_60 = arith.constant 5.000000e-01 : f32
    %130 = vector.broadcast %cst_60 : f32 to vector<8x128xf32>
    %131 = arith.addf %129, %130 : vector<8x128xf32>
    %132 = arith.mulf %121, %93 : vector<8x128xf32>
    %133 = arith.mulf %113, %123 : vector<8x128xf32>
    %134 = arith.addf %132, %133 : vector<8x128xf32>
    %135 = math.tanh %134 : vector<8x128xf32>
    %136 = arith.mulf %131, %135 : vector<8x128xf32>
    %137 = arith.truncf %136 : vector<8x128xf32> to vector<8x128xbf16>
    %c2_61 = arith.constant 2 : index
    %c0_62 = arith.constant 0 : index
    %c0_63 = arith.constant 0 : index
    %138 = vector.load %arg13[%c2_61, %c0_62, %c0_63] : memref<4x8x128xbf16, #tpu.memory_space<vmem>>, vector<1x8x128xbf16>
    %139 = vector.shape_cast %138 : vector<1x8x128xbf16> to vector<8x128xbf16>
    %140 = vector.shape_cast %137 : vector<8x128xbf16> to vector<1x8x128xbf16>
    tpu.vector_store %arg13[%c2_61, %c0_62, %c0_63], %140 {strides = array<i32>} : memref<4x8x128xbf16, #tpu.memory_space<vmem>>, vector<1x8x128xbf16>,
    %c3 = arith.constant 3 : index
    %c0_64 = arith.constant 0 : index
    %c0_65 = arith.constant 0 : index
    %141 = vector.load %arg12[%c3, %c0_64, %c0_65] : memref<4x8x512xbf16, #tpu.memory_space<vmem>>, vector<1x8x512xbf16>
    %142 = vector.shape_cast %141 : vector<1x8x512xbf16> to vector<8x512xbf16>
    %143 = arith.extf %142 : vector<8x512xbf16> to vector<8x512xf32>
    %144 = arith.truncf %136 : vector<8x128xf32> to vector<8x128xbf16>
    %cst_66 = arith.constant dense<0.000000e+00> : vector<8x512xf32>
    %145 = tpu.matmul %144, %13, %cst_66 {dimension_numbers = #tpu.dot_dimension_numbers<[1], [0], [0], [1], [0, 0, 1, 1], [], []>} : vector<8x128xbf16>, vector<128x512xbf16>, vector<8x512xf32> -> vector<8x512xf32>
    %146 = arith.addf %143, %145 : vector<8x512xf32>
    %147 = vector.extract_strided_slice %146 {offsets = [0, 0], sizes = [8, 128], strides = [1, 1]} : vector<8x512xf32> to vector<8x128xf32>
    %cst_67 = arith.constant 5.000000e-01 : f32
    %148 = vector.broadcast %cst_67 : f32 to vector<8x128xf32>
    %149 = arith.mulf %148, %147 : vector<8x128xf32>
    %150 = math.tanh %149 : vector<8x128xf32>
    %cst_68 = arith.constant 5.000000e-01 : f32
    %151 = vector.broadcast %cst_68 : f32 to vector<8x128xf32>
    %152 = arith.mulf %151, %150 : vector<8x128xf32>
    %cst_69 = arith.constant 5.000000e-01 : f32
    %153 = vector.broadcast %cst_69 : f32 to vector<8x128xf32>
    %154 = arith.addf %152, %153 : vector<8x128xf32>
    %155 = vector.extract_strided_slice %146 {offsets = [0, 128], sizes = [8, 128], strides = [1, 1]} : vector<8x512xf32> to vector<8x128xf32>
    %cst_70 = arith.constant 5.000000e-01 : f32
    %156 = vector.broadcast %cst_70 : f32 to vector<8x128xf32>
    %157 = arith.mulf %156, %155 : vector<8x128xf32>
    %158 = math.tanh %157 : vector<8x128xf32>
    %cst_71 = arith.constant 5.000000e-01 : f32
    %159 = vector.broadcast %cst_71 : f32 to vector<8x128xf32>
    %160 = arith.mulf %159, %158 : vector<8x128xf32>
    %cst_72 = arith.constant 5.000000e-01 : f32
    %161 = vector.broadcast %cst_72 : f32 to vector<8x128xf32>
    %162 = arith.addf %160, %161 : vector<8x128xf32>
    %163 = vector.extract_strided_slice %146 {offsets = [0, 256], sizes = [8, 128], strides = [1, 1]} : vector<8x512xf32> to vector<8x128xf32>
    %164 = math.tanh %163 : vector<8x128xf32>
    %165 = vector.extract_strided_slice %146 {offsets = [0, 384], sizes = [8, 128], strides = [1, 1]} : vector<8x512xf32> to vector<8x128xf32>
    %cst_73 = arith.constant 5.000000e-01 : f32
    %166 = vector.broadcast %cst_73 : f32 to vector<8x128xf32>
    %167 = arith.mulf %166, %165 : vector<8x128xf32>
    %168 = math.tanh %167 : vector<8x128xf32>
    %cst_74 = arith.constant 5.000000e-01 : f32
    %169 = vector.broadcast %cst_74 : f32 to vector<8x128xf32>
    %170 = arith.mulf %169, %168 : vector<8x128xf32>
    %cst_75 = arith.constant 5.000000e-01 : f32
    %171 = vector.broadcast %cst_75 : f32 to vector<8x128xf32>
    %172 = arith.addf %170, %171 : vector<8x128xf32>
    %173 = arith.mulf %162, %134 : vector<8x128xf32>
    %174 = arith.mulf %154, %164 : vector<8x128xf32>
    %175 = arith.addf %173, %174 : vector<8x128xf32>
    %176 = math.tanh %175 : vector<8x128xf32>
    %177 = arith.mulf %172, %176 : vector<8x128xf32>
    %178 = arith.truncf %177 : vector<8x128xf32> to vector<8x128xbf16>
    %c3_76 = arith.constant 3 : index
    %c0_77 = arith.constant 0 : index
    %c0_78 = arith.constant 0 : index
    %179 = vector.load %arg13[%c3_76, %c0_77, %c0_78] : memref<4x8x128xbf16, #tpu.memory_space<vmem>>, vector<1x8x128xbf16>
    %180 = vector.shape_cast %179 : vector<1x8x128xbf16> to vector<8x128xbf16>
    %181 = vector.shape_cast %178 : vector<8x128xbf16> to vector<1x8x128xbf16>
    tpu.vector_store %arg13[%c3_76, %c0_77, %c0_78], %181 {strides = array<i32>} : memref<4x8x128xbf16, #tpu.memory_space<vmem>>, vector<1x8x128xbf16>,
    %c0_79 = arith.constant 0 : index
    %c0_80 = arith.constant 0 : index
    %c0_81 = arith.constant 0 : index
    %182 = vector.load %arg14[%c0_79, %c0_80, %c0_81] : memref<2x8x128xf32, #tpu.memory_space<vmem>>, vector<1x8x128xf32>
    %183 = vector.shape_cast %182 : vector<1x8x128xf32> to vector<8x128xf32>
    %184 = vector.shape_cast %177 : vector<8x128xf32> to vector<1x8x128xf32>
    tpu.vector_store %arg14[%c0_79, %c0_80, %c0_81], %184 {strides = array<i32>} : memref<2x8x128xf32, #tpu.memory_space<vmem>>, vector<1x8x128xf32>,
    %c0_82 = arith.constant 0 : index
    %c0_83 = arith.constant 0 : index
    %c0_84 = arith.constant 0 : index
    %185 = vector.load %arg15[%c0_82, %c0_83, %c0_84] : memref<2x8x128xf32, #tpu.memory_space<vmem>>, vector<1x8x128xf32>
    %186 = vector.shape_cast %185 : vector<1x8x128xf32> to vector<8x128xf32>
    %187 = vector.shape_cast %175 : vector<8x128xf32> to vector<1x8x128xf32>
    tpu.vector_store %arg15[%c0_82, %c0_83, %c0_84], %187 {strides = array<i32>} : memref<2x8x128xf32, #tpu.memory_space<vmem>>, vector<1x8x128xf32>,
    %c0_85 = arith.constant 0 : index
    %c0_86 = arith.constant 0 : index
    %c0_87 = arith.constant 0 : index
    %188 = vector.load %arg13[%c0_85, %c0_86, %c0_87] : memref<4x8x128xbf16, #tpu.memory_space<vmem>>, vector<4x8x128xbf16>
    %189 = vector.shape_cast %188 : vector<4x8x128xbf16> to vector<32x128xbf16>
    %c0_88 = arith.constant 0 : index
    %c0_89 = arith.constant 0 : index
    %190 = vector.load %arg6[%c0_88, %c0_89] : memref<128x512xbf16, #tpu.memory_space<vmem>>, vector<128x512xbf16>
    %cst_90 = arith.constant dense<0.000000e+00> : vector<32x512xf32>
    %191 = tpu.matmul %189, %190, %cst_90 {dimension_numbers = #tpu.dot_dimension_numbers<[1], [0], [0], [1], [0, 0, 1, 1], [], []>} : vector<32x128xbf16>, vector<128x512xbf16>, vector<32x512xf32> -> vector<32x512xf32>
    %c0_91 = arith.constant 0 : index
    %c0_92 = arith.constant 0 : index
    %192 = vector.load %arg8[%c0_91, %c0_92] : memref<1x512xf32, #tpu.memory_space<vmem>>, vector<1x512xf32>
    %193 = vector.broadcast %192 : vector<1x512xf32> to vector<32x512xf32>
    %194 = arith.addf %191, %193 : vector<32x512xf32>
    %195 = vector.shape_cast %194 : vector<32x512xf32> to vector<4x8x512xf32>
    %196 = arith.truncf %195 : vector<4x8x512xf32> to vector<4x8x512xbf16>
    %c0_93 = arith.constant 0 : index
    %c0_94 = arith.constant 0 : index
    %c0_95 = arith.constant 0 : index
    %197 = vector.load %arg12[%c0_93, %c0_94, %c0_95] : memref<4x8x512xbf16, #tpu.memory_space<vmem>>, vector<4x8x512xbf16>
    tpu.vector_store %arg12[%c0_93, %c0_94, %c0_95], %196 {strides = array<i32>} : memref<4x8x512xbf16, #tpu.memory_space<vmem>>, vector<4x8x512xbf16>,
    %c0_96 = arith.constant 0 : index
    %c0_97 = arith.constant 0 : index
    %198 = vector.load %arg7[%c0_96, %c0_97] : memref<128x512xbf16, #tpu.memory_space<vmem>>, vector<128x512xbf16>
    %c1_98 = arith.constant 1 : index
    %c0_99 = arith.constant 0 : index
    %c0_100 = arith.constant 0 : index
    %199 = vector.load %arg14[%c1_98, %c0_99, %c0_100] : memref<2x8x128xf32, #tpu.memory_space<vmem>>, vector<1x8x128xf32>
    %200 = vector.shape_cast %199 : vector<1x8x128xf32> to vector<8x128xf32>
    %c1_101 = arith.constant 1 : index
    %c0_102 = arith.constant 0 : index
    %c0_103 = arith.constant 0 : index
    %201 = vector.load %arg15[%c1_101, %c0_102, %c0_103] : memref<2x8x128xf32, #tpu.memory_space<vmem>>, vector<1x8x128xf32>
    %202 = vector.shape_cast %201 : vector<1x8x128xf32> to vector<8x128xf32>
    %c0_104 = arith.constant 0 : index
    %c0_105 = arith.constant 0 : index
    %c0_106 = arith.constant 0 : index
    %203 = vector.load %arg12[%c0_104, %c0_105, %c0_106] : memref<4x8x512xbf16, #tpu.memory_space<vmem>>, vector<1x8x512xbf16>
    %204 = vector.shape_cast %203 : vector<1x8x512xbf16> to vector<8x512xbf16>
    %205 = arith.extf %204 : vector<8x512xbf16> to vector<8x512xf32>
    %206 = arith.truncf %200 : vector<8x128xf32> to vector<8x128xbf16>
    %cst_107 = arith.constant dense<0.000000e+00> : vector<8x512xf32>
    %207 = tpu.matmul %206, %198, %cst_107 {dimension_numbers = #tpu.dot_dimension_numbers<[1], [0], [0], [1], [0, 0, 1, 1], [], []>} : vector<8x128xbf16>, vector<128x512xbf16>, vector<8x512xf32> -> vector<8x512xf32>
    %208 = arith.addf %205, %207 : vector<8x512xf32>
    %209 = vector.extract_strided_slice %208 {offsets = [0, 0], sizes = [8, 128], strides = [1, 1]} : vector<8x512xf32> to vector<8x128xf32>
    %cst_108 = arith.constant 5.000000e-01 : f32
    %210 = vector.broadcast %cst_108 : f32 to vector<8x128xf32>
    %211 = arith.mulf %210, %209 : vector<8x128xf32>
    %212 = math.tanh %211 : vector<8x128xf32>
    %cst_109 = arith.constant 5.000000e-01 : f32
    %213 = vector.broadcast %cst_109 : f32 to vector<8x128xf32>
    %214 = arith.mulf %213, %212 : vector<8x128xf32>
    %cst_110 = arith.constant 5.000000e-01 : f32
    %215 = vector.broadcast %cst_110 : f32 to vector<8x128xf32>
    %216 = arith.addf %214, %215 : vector<8x128xf32>
    %217 = vector.extract_strided_slice %208 {offsets = [0, 128], sizes = [8, 128], strides = [1, 1]} : vector<8x512xf32> to vector<8x128xf32>
    %cst_111 = arith.constant 5.000000e-01 : f32
    %218 = vector.broadcast %cst_111 : f32 to vector<8x128xf32>
    %219 = arith.mulf %218, %217 : vector<8x128xf32>
    %220 = math.tanh %219 : vector<8x128xf32>
    %cst_112 = arith.constant 5.000000e-01 : f32
    %221 = vector.broadcast %cst_112 : f32 to vector<8x128xf32>
    %222 = arith.mulf %221, %220 : vector<8x128xf32>
    %cst_113 = arith.constant 5.000000e-01 : f32
    %223 = vector.broadcast %cst_113 : f32 to vector<8x128xf32>
    %224 = arith.addf %222, %223 : vector<8x128xf32>
    %225 = vector.extract_strided_slice %208 {offsets = [0, 256], sizes = [8, 128], strides = [1, 1]} : vector<8x512xf32> to vector<8x128xf32>
    %226 = math.tanh %225 : vector<8x128xf32>
    %227 = vector.extract_strided_slice %208 {offsets = [0, 384], sizes = [8, 128], strides = [1, 1]} : vector<8x512xf32> to vector<8x128xf32>
    %cst_114 = arith.constant 5.000000e-01 : f32
    %228 = vector.broadcast %cst_114 : f32 to vector<8x128xf32>
    %229 = arith.mulf %228, %227 : vector<8x128xf32>
    %230 = math.tanh %229 : vector<8x128xf32>
    %cst_115 = arith.constant 5.000000e-01 : f32
    %231 = vector.broadcast %cst_115 : f32 to vector<8x128xf32>
    %232 = arith.mulf %231, %230 : vector<8x128xf32>
    %cst_116 = arith.constant 5.000000e-01 : f32
    %233 = vector.broadcast %cst_116 : f32 to vector<8x128xf32>
    %234 = arith.addf %232, %233 : vector<8x128xf32>
    %235 = arith.mulf %224, %202 : vector<8x128xf32>
    %236 = arith.mulf %216, %226 : vector<8x128xf32>
    %237 = arith.addf %235, %236 : vector<8x128xf32>
    %238 = math.tanh %237 : vector<8x128xf32>
    %239 = arith.mulf %234, %238 : vector<8x128xf32>
    %c1_117 = arith.constant 1 : index
    %c0_118 = arith.constant 0 : index
    %c0_119 = arith.constant 0 : index
    %240 = vector.load %arg12[%c1_117, %c0_118, %c0_119] : memref<4x8x512xbf16, #tpu.memory_space<vmem>>, vector<1x8x512xbf16>
    %241 = vector.shape_cast %240 : vector<1x8x512xbf16> to vector<8x512xbf16>
    %242 = arith.extf %241 : vector<8x512xbf16> to vector<8x512xf32>
    %243 = arith.truncf %239 : vector<8x128xf32> to vector<8x128xbf16>
    %cst_120 = arith.constant dense<0.000000e+00> : vector<8x512xf32>
    %244 = tpu.matmul %243, %198, %cst_120 {dimension_numbers = #tpu.dot_dimension_numbers<[1], [0], [0], [1], [0, 0, 1, 1], [], []>} : vector<8x128xbf16>, vector<128x512xbf16>, vector<8x512xf32> -> vector<8x512xf32>
    %245 = arith.addf %242, %244 : vector<8x512xf32>
    %246 = vector.extract_strided_slice %245 {offsets = [0, 0], sizes = [8, 128], strides = [1, 1]} : vector<8x512xf32> to vector<8x128xf32>
    %cst_121 = arith.constant 5.000000e-01 : f32
    %247 = vector.broadcast %cst_121 : f32 to vector<8x128xf32>
    %248 = arith.mulf %247, %246 : vector<8x128xf32>
    %249 = math.tanh %248 : vector<8x128xf32>
    %cst_122 = arith.constant 5.000000e-01 : f32
    %250 = vector.broadcast %cst_122 : f32 to vector<8x128xf32>
    %251 = arith.mulf %250, %249 : vector<8x128xf32>
    %cst_123 = arith.constant 5.000000e-01 : f32
    %252 = vector.broadcast %cst_123 : f32 to vector<8x128xf32>
    %253 = arith.addf %251, %252 : vector<8x128xf32>
    %254 = vector.extract_strided_slice %245 {offsets = [0, 128], sizes = [8, 128], strides = [1, 1]} : vector<8x512xf32> to vector<8x128xf32>
    %cst_124 = arith.constant 5.000000e-01 : f32
    %255 = vector.broadcast %cst_124 : f32 to vector<8x128xf32>
    %256 = arith.mulf %255, %254 : vector<8x128xf32>
    %257 = math.tanh %256 : vector<8x128xf32>
    %cst_125 = arith.constant 5.000000e-01 : f32
    %258 = vector.broadcast %cst_125 : f32 to vector<8x128xf32>
    %259 = arith.mulf %258, %257 : vector<8x128xf32>
    %cst_126 = arith.constant 5.000000e-01 : f32
    %260 = vector.broadcast %cst_126 : f32 to vector<8x128xf32>
    %261 = arith.addf %259, %260 : vector<8x128xf32>
    %262 = vector.extract_strided_slice %245 {offsets = [0, 256], sizes = [8, 128], strides = [1, 1]} : vector<8x512xf32> to vector<8x128xf32>
    %263 = math.tanh %262 : vector<8x128xf32>
    %264 = vector.extract_strided_slice %245 {offsets = [0, 384], sizes = [8, 128], strides = [1, 1]} : vector<8x512xf32> to vector<8x128xf32>
    %cst_127 = arith.constant 5.000000e-01 : f32
    %265 = vector.broadcast %cst_127 : f32 to vector<8x128xf32>
    %266 = arith.mulf %265, %264 : vector<8x128xf32>
    %267 = math.tanh %266 : vector<8x128xf32>
    %cst_128 = arith.constant 5.000000e-01 : f32
    %268 = vector.broadcast %cst_128 : f32 to vector<8x128xf32>
    %269 = arith.mulf %268, %267 : vector<8x128xf32>
    %cst_129 = arith.constant 5.000000e-01 : f32
    %270 = vector.broadcast %cst_129 : f32 to vector<8x128xf32>
    %271 = arith.addf %269, %270 : vector<8x128xf32>
    %272 = arith.mulf %261, %237 : vector<8x128xf32>
    %273 = arith.mulf %253, %263 : vector<8x128xf32>
    %274 = arith.addf %272, %273 : vector<8x128xf32>
    %275 = math.tanh %274 : vector<8x128xf32>
    %276 = arith.mulf %271, %275 : vector<8x128xf32>
    %c2_130 = arith.constant 2 : index
    %c0_131 = arith.constant 0 : index
    %c0_132 = arith.constant 0 : index
    %277 = vector.load %arg12[%c2_130, %c0_131, %c0_132] : memref<4x8x512xbf16, #tpu.memory_space<vmem>>, vector<1x8x512xbf16>
    %278 = vector.shape_cast %277 : vector<1x8x512xbf16> to vector<8x512xbf16>
    %279 = arith.extf %278 : vector<8x512xbf16> to vector<8x512xf32>
    %280 = arith.truncf %276 : vector<8x128xf32> to vector<8x128xbf16>
    %cst_133 = arith.constant dense<0.000000e+00> : vector<8x512xf32>
    %281 = tpu.matmul %280, %198, %cst_133 {dimension_numbers = #tpu.dot_dimension_numbers<[1], [0], [0], [1], [0, 0, 1, 1], [], []>} : vector<8x128xbf16>, vector<128x512xbf16>, vector<8x512xf32> -> vector<8x512xf32>
    %282 = arith.addf %279, %281 : vector<8x512xf32>
    %283 = vector.extract_strided_slice %282 {offsets = [0, 0], sizes = [8, 128], strides = [1, 1]} : vector<8x512xf32> to vector<8x128xf32>
    %cst_134 = arith.constant 5.000000e-01 : f32
    %284 = vector.broadcast %cst_134 : f32 to vector<8x128xf32>
    %285 = arith.mulf %284, %283 : vector<8x128xf32>
    %286 = math.tanh %285 : vector<8x128xf32>
    %cst_135 = arith.constant 5.000000e-01 : f32
    %287 = vector.broadcast %cst_135 : f32 to vector<8x128xf32>
    %288 = arith.mulf %287, %286 : vector<8x128xf32>
    %cst_136 = arith.constant 5.000000e-01 : f32
    %289 = vector.broadcast %cst_136 : f32 to vector<8x128xf32>
    %290 = arith.addf %288, %289 : vector<8x128xf32>
    %291 = vector.extract_strided_slice %282 {offsets = [0, 128], sizes = [8, 128], strides = [1, 1]} : vector<8x512xf32> to vector<8x128xf32>
    %cst_137 = arith.constant 5.000000e-01 : f32
    %292 = vector.broadcast %cst_137 : f32 to vector<8x128xf32>
    %293 = arith.mulf %292, %291 : vector<8x128xf32>
    %294 = math.tanh %293 : vector<8x128xf32>
    %cst_138 = arith.constant 5.000000e-01 : f32
    %295 = vector.broadcast %cst_138 : f32 to vector<8x128xf32>
    %296 = arith.mulf %295, %294 : vector<8x128xf32>
    %cst_139 = arith.constant 5.000000e-01 : f32
    %297 = vector.broadcast %cst_139 : f32 to vector<8x128xf32>
    %298 = arith.addf %296, %297 : vector<8x128xf32>
    %299 = vector.extract_strided_slice %282 {offsets = [0, 256], sizes = [8, 128], strides = [1, 1]} : vector<8x512xf32> to vector<8x128xf32>
    %300 = math.tanh %299 : vector<8x128xf32>
    %301 = vector.extract_strided_slice %282 {offsets = [0, 384], sizes = [8, 128], strides = [1, 1]} : vector<8x512xf32> to vector<8x128xf32>
    %cst_140 = arith.constant 5.000000e-01 : f32
    %302 = vector.broadcast %cst_140 : f32 to vector<8x128xf32>
    %303 = arith.mulf %302, %301 : vector<8x128xf32>
    %304 = math.tanh %303 : vector<8x128xf32>
    %cst_141 = arith.constant 5.000000e-01 : f32
    %305 = vector.broadcast %cst_141 : f32 to vector<8x128xf32>
    %306 = arith.mulf %305, %304 : vector<8x128xf32>
    %cst_142 = arith.constant 5.000000e-01 : f32
    %307 = vector.broadcast %cst_142 : f32 to vector<8x128xf32>
    %308 = arith.addf %306, %307 : vector<8x128xf32>
    %309 = arith.mulf %298, %274 : vector<8x128xf32>
    %310 = arith.mulf %290, %300 : vector<8x128xf32>
    %311 = arith.addf %309, %310 : vector<8x128xf32>
    %312 = math.tanh %311 : vector<8x128xf32>
    %313 = arith.mulf %308, %312 : vector<8x128xf32>
    %c3_143 = arith.constant 3 : index
    %c0_144 = arith.constant 0 : index
    %c0_145 = arith.constant 0 : index
    %314 = vector.load %arg12[%c3_143, %c0_144, %c0_145] : memref<4x8x512xbf16, #tpu.memory_space<vmem>>, vector<1x8x512xbf16>
    %315 = vector.shape_cast %314 : vector<1x8x512xbf16> to vector<8x512xbf16>
    %316 = arith.extf %315 : vector<8x512xbf16> to vector<8x512xf32>
    %317 = arith.truncf %313 : vector<8x128xf32> to vector<8x128xbf16>
    %cst_146 = arith.constant dense<0.000000e+00> : vector<8x512xf32>
    %318 = tpu.matmul %317, %198, %cst_146 {dimension_numbers = #tpu.dot_dimension_numbers<[1], [0], [0], [1], [0, 0, 1, 1], [], []>} : vector<8x128xbf16>, vector<128x512xbf16>, vector<8x512xf32> -> vector<8x512xf32>
    %319 = arith.addf %316, %318 : vector<8x512xf32>
    %320 = vector.extract_strided_slice %319 {offsets = [0, 0], sizes = [8, 128], strides = [1, 1]} : vector<8x512xf32> to vector<8x128xf32>
    %cst_147 = arith.constant 5.000000e-01 : f32
    %321 = vector.broadcast %cst_147 : f32 to vector<8x128xf32>
    %322 = arith.mulf %321, %320 : vector<8x128xf32>
    %323 = math.tanh %322 : vector<8x128xf32>
    %cst_148 = arith.constant 5.000000e-01 : f32
    %324 = vector.broadcast %cst_148 : f32 to vector<8x128xf32>
    %325 = arith.mulf %324, %323 : vector<8x128xf32>
    %cst_149 = arith.constant 5.000000e-01 : f32
    %326 = vector.broadcast %cst_149 : f32 to vector<8x128xf32>
    %327 = arith.addf %325, %326 : vector<8x128xf32>
    %328 = vector.extract_strided_slice %319 {offsets = [0, 128], sizes = [8, 128], strides = [1, 1]} : vector<8x512xf32> to vector<8x128xf32>
    %cst_150 = arith.constant 5.000000e-01 : f32
    %329 = vector.broadcast %cst_150 : f32 to vector<8x128xf32>
    %330 = arith.mulf %329, %328 : vector<8x128xf32>
    %331 = math.tanh %330 : vector<8x128xf32>
    %cst_151 = arith.constant 5.000000e-01 : f32
    %332 = vector.broadcast %cst_151 : f32 to vector<8x128xf32>
    %333 = arith.mulf %332, %331 : vector<8x128xf32>
    %cst_152 = arith.constant 5.000000e-01 : f32
    %334 = vector.broadcast %cst_152 : f32 to vector<8x128xf32>
    %335 = arith.addf %333, %334 : vector<8x128xf32>
    %336 = vector.extract_strided_slice %319 {offsets = [0, 256], sizes = [8, 128], strides = [1, 1]} : vector<8x512xf32> to vector<8x128xf32>
    %337 = math.tanh %336 : vector<8x128xf32>
    %338 = vector.extract_strided_slice %319 {offsets = [0, 384], sizes = [8, 128], strides = [1, 1]} : vector<8x512xf32> to vector<8x128xf32>
    %cst_153 = arith.constant 5.000000e-01 : f32
    %339 = vector.broadcast %cst_153 : f32 to vector<8x128xf32>
    %340 = arith.mulf %339, %338 : vector<8x128xf32>
    %341 = math.tanh %340 : vector<8x128xf32>
    %cst_154 = arith.constant 5.000000e-01 : f32
    %342 = vector.broadcast %cst_154 : f32 to vector<8x128xf32>
    %343 = arith.mulf %342, %341 : vector<8x128xf32>
    %cst_155 = arith.constant 5.000000e-01 : f32
    %344 = vector.broadcast %cst_155 : f32 to vector<8x128xf32>
    %345 = arith.addf %343, %344 : vector<8x128xf32>
    %346 = arith.mulf %335, %311 : vector<8x128xf32>
    %347 = arith.mulf %327, %337 : vector<8x128xf32>
    %348 = arith.addf %346, %347 : vector<8x128xf32>
    %349 = math.tanh %348 : vector<8x128xf32>
    %350 = arith.mulf %345, %349 : vector<8x128xf32>
    %c1_156 = arith.constant 1 : index
    %c0_157 = arith.constant 0 : index
    %c0_158 = arith.constant 0 : index
    %351 = vector.load %arg14[%c1_156, %c0_157, %c0_158] : memref<2x8x128xf32, #tpu.memory_space<vmem>>, vector<1x8x128xf32>
    %352 = vector.shape_cast %351 : vector<1x8x128xf32> to vector<8x128xf32>
    %353 = vector.shape_cast %350 : vector<8x128xf32> to vector<1x8x128xf32>
    tpu.vector_store %arg14[%c1_156, %c0_157, %c0_158], %353 {strides = array<i32>} : memref<2x8x128xf32, #tpu.memory_space<vmem>>, vector<1x8x128xf32>,
    %c1_159 = arith.constant 1 : index
    %c0_160 = arith.constant 0 : index
    %c0_161 = arith.constant 0 : index
    %354 = vector.load %arg15[%c1_159, %c0_160, %c0_161] : memref<2x8x128xf32, #tpu.memory_space<vmem>>, vector<1x8x128xf32>
    %355 = vector.shape_cast %354 : vector<1x8x128xf32> to vector<8x128xf32>
    %356 = vector.shape_cast %348 : vector<8x128xf32> to vector<1x8x128xf32>
    tpu.vector_store %arg15[%c1_159, %c0_160, %c0_161], %356 {strides = array<i32>} : memref<2x8x128xf32, #tpu.memory_space<vmem>>, vector<1x8x128xf32>,
    %c1_i32 = arith.constant 1 : i32
    %357 = arith.cmpi eq, %arg1, %c1_i32 : i32
    %358 = arith.extui %357 : i1 to i32
    %c0_i32_162 = arith.constant 0 : i32
    %359 = arith.cmpi ne, %358, %c0_i32_162 : i32
    scf.if %359 {
      %360 = arith.truncf %350 : vector<8x128xf32> to vector<8x128xbf16>
      %c0_163 = arith.constant 0 : index
      %c0_164 = arith.constant 0 : index
      %361 = vector.load %arg9[%c0_163, %c0_164] : memref<128x128xbf16, #tpu.memory_space<vmem>>, vector<128x128xbf16>
      %cst_165 = arith.constant dense<0.000000e+00> : vector<8x128xf32>
      %362 = tpu.matmul %360, %361, %cst_165 {dimension_numbers = #tpu.dot_dimension_numbers<[1], [0], [0], [1], [0, 0, 1, 1], [], []>} : vector<8x128xbf16>, vector<128x128xbf16>, vector<8x128xf32> -> vector<8x128xf32>
      %c0_166 = arith.constant 0 : index
      %c0_167 = arith.constant 0 : index
      %363 = vector.load %arg10[%c0_166, %c0_167] : memref<1x128xf32, #tpu.memory_space<vmem>>, vector<1x128xf32>
      %364 = vector.broadcast %363 : vector<1x128xf32> to vector<8x128xf32>
      %365 = arith.addf %362, %364 : vector<8x128xf32>
      %c0_168 = arith.constant 0 : index
      %c0_169 = arith.constant 0 : index
      %366 = vector.load %arg11[%c0_168, %c0_169] : memref<8x128xf32, #tpu.memory_space<vmem>>, vector<8x128xf32>
      tpu.vector_store %arg11[%c0_168, %c0_169], %365 {strides = array<i32>} : memref<8x128xf32, #tpu.memory_space<vmem>>, vector<8x128xf32>,
    } else {
    }
    return
  }
  func.func @transform_0(%arg0: i32, %arg1: i32) -> (i32, i32, i32) {
    %c0_i32 = arith.constant 0 : i32
    %c0_i32_0 = arith.constant 0 : i32
    return %arg1, %arg0, %c0_i32 : i32, i32, i32
  }
  func.func @transform_1(%arg0: i32, %arg1: i32) -> (i32, i32) {
    %c0_i32 = arith.constant 0 : i32
    %c0_i32_0 = arith.constant 0 : i32
    %c0_i32_1 = arith.constant 0 : i32
    return %c0_i32, %c0_i32_0 : i32, i32
  }
  func.func @transform_2(%arg0: i32, %arg1: i32) -> (i32, i32) {
    %c0_i32 = arith.constant 0 : i32
    %c0_i32_0 = arith.constant 0 : i32
    %c0_i32_1 = arith.constant 0 : i32
    return %c0_i32, %c0_i32_0 : i32, i32
  }
  func.func @transform_3(%arg0: i32, %arg1: i32) -> (i32, i32) {
    %c0_i32 = arith.constant 0 : i32
    %c0_i32_0 = arith.constant 0 : i32
    %c0_i32_1 = arith.constant 0 : i32
    return %c0_i32, %c0_i32_0 : i32, i32
  }
  func.func @transform_4(%arg0: i32, %arg1: i32) -> (i32, i32) {
    %c0_i32 = arith.constant 0 : i32
    %c0_i32_0 = arith.constant 0 : i32
    %c0_i32_1 = arith.constant 0 : i32
    return %c0_i32, %c0_i32_0 : i32, i32
  }
  func.func @transform_5(%arg0: i32, %arg1: i32) -> (i32, i32) {
    %c0_i32 = arith.constant 0 : i32
    %c0_i32_0 = arith.constant 0 : i32
    %c0_i32_1 = arith.constant 0 : i32
    return %c0_i32, %c0_i32_0 : i32, i32
  }
  func.func @transform_6(%arg0: i32, %arg1: i32) -> (i32, i32) {
    %c0_i32 = arith.constant 0 : i32
    %c0_i32_0 = arith.constant 0 : i32
    %c0_i32_1 = arith.constant 0 : i32
    return %c0_i32, %c0_i32_0 : i32, i32
  }
  func.func @transform_7(%arg0: i32, %arg1: i32) -> (i32, i32) {
    %c0_i32 = arith.constant 0 : i32
    %c0_i32_0 = arith.constant 0 : i32
    %c0_i32_1 = arith.constant 0 : i32
    return %c0_i32, %c0_i32_0 : i32, i32
  }
  func.func @transform_8(%arg0: i32, %arg1: i32) -> (i32, i32) {
    %c0_i32 = arith.constant 0 : i32
    %c0_i32_0 = arith.constant 0 : i32
    %c0_i32_1 = arith.constant 0 : i32
    return %c0_i32, %c0_i32_0 : i32, i32
  }
  func.func @transform_9(%arg0: i32, %arg1: i32) -> (i32, i32) {
    %c0_i32 = arith.constant 0 : i32
    %c0_i32_0 = arith.constant 0 : i32
    return %arg0, %c0_i32 : i32, i32
  }
}

</mosaic_0001>

<bundles_post_ra>
// kernel: tpu_custom_call.1
= control target key start
LH: loop header
LB: loop body
LE: loop exit
PB: predicated region body
PF: predicated region fallthrough
CT: control target
= control target key end

     0   :  { %s3690_s0 = inlined_call_operand.vmem [shape: bf16[8,8,4], index: 0, kind: input, shape index: {}]   ;;  %s3691_s1 = inlined_call_operand.vmem [shape: bf16[4,512], index: 1, kind: input, shape index: {}]   ;;  %s3692_s2 = inlined_call_operand.hbm [shape: bf16[128,512], index: 2, kind: input, shape index: {}]   ;;  %s3693_s3 = inlined_call_operand.vmem [shape: f32[1,512], index: 3, kind: input, shape index: {}]   ;;  %s3694_s4 = inlined_call_operand.hbm [shape: bf16[128,512], index: 4, kind: input, shape index: {}]   ;;  %s3695_s5 = inlined_call_operand.hbm [shape: bf16[128,512], index: 5, kind: input, shape index: {}]   ;;  %s3696_s6 = inlined_call_operand.vmem [shape: f32[1,512], index: 6, kind: input, shape index: {}]   ;;  %s3697_s7 = inlined_call_operand.hbm [shape: bf16[128,128], index: 7, kind: input, shape index: {}]   ;;  %s3698_s8 = inlined_call_operand.vmem [shape: f32[1,128], index: 8, kind: input, shape index: {}]   ;;  %s3699_s9 = inlined_call_operand.hbm [shape: f32[8,128], index: 9, kind: output, shape index: {}]  }
   0x1   :  { %3704 = sst [smem:[#allocation22_spill]] %s3692_s2 }
   0x2   :  { %3705 = sst [smem:[#allocation23_spill]] %s3694_s4 }
   0x3   :  { %14 = vsyncpa [#allocation7], 0 }
   0x4   :  { %15 = vsyncpa [#allocation10], 0 }
   0x5   :  { %16 = vsyncpa [#allocation13], 0 }
   0x6   :  { %17 = vsyncpa [#allocation8], 0  ;;  %s3093_s30 = smov 0   ;;  %s3095_s10 = smov 0  }
   0x7   :  { %s3097_s11 = smov 0  }
   0x8 LB: > { %s3700_s12 = sadd.s32 4294967295, %s3031_s11   ;;  %p2120_p0 = scmp.ge.s32.totalorder %s3031_s11, 1  ;;  %s3031_s11 = sphi %s3097_s11, %s23_s11   ;;  %s3027_s10 = sphi %s3095_s10, %s3719_s10   ;;  %s3023_s30 = sphi %s3093_s30, %s3718_s30  }
   0x9   : > { %p262_p1 = scmp.lt.s32.totalorder %s3031_s11, 3  ;;  %p3113_p2 = scmp.eq.s32.totalorder %s3700_s12, 0 }
   0xa   : > { %s3707_s4 = sld [smem:[#allocation23_spill]]  ;;  %s3033_s18 = smov [#allocation9]  }
   0xb   : > { %p3120_p3 = pnand %p2120_p0, %p262_p1  ;;  %s295_s19 = sshll.u32 %s3033_s18, 4  ;;  %s296_s19 = int_to_ptr.vmem [resolvable:$true] %s295_s19 }
   0xc   : > { %s32_s21 = sadd.s32 1, %s3027_s10  ;;  %s3034_s22 = smov 256  }
   0xd   : > { %p2707_p4 = pneg %p3120_p3  ;;  %p33_p6 = scmp.ge.s32.totalorder %s32_s21, 2 }
   0xe   : > { %s3035_s23 = smov 16   ;;  %s3710_s2 = sld [smem:[#allocation22_spill]] }
   0xf   : > { %p3128_p5 = pnand %p3113_p2, %p2707_p4  ;;  %s3721_s21 = smov (%p33_p6, %s32_s21), 0 }
  0x10   : > { %s293_s16 = sshll.u32 %s3707_s4, 4  ;;  %s3036_s27 = smov [#allocation6]   ;;  %s294_s16 = int_to_ptr.hbm [resolvable:$true] %s293_s16 }
  0x11   : > { %2713 = dma.hbm_to_vmem [thread:$0]  (!%p3128_p5), %s294_s16, 4096, %s296_s19, [#allocation10], %s3034_s22, %s3034_s22, %s3035_s23  }
  0x12   : > { %s278_s28 = sshll.u32 %s3036_s27, 4  ;;  %s307_s15 = sshll.u32 %s3695_s5, 4  ;;  %s279_s28 = int_to_ptr.vmem [resolvable:$true] %s278_s28  ;;  %s308_s15 = int_to_ptr.hbm [resolvable:$true] %s307_s15 }
  0x13   : > { %s3037_s18 = smov [#allocation11]   ;;  %s324_s4 = sshll.u32 %s3697_s7, 4  ;;  %s325_s4 = int_to_ptr.hbm [resolvable:$true] %s324_s4 }
  0x14   : > { %s276_s26 = sshll.u32 %s3710_s2, 4  ;;  %s309_s16 = sshll.u32 %s3037_s18, 4  ;;  %s277_s26 = int_to_ptr.hbm [resolvable:$true] %s276_s26  ;;  %s310_s16 = int_to_ptr.vmem [resolvable:$true] %s309_s16 }
  0x15   : > { %2710 = dma.hbm_to_vmem [thread:$0]  (!%p3128_p5), %s277_s26, 4096, %s279_s28, [#allocation7], %s3034_s22, %s3034_s22, %s3035_s23  }
  0x16   : > { %2716 = dma.hbm_to_vmem [thread:$0]  (!%p3128_p5), %s308_s15, 4096, %s310_s16, [#allocation10], %s3034_s22, %s3034_s22, %s3035_s23  }
  0x17   : > { %s3038_s24 = smov [#allocation12]   ;;  %s3039_s27 = smov 64  }
  0x18   : > { %s326_s25 = sshll.u32 %s3038_s24, 4  ;;  %s3040_s2 = smov 4   ;;  %s327_s25 = int_to_ptr.vmem [resolvable:$true] %s326_s25 }
  0x19   : > { %2719 = dma.hbm_to_vmem [thread:$0]  (!%p3128_p5), %s325_s4, 1024, %s327_s25, [#allocation13], %s3039_s27, %s3039_s27, %s3040_s2  }
  0x1a   : > { %357 = sbr.rel (%p3120_p3) target bundleno = 1545 (0x609), region = 56 }
  0x1f   : > { %3006 = dma.done.wait (%p3113_p2), [#allocation7], 4096  }
  0x20   : > { %3008 = vsyncadd (%p3113_p2), [#allocation7], 4294963200 }
  0x21   : > { %3010 = dma.done.wait (%p3113_p2), [#allocation10], 8192  }
  0x22   : > { %3012 = vsyncadd (%p3113_p2), [#allocation10], 4294959104 }
  0x23   : > { %3014 = dma.done.wait (%p3113_p2), [#allocation13], 1024  }
  0x24   : > { %3016 = vsyncadd (%p3113_p2), [#allocation13], 4294966272  ;;  %s2131_s2 = sshll.u32 %s3023_s30, 2  ;;  %p2133_p8 = scmp.ne.s32.totalorder %s3023_s30, 0 }
  0x25   : > { %p408_p7 = scmp.lt.s32.totalorder %s2131_s2, 7 }
  0x26   : > { %420 = sbr.rel (%p2133_p8) target bundleno = 48 (0x30), region = 76 }
  0x27   : > { %s3723_s2 = smov (!%p408_p7, %s2131_s2), 7 }
  0x28   : > { %s2132_s4 = sshll.u32 %s3723_s2, 2 }
  0x29   : > { %s3170_s20 = scalar_lea.vmem %s3690_s0, %s2132_s4 }
  0x2b   : > { %v3041_v0 = vmov 0.0  }
  0x2c   : > { %421 = vst [vmem:[#allocation4] sm:$0xff] %v3041_v0 }
  0x2d   : > { %422 = vst [vmem:[#allocation4 + $0x8] sm:$0xff] %v3041_v0 }
  0x2e   : > { %423 = vst [vmem:[#allocation5 + $0x8] sm:$0xff] %v3041_v0 }
  0x2f   : > { %424 = vst [vmem:[#allocation5] sm:$0xff] %v3041_v0 }
  0x30 PF: > { %v429_v1 = vld [vmem:[%s3691_s1] sm:$0xff]  ;;  %v2264_v2 = vld [vmem:[#allocation6 + $0xe0] sm:$0xf]  ;;  %v2611_v3 = vld [vmem:[#allocation6 + $0xec] sm:$0xf0]  ;;  %vm463_vm0 = vcmask 1041408  }
  0x31   : > { %451 = vst [vmem:[#allocation1] ss:$4 sm:$0xff] %v429_v1  ;;  %v2609_v4 = vld [vmem:[#allocation6 + $0xe4] sm:$0xf]  ;;  %v2266_v5 = vld [vmem:[#allocation6 + $0xf0] sm:$0xf0]  ;;  %v3176_v10 = vor.u32 %v2611_v3, %v2264_v2 }
  0x32   : > { %v2272_v6 = vld [vmem:[#allocation6 + $0xe8] sm:$0xf]  ;;  %v2612_v7 = vld [vmem:[#allocation6 + $0xf4] sm:$0xf0]  ;;  %v2610_v8 = vld [vmem:[#allocation6 + $0xec] sm:$0xf]  ;;  %v3178_v17 = vor.u32 %v2609_v4, %v2266_v5 }
  0x33   : > { %v2274_v9 = vld [vmem:[#allocation6 + $0xf8] sm:$0xf0]  ;;  %v2248_v11 = vld [vmem:[#allocation6 + $0xc0] sm:$0xf]  ;;  %v2607_v12 = vld [vmem:[#allocation6 + $0xcc] sm:$0xf0]  ;;  %v3188_v26 = vor.u32 %v2612_v7, %v2272_v6 }
  0x34   : > { %v2605_v13 = vld [vmem:[#allocation6 + $0xc4] sm:$0xf]  ;;  %v2250_v14 = vld [vmem:[#allocation6 + $0xd0] sm:$0xf0]  ;;  %v2579_v21 = vld [vmem:[%s3170_s20] sm:$0xff]  ;;  %vm456_vm1 = vcmask 31744   ;;  %v3184_v24 = vor.u32 %v2610_v8, %v2274_v9  ;;  %v3191_v29 = vor.u32 %v2607_v12, %v2248_v11 }
  0x35   : > { %v2606_v27 = vld [vmem:[#allocation6 + $0xcc] sm:$0xf]  ;;  %v2258_v28 = vld [vmem:[#allocation6 + $0xd8] sm:$0xf0]  ;;  %v3193_v30 = vor.u32 %v2605_v13, %v2250_v14  ;;  %v2256_v31 = vld [vmem:[#allocation6 + $0xc8] sm:$0xf] }
  0x36   : > { %v2608_v32 = vld [vmem:[#allocation6 + $0xd4] sm:$0xf0]  ;;  %v2232_v33 = vld [vmem:[#allocation6 + $0xa0] sm:$0xf]  ;;  %v2603_v34 = vld [vmem:[#allocation6 + $0xac] sm:$0xf0]  ;;  %v3199_v37 = vor.u32 %v2606_v27, %v2258_v28 }
  0x37   : > { %v2601_v35 = vld [vmem:[#allocation6 + $0xa4] sm:$0xf]  ;;  %v2234_v36 = vld [vmem:[#allocation6 + $0xb0] sm:$0xf0]  ;;  %v3203_v38 = vor.u32 %v2608_v32, %v2256_v31  ;;  %v2602_v39 = vld [vmem:[#allocation6 + $0xac] sm:$0xf]  ;;  %v3207_v41 = vor.u32 %v2603_v34, %v2232_v33 }
  0x38   : > { %v452_v15 = vld.sshfl [vmem:[#allocation1] sm:$0xff pattern:$0x73625140]  ;;  %v453_v16 = vld.sshfl [vmem:[#allocation1 + $0x8] sm:$0xff pattern:$0x73625140]  ;;  %v3209_v42 = vor.u32 %v2601_v35, %v2234_v36 }
  0x39   : > { %v464_v18 = vsel %vm463_vm0, %v452_v15, 0  ;;  %v466_v19 = vsel %vm463_vm0, %v453_v16, 0  ;;  %v454_v20 = vld.sshfl [vmem:[#allocation1 + $0x10] sm:$0xff pattern:$0x73625140]  ;;  %v2580_v63 = vld [vmem:[%s3170_s20 + $0x8] sm:$0xff] }
  0x3a   : > { %479 = vmatpush.bf16.msra.mxu0 %v464_v18  ;;  %498 = vmatpush.bf16.msra.mxu1 %v466_v19  ;;  %v468_v22 = vsel %vm463_vm0, %v454_v20, 0  ;;  %v455_v23 = vld.sshfl [vmem:[#allocation1 + $0x18] sm:$0xff pattern:$0x73625140]  ;;  %v2242_v40 = vld [vmem:[#allocation6 + $0xb8] sm:$0xf0] }
  0x3b   : > { %517 = vmatpush.bf16.msra.mxu2 %v468_v22  ;;  %v470_v25 = vsel %vm463_vm0, %v455_v23, 0  ;;  %v2240_v43 = vld [vmem:[#allocation6 + $0xa8] sm:$0xf]  ;;  %v2604_v44 = vld [vmem:[#allocation6 + $0xb4] sm:$0xf0]  ;;  %v3212_v49 = vor.u32 %v2602_v39, %v2242_v40  ;;  %p2542_p9 = scmp.ne.s32.totalorder %s3023_s30, 1 }
  0x3c   : > { %536 = vmatpush.bf16.msra.mxu3 %v470_v25  ;;  %v2216_v45 = vld [vmem:[#allocation6 + $0x80] sm:$0xf]  ;;  %v2599_v46 = vld [vmem:[#allocation6 + $0x8c] sm:$0xf0]  ;;  %v2597_v47 = vld [vmem:[#allocation6 + $0x84] sm:$0xf]  ;;  %v3215_v50 = vor.u32 %v2604_v44, %v2240_v43 }
  0x3d   : > { %2142 = vmatmul.msk.bf16.vlgmr.msra.gmra.mxu0 %vm456_vm1, %v2579_v21  ;;  %2144 = vmatmul.msk.bf16.vlgmr.msra.gmra.mxu1 %vm456_vm1, %v2579_v21  ;;  %v2218_v48 = vld [vmem:[#allocation6 + $0x90] sm:$0xf0]  ;;  %v2598_v51 = vld [vmem:[#allocation6 + $0x8c] sm:$0xf]  ;;  %v2226_v52 = vld [vmem:[#allocation6 + $0x98] sm:$0xf0]  ;;  %v3219_v53 = vor.u32 %v2599_v46, %v2216_v45 }
  0x3e   : > { %765 = vmatpush.bf16.msrb.mxu0 %v3176_v10  ;;  %778 = vmatpush.bf16.msrb.mxu1 %v3178_v17  ;;  %v3221_v54 = vor.u32 %v2597_v47, %v2218_v48  ;;  %v2224_v55 = vld [vmem:[#allocation6 + $0x88] sm:$0xf]  ;;  %v2600_v56 = vld [vmem:[#allocation6 + $0x94] sm:$0xf0]  ;;  %v2200_v57 = vld [vmem:[#allocation6 + $0x60] sm:$0xf]  ;;  %v3224_v61 = vor.u32 %v2598_v51, %v2226_v52 }
  0x3f   : > { %2146 = vmatmul.msk.bf16.vlgmr.msra.gmra.mxu2 %vm456_vm1, %v2579_v21  ;;  %2148 = vmatmul.msk.bf16.vlgmr.msra.gmra.mxu3 %vm456_vm1, %v2579_v21  ;;  %v2595_v58 = vld [vmem:[#allocation6 + $0x6c] sm:$0xf0]  ;;  %v2593_v59 = vld [vmem:[#allocation6 + $0x64] sm:$0xf]  ;;  %v2202_v60 = vld [vmem:[#allocation6 + $0x70] sm:$0xf0]  ;;  %v3227_v62 = vor.u32 %v2600_v56, %v2224_v55 }
  0x40   : > { %804 = vmatpush.bf16.msrb.mxu3 %v3184_v24  ;;  %791 = vmatpush.bf16.msrb.mxu2 %v3188_v26  ;;  %v2594_v0 = vld [vmem:[#allocation6 + $0x6c] sm:$0xf]  ;;  %v2210_v1 = vld [vmem:[#allocation6 + $0x78] sm:$0xf0]  ;;  %v3232_v2 = vor.u32 %v2595_v58, %v2200_v57  ;;  %v3234_v3 = vor.u32 %v2593_v59, %v2202_v60  ;;  %v2208_v4 = vld [vmem:[#allocation6 + $0x68] sm:$0xf] }
  0x41   : > { %v2596_v5 = vld [vmem:[#allocation6 + $0x74] sm:$0xf0]  ;;  %v2184_v6 = vld [vmem:[#allocation6 + $0x40] sm:$0xf]  ;;  %v2591_v7 = vld [vmem:[#allocation6 + $0x4c] sm:$0xf0]  ;;  %v3237_v11 = vor.u32 %v2594_v0, %v2210_v1 }
  0x42   : > { %766 = vmatpush.bf16.msrb.mxu0 %v3191_v29  ;;  %779 = vmatpush.bf16.msrb.mxu1 %v3193_v30  ;;  %v2589_v8 = vld [vmem:[#allocation6 + $0x44] sm:$0xf]  ;;  %v2186_v9 = vld [vmem:[#allocation6 + $0x50] sm:$0xf0]  ;;  %v3240_v12 = vor.u32 %v2596_v5, %v2208_v4  ;;  %v2590_v13 = vld [vmem:[#allocation6 + $0x4c] sm:$0xf]  ;;  %v3244_v15 = vor.u32 %v2591_v7, %v2184_v6 }
  0x43   : > { %v2194_v14 = vld [vmem:[#allocation6 + $0x58] sm:$0xf0]  ;;  %v3246_v16 = vor.u32 %v2589_v8, %v2186_v9  ;;  %v2192_v18 = vld [vmem:[#allocation6 + $0x48] sm:$0xf]  ;;  %v2592_v19 = vld [vmem:[#allocation6 + $0x54] sm:$0xf0] }
  0x44   : > { %805 = vmatpush.bf16.msrb.mxu3 %v3199_v37  ;;  %792 = vmatpush.bf16.msrb.mxu2 %v3203_v38  ;;  %v2168_v20 = vld [vmem:[#allocation6 + $0x20] sm:$0xf]  ;;  %v2587_v21 = vld [vmem:[#allocation6 + $0x2c] sm:$0xf0]  ;;  %v2585_v22 = vld [vmem:[#allocation6 + $0x24] sm:$0xf]  ;;  %v3252_v25 = vor.u32 %v2590_v13, %v2194_v14  ;;  %v3256_v27 = vor.u32 %v2592_v19, %v2192_v18 }
  0x45   : > { %v2170_v23 = vld [vmem:[#allocation6 + $0x30] sm:$0xf0]  ;;  %v2586_v28 = vld [vmem:[#allocation6 + $0x2c] sm:$0xf]  ;;  %v2178_v31 = vld [vmem:[#allocation6 + $0x38] sm:$0xf0]  ;;  %v3260_v32 = vor.u32 %v2587_v21, %v2168_v20 }
  0x46   : > { %767 = vmatpush.bf16.msrb.mxu0 %v3207_v41  ;;  %780 = vmatpush.bf16.msrb.mxu1 %v3209_v42  ;;  %v3262_v33 = vor.u32 %v2585_v22, %v2170_v23  ;;  %v2176_v34 = vld [vmem:[#allocation6 + $0x28] sm:$0xf]  ;;  %v2588_v35 = vld [vmem:[#allocation6 + $0x34] sm:$0xf0]  ;;  %v2152_v36 = vld [vmem:[#allocation6] sm:$0xf]  ;;  %v3265_v44 = vor.u32 %v2586_v28, %v2178_v31 }
  0x47   : > { %v2583_v39 = vld [vmem:[#allocation6 + $0xc] sm:$0xf0]  ;;  %v2581_v40 = vld [vmem:[#allocation6 + $0x4] sm:$0xf]  ;;  %v2154_v43 = vld [vmem:[#allocation6 + $0x10] sm:$0xf0]  ;;  %v3268_v45 = vor.u32 %v2588_v35, %v2176_v34 }
  0x48   : > { %806 = vmatpush.bf16.msrb.mxu3 %v3212_v49  ;;  %793 = vmatpush.bf16.msrb.mxu2 %v3215_v50  ;;  %v2582_v46 = vld [vmem:[#allocation6 + $0xc] sm:$0xf]  ;;  %v2162_v47 = vld [vmem:[#allocation6 + $0x18] sm:$0xf0]  ;;  %v3272_v48 = vor.u32 %v2583_v39, %v2152_v36  ;;  %v3274_v51 = vor.u32 %v2581_v40, %v2154_v43  ;;  %v2160_v52 = vld [vmem:[#allocation6 + $0x8] sm:$0xf] }
  0x49   : > { %v2584_v55 = vld [vmem:[#allocation6 + $0x14] sm:$0xf0]  ;;  %v3277_v56 = vor.u32 %v2582_v46, %v2162_v47  ;;  %v596_v57 = vld [vmem:[#allocation4] sm:$0xff]  ;;  %v430_v0 = vld [vmem:[%s3693_s3] sm:$0xf] }
  0x4a   : > { %768 = vmatpush.bf16.msrb.mxu0 %v3219_v53  ;;  %781 = vmatpush.bf16.msrb.mxu1 %v3221_v54  ;;  %v3280_v58 = vor.u32 %v2584_v55, %v2160_v52  ;;  %v604_v59 = vpack.c.bf16 %v596_v57, %v596_v57  ;;  %v432_v1 = vperm.slane %v430_v0, 0  ;;  %v433_v5 = vperm.slane %v430_v0, 1 }
  0x4b   : > { %v434_v18 = vperm.slane %v430_v0, 2  ;;  %v435_v19 = vperm.slane %v430_v0, 3 }
  0x4c   : > { %807 = vmatpush.bf16.msrb.mxu3 %v3224_v61  ;;  %794 = vmatpush.bf16.msrb.mxu2 %v3227_v62 }
  0x4d   : > { %2143 = vmatmul.msk.bf16.gmra.mxu0 %vm456_vm1, %v2580_v63  ;;  %2145 = vmatmul.msk.bf16.gmra.mxu1 %vm456_vm1, %v2580_v63 }
  0x4e   : > { %769 = vmatpush.bf16.msrb.mxu0 %v3232_v2  ;;  %782 = vmatpush.bf16.msrb.mxu1 %v3234_v3 }
  0x4f   : > { %2147 = vmatmul.msk.bf16.gmra.mxu2 %vm456_vm1, %v2580_v63  ;;  %2149 = vmatmul.msk.bf16.gmra.mxu3 %vm456_vm1, %v2580_v63 }
  0x50   : > { %808 = vmatpush.bf16.msrb.mxu3 %v3237_v11  ;;  %795 = vmatpush.bf16.msrb.mxu2 %v3240_v12 }
  0x52   : > { %770 = vmatpush.bf16.msrb.mxu0 %v3244_v15  ;;  %783 = vmatpush.bf16.msrb.mxu1 %v3246_v16 }
  0x54   : > { %809 = vmatpush.bf16.msrb.mxu3 %v3252_v25  ;;  %796 = vmatpush.bf16.msrb.mxu2 %v3256_v27 }
  0x56   : > { %771 = vmatpush.bf16.msrb.mxu0 %v3260_v32  ;;  %784 = vmatpush.bf16.msrb.mxu1 %v3262_v33 }
  0x58   : > { %810 = vmatpush.bf16.msrb.mxu3 %v3265_v44  ;;  %797 = vmatpush.bf16.msrb.mxu2 %v3268_v45 }
  0x5a   : > { %772 = vmatpush.bf16.msrb.mxu0 %v3272_v48  ;;  %785 = vmatpush.bf16.msrb.mxu1 %v3274_v51 }
  0x5c   : > { %811 = vmatpush.bf16.msrb.mxu3 %v3277_v56  ;;  %798 = vmatpush.bf16.msrb.mxu2 %v3280_v58 }
  0x5d   : > { %773 = vmatmul.bf16.vlgmr.msrb.gmra.mxu0 %v604_v59  ;;  %786 = vmatmul.bf16.vlgmr.msrb.gmra.mxu1 %v604_v59 }
  0x5e   : > { %848 = vmatpush.bf16.msra.mxu0 %v3176_v10  ;;  %861 = vmatpush.bf16.msra.mxu1 %v3178_v17 }
  0x5f   : > { %799 = vmatmul.bf16.vlgmr.msrb.gmra.mxu2 %v604_v59  ;;  %812 = vmatmul.bf16.vlgmr.msrb.gmra.mxu3 %v604_v59 }
  0x60   : > { %887 = vmatpush.bf16.msra.mxu3 %v3184_v24  ;;  %874 = vmatpush.bf16.msra.mxu2 %v3188_v26 }
  0x62   : > { %849 = vmatpush.bf16.msra.mxu0 %v3191_v29  ;;  %862 = vmatpush.bf16.msra.mxu1 %v3193_v30 }
  0x64   : > { %875 = vmatpush.bf16.msra.mxu2 %v3203_v38  ;;  %888 = vmatpush.bf16.msra.mxu3 %v3199_v37 }
  0x66   : > { %850 = vmatpush.bf16.msra.mxu0 %v3207_v41  ;;  %863 = vmatpush.bf16.msra.mxu1 %v3209_v42 }
  0x68   : > { %876 = vmatpush.bf16.msra.mxu2 %v3215_v50  ;;  %889 = vmatpush.bf16.msra.mxu3 %v3212_v49 }
  0x6a   : > { %851 = vmatpush.bf16.msra.mxu0 %v3219_v53  ;;  %864 = vmatpush.bf16.msra.mxu1 %v3221_v54 }
  0x6c   : > { %877 = vmatpush.bf16.msra.mxu2 %v3227_v62  ;;  %890 = vmatpush.bf16.msra.mxu3 %v3224_v61 }
  0x6e   : > { %852 = vmatpush.bf16.msra.mxu0 %v3232_v2  ;;  %865 = vmatpush.bf16.msra.mxu1 %v3234_v3 }
  0x70   : > { %878 = vmatpush.bf16.msra.mxu2 %v3240_v12  ;;  %891 = vmatpush.bf16.msra.mxu3 %v3237_v11 }
  0x72   : > { %853 = vmatpush.bf16.msra.mxu0 %v3244_v15  ;;  %866 = vmatpush.bf16.msra.mxu1 %v3246_v16 }
  0x74   : > { %879 = vmatpush.bf16.msra.mxu2 %v3256_v27  ;;  %892 = vmatpush.bf16.msra.mxu3 %v3252_v25 }
  0x76   : > { %854 = vmatpush.bf16.msra.mxu0 %v3260_v32  ;;  %867 = vmatpush.bf16.msra.mxu1 %v3262_v33 }
  0x78   : > { %880 = vmatpush.bf16.msra.mxu2 %v3268_v45  ;;  %893 = vmatpush.bf16.msra.mxu3 %v3265_v44 }
  0x7a   : > { %855 = vmatpush.bf16.msra.mxu0 %v3272_v48  ;;  %868 = vmatpush.bf16.msra.mxu1 %v3274_v51 }
  0x7c   : > { %881 = vmatpush.bf16.msra.mxu2 %v3280_v58  ;;  %894 = vmatpush.bf16.msra.mxu3 %v3277_v56 }
  0x7e   : > { %932 = vmatpush.bf16.msrb.mxu0 %v3176_v10  ;;  %945 = vmatpush.bf16.msrb.mxu1 %v3178_v17 }
  0x80   : > { %958 = vmatpush.bf16.msrb.mxu2 %v3188_v26  ;;  %971 = vmatpush.bf16.msrb.mxu3 %v3184_v24 }
  0x82   : > { %933 = vmatpush.bf16.msrb.mxu0 %v3191_v29  ;;  %946 = vmatpush.bf16.msrb.mxu1 %v3193_v30 }
  0x84   : > { %959 = vmatpush.bf16.msrb.mxu2 %v3203_v38  ;;  %972 = vmatpush.bf16.msrb.mxu3 %v3199_v37 }
  0x86   : > { %934 = vmatpush.bf16.msrb.mxu0 %v3207_v41  ;;  %947 = vmatpush.bf16.msrb.mxu1 %v3209_v42 }
  0x88   : > { %960 = vmatpush.bf16.msrb.mxu2 %v3215_v50  ;;  %973 = vmatpush.bf16.msrb.mxu3 %v3212_v49 }
  0x8a   : > { %935 = vmatpush.bf16.msrb.mxu0 %v3219_v53  ;;  %948 = vmatpush.bf16.msrb.mxu1 %v3221_v54 }
  0x8c   : > { %961 = vmatpush.bf16.msrb.mxu2 %v3227_v62  ;;  %974 = vmatpush.bf16.msrb.mxu3 %v3224_v61 }
  0x8e   : > { %936 = vmatpush.bf16.msrb.mxu0 %v3232_v2  ;;  %949 = vmatpush.bf16.msrb.mxu1 %v3234_v3 }
  0x90   : > { %962 = vmatpush.bf16.msrb.mxu2 %v3240_v12  ;;  %975 = vmatpush.bf16.msrb.mxu3 %v3237_v11 }
  0x92   : > { %937 = vmatpush.bf16.msrb.mxu0 %v3244_v15  ;;  %950 = vmatpush.bf16.msrb.mxu1 %v3246_v16 }
  0x94   : > { %963 = vmatpush.bf16.msrb.mxu2 %v3256_v27  ;;  %976 = vmatpush.bf16.msrb.mxu3 %v3252_v25 }
  0x96   : > { %938 = vmatpush.bf16.msrb.mxu0 %v3260_v32  ;;  %951 = vmatpush.bf16.msrb.mxu1 %v3262_v33 }
  0x98   : > { %964 = vmatpush.bf16.msrb.mxu2 %v3268_v45  ;;  %977 = vmatpush.bf16.msrb.mxu3 %v3265_v44 }
  0x9a   : > { %939 = vmatpush.bf16.msrb.mxu0 %v3272_v48  ;;  %952 = vmatpush.bf16.msrb.mxu1 %v3274_v51 }
  0x9c   : > { %965 = vmatpush.bf16.msrb.mxu2 %v3280_v58  ;;  %978 = vmatpush.bf16.msrb.mxu3 %v3277_v56 }
  0xba   : > { %v481_v60 = vpop.f32.mrf.mxu0  ;;  %v500_v63 = vpop.f32.mrf.mxu1 }
  0xbb   : > { %v482_v40 = vadd.f32 %v481_v60, %v432_v1  ;;  %v501_v43 = vadd.f32 %v500_v63, %v433_v5 }
  0xc2   : > { %v519_v4 = vpop.f32.mrf.mxu2  ;;  %v538_v6 = vpop.f32.mrf.mxu3 }
  0xc3   : > { %v483_v7 = vpop.f32.mrf.mxu0  ;;  %v502_v9 = vpop.f32.mrf.mxu1 }
  0xc4   : > { %v484_v8 = vadd.f32 %v483_v7, %v432_v1  ;;  %v503_v13 = vadd.f32 %v502_v9, %v433_v5 }
  0xc6   : > { %v3353_v14 = vpack.c.bf16 %v503_v13, %v484_v8  ;;  %v548_v8 = vpack.c.bf16 %v501_v43, %v482_v40 }
  0xca   : > { %v521_v20 = vpop.f32.mrf.mxu2  ;;  %v540_v22 = vpop.f32.mrf.mxu3 }
  0xcb   : > { %v522_v21 = vadd.f32 %v521_v20, %v434_v18  ;;  %v486_v23 = vpop.f32.mrf.mxu0  ;;  %v541_v28 = vadd.f32 %v540_v22, %v435_v19  ;;  %v505_v34 = vpop.f32.mrf.mxu1  ;;  %v520_v20 = vadd.f32 %v519_v4, %v434_v18 }
  0xcc   : > { %v487_v31 = vadd.f32 %v486_v23, %v432_v1  ;;  %v506_v35 = vadd.f32 %v505_v34, %v433_v5  ;;  %v600_v23 = vunpack.c.l.bf16 %v548_v8 }
  0xcd   : > { %v3355_v36 = vpack.c.bf16 %v541_v28, %v522_v21  ;;  %v539_v21 = vadd.f32 %v538_v6, %v435_v19 }
  0xce   : > { %v3357_v39 = vpack.c.bf16 %v506_v35, %v487_v31  ;;  %v601_v31 = vunpack.c.h.bf16 %v548_v8 }
  0xd2   : > { %v524_v46 = vpop.f32.mrf.mxu2  ;;  %v543_v52 = vpop.f32.mrf.mxu3 }
  0xd3   : > { %v525_v47 = vadd.f32 %v524_v46, %v434_v18  ;;  %v488_v55 = vpop.f32.mrf.mxu0  ;;  %v544_v57 = vadd.f32 %v543_v52, %v435_v19  ;;  %v507_v0 = vpop.f32.mrf.mxu1  ;;  %v549_v52 = vpack.c.bf16 %v539_v21, %v520_v20 }
  0xd4   : > { %v489_v59 = vadd.f32 %v488_v55, %v432_v1  ;;  %v508_v7 = vadd.f32 %v507_v0, %v433_v5 }
  0xd5   : > { %v3359_v9 = vpack.c.bf16 %v544_v57, %v525_v47  ;;  %v602_v43 = vunpack.c.l.bf16 %v549_v52  ;;  %v603_v6 = vunpack.c.h.bf16 %v549_v52 }
  0xd6   : > { %v3361_v13 = vpack.c.bf16 %v508_v7, %v489_v59 }
  0xda   : > { %v526_v22 = vpop.f32.mrf.mxu2  ;;  %v545_v60 = vpop.f32.mrf.mxu3 }
  0xdb   : > { %v527_v28 = vadd.f32 %v526_v22, %v434_v18  ;;  %v774_v63 = vpop.f32.mrf.mxu0  ;;  %v546_v34 = vadd.f32 %v545_v60, %v435_v19  ;;  %v787_v46 = vpop.f32.mrf.mxu1 }
  0xdc   : > { %v817_v35 = vadd.f32 %v774_v63, %v600_v23  ;;  %v818_v1 = vadd.f32 %v787_v46, %v601_v31  ;;  %v597_v23 = vld [vmem:[#allocation5 + $0x8] sm:$0xff] }
  0xdd   : > { %v3363_v55 = vpack.c.bf16 %v546_v34, %v527_v28 }
  0xde   : > { %v821_v5 = vmul.f32 0.5, %v817_v35  ;;  %v825_v40 = vmul.f32 0.5, %v818_v1 }
  0xe0   : > { %2764 = vtanh.f32 %v821_v5 }
  0xe1   : > { %2766 = vtanh.f32 %v825_v40 }
  0xe2   : > { %v800_v4 = vpop.f32.mrf.mxu2  ;;  %v813_v57 = vpop.f32.mrf.mxu3 }
  0xe3   : > { %v819_v47 = vadd.f32 %v800_v4, %v602_v43  ;;  %v776_v18 = vpop.f32.mrf.mxu0  ;;  %v820_v59 = vadd.f32 %v813_v57, %v603_v6  ;;  %v789_v0 = vpop.f32.mrf.mxu1  ;;  %v2645_v57 = vld [vmem:[#allocation9 + $0xec] sm:$0xf0] }
  0xe4   : > { %v2643_v18 = vld [vmem:[#allocation9 + $0xe4] sm:$0xf]  ;;  %v2402_v0 = vld [vmem:[#allocation9 + $0xf0] sm:$0xf0] }
  0xe5   : > { %2768 = vtanh.f32 %v819_v47  ;;  %v830_v7 = vmul.f32 0.5, %v820_v59  ;;  %v2400_v47 = vld [vmem:[#allocation9 + $0xe0] sm:$0xf] }
  0xe6   : > { %v2765_v19 = vpop.eup %2764  ;;  %v2401_v59 = vor.u32 %v2645_v57, %v2400_v47 }
  0xe7   : > { %v2767_v8 = vpop.eup %2766  ;;  %v823_v20 = vmul.f32 0.5, %v2765_v19  ;;  %2770 = vtanh.f32 %v830_v7  ;;  %v2408_v19 = vld [vmem:[#allocation9 + $0xe8] sm:$0xf]  ;;  %v2646_v7 = vld [vmem:[#allocation9 + $0xf4] sm:$0xf0] }
  0xe8   : > { %v827_v21 = vmul.f32 0.5, %v2767_v8  ;;  %v2405_v8 = vor.u32 %v2643_v18, %v2402_v0  ;;  %v2628_v0 = vld [vmem:[#allocation9 + $0x6c] sm:$0xf] }
  0xe9   : > { %v824_v22 = vadd.f32 0.5, %v823_v20  ;;  %v2409_v20 = vor.u32 %v2646_v7, %v2408_v19  ;;  %v2346_v19 = vld [vmem:[#allocation9 + $0x78] sm:$0xf0]  ;;  %v2320_v7 = vld [vmem:[#allocation9 + $0x40] sm:$0xf] }
  0xea   : > { %v828_v28 = vadd.f32 0.5, %v827_v21  ;;  %v802_v60 = vpop.f32.mrf.mxu2  ;;  %v815_v31 = vpop.f32.mrf.mxu3  ;;  %v2644_v21 = vld [vmem:[#allocation9 + $0xec] sm:$0xf] }
  0xeb   : > { %v2769_v63 = vpop.eup %2768  ;;  %v2641_v60 = vld [vmem:[#allocation9 + $0xcc] sm:$0xf0] }
  0xec   : > { %v834_v34 = vmul.f32 %v828_v28, %v597_v23  ;;  %v835_v35 = vmul.f32 %v2769_v63, %v824_v22  ;;  %v2410_v22 = vld [vmem:[#allocation9 + $0xf8] sm:$0xf0]  ;;  %v2384_v28 = vld [vmem:[#allocation9 + $0xc0] sm:$0xf]  ;;  %v2639_v63 = vld [vmem:[#allocation9 + $0xc4] sm:$0xf] }
  0xed   : > { %v2771_v46 = vpop.eup %2770  ;;  %v2413_v23 = vor.u32 %v2644_v21, %v2410_v22  ;;  %v2385_v31 = vor.u32 %v2641_v60, %v2384_v28  ;;  %v2322_v21 = vld [vmem:[#allocation9 + $0x50] sm:$0xf0] }
  0xee   : > { %v3365_v52 = vadd.f32 %v835_v35, %v834_v34  ;;  %v832_v1 = vmul.f32 0.5, %v2771_v46  ;;  %v2386_v34 = vld [vmem:[#allocation9 + $0xd0] sm:$0xf0]  ;;  %v2392_v35 = vld [vmem:[#allocation9 + $0xc8] sm:$0xf] }
  0xef   : > { %v2642_v46 = vld [vmem:[#allocation9 + $0xd4] sm:$0xf0] }
  0xf0   : > { %2772 = vtanh.f32 %v3365_v52  ;;  %v833_v5 = vadd.f32 0.5, %v832_v1  ;;  %v2393_v1 = vor.u32 %v2642_v46, %v2392_v35  ;;  %v2624_v35 = vld [vmem:[#allocation9 + $0x4c] sm:$0xf]  ;;  %v2330_v46 = vld [vmem:[#allocation9 + $0x58] sm:$0xf0] }
  0xf6   : > { %v2773_v40 = vpop.eup %2772 }
  0xf7   : > { %v838_v43 = vmul.f32 %v2773_v40, %v833_v5  ;;  %v2640_v5 = vld [vmem:[#allocation9 + $0xcc] sm:$0xf]  ;;  %v2394_v40 = vld [vmem:[#allocation9 + $0xd8] sm:$0xf0] }
  0xf9   : > { %v839_v4 = vpack.c.bf16 %v838_v43, %v838_v43  ;;  %v2397_v43 = vor.u32 %v2640_v5, %v2394_v40  ;;  %v2621_v5 = vld [vmem:[#allocation9 + $0x2c] sm:$0xf0]  ;;  %v2619_v40 = vld [vmem:[#allocation9 + $0x24] sm:$0xf] }
  0xfb   : > { %840 = vst [vmem:[#allocation3] sm:$0xf] %v839_v4  ;;  %856 = vmatmul.bf16.vlgmr.msra.gmra.mxu0 %v839_v4  ;;  %869 = vmatmul.bf16.vlgmr.msra.gmra.mxu1 %v839_v4 }
  0xfc   : > { %882 = vmatmul.bf16.vlgmr.msra.gmra.mxu2 %v839_v4  ;;  %895 = vmatmul.bf16.vlgmr.msra.gmra.mxu3 %v839_v4  ;;  %v2368_v4 = vld [vmem:[#allocation9 + $0xa0] sm:$0xf] }
  0xfd   : > { %1016 = vmatpush.bf16.msra.mxu0 %v3176_v10  ;;  %1029 = vmatpush.bf16.msra.mxu1 %v3178_v17  ;;  %v844_v10 = vunpack.c.l.bf16 %v3353_v14  ;;  %v845_v17 = vunpack.c.h.bf16 %v3353_v14 }
  0xfe   : > { %1042 = vmatpush.bf16.msra.mxu2 %v3188_v26  ;;  %1055 = vmatpush.bf16.msra.mxu3 %v3184_v24 }
 0x101   : > { %1017 = vmatpush.bf16.msra.mxu0 %v3191_v29  ;;  %1030 = vmatpush.bf16.msra.mxu1 %v3193_v30 }
 0x102   : > { %1043 = vmatpush.bf16.msra.mxu2 %v3203_v38  ;;  %1056 = vmatpush.bf16.msra.mxu3 %v3199_v37 }
 0x105   : > { %1018 = vmatpush.bf16.msra.mxu0 %v3207_v41  ;;  %1031 = vmatpush.bf16.msra.mxu1 %v3209_v42  ;;  %v846_v41 = vunpack.c.l.bf16 %v3355_v36  ;;  %v847_v42 = vunpack.c.h.bf16 %v3355_v36 }
 0x106   : > { %1044 = vmatpush.bf16.msra.mxu2 %v3215_v50  ;;  %1057 = vmatpush.bf16.msra.mxu3 %v3212_v49 }
 0x109   : > { %1019 = vmatpush.bf16.msra.mxu0 %v3219_v53  ;;  %1032 = vmatpush.bf16.msra.mxu1 %v3221_v54 }
 0x10a   : > { %1045 = vmatpush.bf16.msra.mxu2 %v3227_v62  ;;  %1058 = vmatpush.bf16.msra.mxu3 %v3224_v61 }
 0x10d   : > { %1020 = vmatpush.bf16.msra.mxu0 %v3232_v2  ;;  %1033 = vmatpush.bf16.msra.mxu1 %v3234_v3 }
 0x10e   : > { %1046 = vmatpush.bf16.msra.mxu2 %v3240_v12  ;;  %1059 = vmatpush.bf16.msra.mxu3 %v3237_v11 }
 0x111   : > { %1021 = vmatpush.bf16.msra.mxu0 %v3244_v15  ;;  %1034 = vmatpush.bf16.msra.mxu1 %v3246_v16 }
 0x112   : > { %1047 = vmatpush.bf16.msra.mxu2 %v3256_v27  ;;  %1060 = vmatpush.bf16.msra.mxu3 %v3252_v25 }
 0x115   : > { %1022 = vmatpush.bf16.msra.mxu0 %v3260_v32  ;;  %1035 = vmatpush.bf16.msra.mxu1 %v3262_v33 }
 0x116   : > { %1048 = vmatpush.bf16.msra.mxu2 %v3268_v45  ;;  %1061 = vmatpush.bf16.msra.mxu3 %v3265_v44 }
 0x119   : > { %1023 = vmatpush.bf16.msra.mxu0 %v3272_v48  ;;  %1036 = vmatpush.bf16.msra.mxu1 %v3274_v51 }
 0x11a   : > { %1049 = vmatpush.bf16.msra.mxu2 %v3280_v58  ;;  %1062 = vmatpush.bf16.msra.mxu3 %v3277_v56 }
 0x178   : > { %v857_v24 = vpop.f32.mrf.mxu0  ;;  %v870_v26 = vpop.f32.mrf.mxu1 }
 0x179   : > { %v900_v29 = vadd.f32 %v857_v24, %v844_v10  ;;  %v901_v30 = vadd.f32 %v870_v26, %v845_v17  ;;  %v2637_v10 = vld [vmem:[#allocation9 + $0xac] sm:$0xf0]  ;;  %v2635_v17 = vld [vmem:[#allocation9 + $0xa4] sm:$0xf]  ;;  %v2370_v26 = vld [vmem:[#allocation9 + $0xb0] sm:$0xf0] }
 0x17a   : > { %v2369_v24 = vor.u32 %v2637_v10, %v2368_v4  ;;  %v930_v4 = vunpack.c.l.bf16 %v3359_v9  ;;  %v931_v10 = vunpack.c.h.bf16 %v3359_v9 }
 0x17b   : > { %v904_v37 = vmul.f32 0.5, %v900_v29  ;;  %v908_v38 = vmul.f32 0.5, %v901_v30  ;;  %v2376_v29 = vld [vmem:[#allocation9 + $0xa8] sm:$0xf]  ;;  %v2638_v30 = vld [vmem:[#allocation9 + $0xb4] sm:$0xf0] }
 0x17d   : > { %2774 = vtanh.f32 %v904_v37  ;;  %v2373_v37 = vor.u32 %v2635_v17, %v2370_v26  ;;  %v2622_v26 = vld [vmem:[#allocation9 + $0x34] sm:$0xf0] }
 0x17e   : > { %2776 = vtanh.f32 %v908_v38  ;;  %v2377_v38 = vor.u32 %v2638_v30, %v2376_v29  ;;  %v2620_v29 = vld [vmem:[#allocation9 + $0x2c] sm:$0xf] }
 0x17f   : > { %v883_v49 = vpop.f32.mrf.mxu2  ;;  %v896_v50 = vpop.f32.mrf.mxu3 }
 0x180   : > { %v902_v53 = vadd.f32 %v883_v49, %v846_v41  ;;  %v903_v54 = vadd.f32 %v896_v50, %v847_v42  ;;  %v859_v61 = vpop.f32.mrf.mxu0  ;;  %v872_v62 = vpop.f32.mrf.mxu1  ;;  %v2636_v41 = vld [vmem:[#allocation9 + $0xac] sm:$0xf]  ;;  %v2378_v42 = vld [vmem:[#allocation9 + $0xb8] sm:$0xf0]  ;;  %v2352_v50 = vld [vmem:[#allocation9 + $0x80] sm:$0xf] }
 0x181   : > { %v2381_v49 = vor.u32 %v2636_v41, %v2378_v42  ;;  %v2354_v62 = vld [vmem:[#allocation9 + $0x90] sm:$0xf0]  ;;  %v2314_v42 = vld [vmem:[#allocation9 + $0x38] sm:$0xf0] }
 0x182   : > { %2778 = vtanh.f32 %v902_v53  ;;  %v913_v2 = vmul.f32 0.5, %v903_v54  ;;  %v2633_v53 = vld [vmem:[#allocation9 + $0x8c] sm:$0xf0]  ;;  %v2631_v54 = vld [vmem:[#allocation9 + $0x84] sm:$0xf]  ;;  %v2317_v9 = vor.u32 %v2620_v29, %v2314_v42  ;;  %v1012_v42 = vunpack.c.l.bf16 %v3361_v13 }
 0x183   : > { %v2775_v3 = vpop.eup %2774  ;;  %v2353_v61 = vor.u32 %v2633_v53, %v2352_v50  ;;  %v2617_v50 = vld [vmem:[#allocation9 + $0xc] sm:$0xf0] }
 0x184   : > { %v2777_v11 = vpop.eup %2776  ;;  %v906_v12 = vmul.f32 0.5, %v2775_v3  ;;  %2780 = vtanh.f32 %v913_v2  ;;  %v2360_v2 = vld [vmem:[#allocation9 + $0x88] sm:$0xf]  ;;  %v2634_v3 = vld [vmem:[#allocation9 + $0x94] sm:$0xf0] }
 0x185   : > { %v910_v15 = vmul.f32 0.5, %v2777_v11  ;;  %v2357_v11 = vor.u32 %v2631_v54, %v2354_v62 }
 0x186   : > { %v907_v16 = vadd.f32 0.5, %v906_v12  ;;  %v2361_v12 = vor.u32 %v2634_v3, %v2360_v2  ;;  %v2615_v2 = vld [vmem:[#allocation9 + $0x4] sm:$0xf]  ;;  %v2290_v3 = vld [vmem:[#allocation9 + $0x10] sm:$0xf0] }
 0x187   : > { %v911_v25 = vadd.f32 0.5, %v910_v15  ;;  %v885_v27 = vpop.f32.mrf.mxu2  ;;  %v898_v32 = vpop.f32.mrf.mxu3  ;;  %v2632_v15 = vld [vmem:[#allocation9 + $0x8c] sm:$0xf] }
 0x188   : > { %v2779_v33 = vpop.eup %2778  ;;  %v928_v27 = vunpack.c.l.bf16 %v3357_v39  ;;  %v929_v32 = vunpack.c.h.bf16 %v3357_v39  ;;  %v2625_v39 = vld [vmem:[#allocation9 + $0x4c] sm:$0xf0] }
 0x189   : > { %v917_v44 = vmul.f32 %v911_v25, %v3365_v52  ;;  %v918_v45 = vmul.f32 %v2779_v33, %v907_v16  ;;  %v2389_v52 = vor.u32 %v2639_v63, %v2386_v34  ;;  %v2362_v16 = vld [vmem:[#allocation9 + $0x98] sm:$0xf0]  ;;  %v2336_v33 = vld [vmem:[#allocation9 + $0x60] sm:$0xf]  ;;  %v2321_v28 = vor.u32 %v2625_v39, %v2320_v7  ;;  %v2328_v63 = vld [vmem:[#allocation9 + $0x48] sm:$0xf] }
 0x18a   : > { %v2781_v48 = vpop.eup %2780  ;;  %v2365_v25 = vor.u32 %v2632_v15, %v2362_v16  ;;  %v2616_v15 = vld [vmem:[#allocation9 + $0xc] sm:$0xf]  ;;  %v2298_v16 = vld [vmem:[#allocation9 + $0x18] sm:$0xf0] }
 0x18b   : > { %v3405_v51 = vadd.f32 %v918_v45, %v917_v44  ;;  %v915_v56 = vmul.f32 0.5, %v2781_v48  ;;  %v2629_v44 = vld [vmem:[#allocation9 + $0x6c] sm:$0xf0]  ;;  %v2627_v45 = vld [vmem:[#allocation9 + $0x64] sm:$0xf] }
 0x18d   : > { %2782 = vtanh.f32 %v3405_v51  ;;  %v916_v58 = vadd.f32 0.5, %v915_v56 }
 0x193   : > { %v2783_v14 = vpop.eup %2782 }
 0x194   : > { %v921_v36 = vmul.f32 %v2783_v14, %v916_v58  ;;  %v2337_v58 = vor.u32 %v2629_v44, %v2336_v33  ;;  %v2338_v14 = vld [vmem:[#allocation9 + $0x70] sm:$0xf0]  ;;  %v2293_v33 = vor.u32 %v2615_v2, %v2290_v3  ;;  %v2504_v3 = vld [vmem:[#allocation11 + $0xa8] sm:$0xf] }
 0x195   : > { %v2341_v18 = vor.u32 %v2627_v45, %v2338_v14  ;;  %v2498_v2 = vld [vmem:[#allocation11 + $0xb0] sm:$0xf0] }
 0x196   : > { %v922_v6 = vpack.c.bf16 %v921_v36, %v921_v36  ;;  %v2344_v36 = vld [vmem:[#allocation9 + $0x68] sm:$0xf] }
 0x198   : > { %924 = vst [vmem:[#allocation3 + $0x4] sm:$0xf] %v922_v6  ;;  %940 = vmatmul.bf16.vlgmr.msrb.gmra.mxu0 %v922_v6  ;;  %953 = vmatmul.bf16.vlgmr.msrb.gmra.mxu1 %v922_v6 }
 0x199   : > { %966 = vmatmul.bf16.vlgmr.msrb.gmra.mxu2 %v922_v6  ;;  %979 = vmatmul.bf16.vlgmr.msrb.gmra.mxu3 %v922_v6  ;;  %v2630_v6 = vld [vmem:[#allocation9 + $0x74] sm:$0xf0] }
 0x19a   : > { %1313 = vmatpush.bf16.msrb.mxu0 %v2401_v59  ;;  %1332 = vmatpush.bf16.msrb.mxu1 %v2405_v8  ;;  %v2345_v59 = vor.u32 %v2630_v6, %v2344_v36  ;;  %v2349_v8 = vor.u32 %v2628_v0, %v2346_v19 }
 0x19b   : > { %1351 = vmatpush.bf16.msrb.mxu2 %v2409_v20  ;;  %1370 = vmatpush.bf16.msrb.mxu3 %v2413_v23  ;;  %v2623_v20 = vld [vmem:[#allocation9 + $0x44] sm:$0xf] }
 0x19c   : > { %v2325_v60 = vor.u32 %v2623_v20, %v2322_v21 }
 0x19e   : > { %1314 = vmatpush.bf16.msrb.mxu0 %v2385_v31  ;;  %1333 = vmatpush.bf16.msrb.mxu1 %v2389_v52  ;;  %v2626_v31 = vld [vmem:[#allocation9 + $0x54] sm:$0xf0]  ;;  %v2304_v52 = vld [vmem:[#allocation9 + $0x20] sm:$0xf] }
 0x19f   : > { %1352 = vmatpush.bf16.msrb.mxu2 %v2393_v1  ;;  %1371 = vmatpush.bf16.msrb.mxu3 %v2397_v43  ;;  %v2329_v34 = vor.u32 %v2626_v31, %v2328_v63  ;;  %v2333_v1 = vor.u32 %v2624_v35, %v2330_v46  ;;  %v2306_v43 = vld [vmem:[#allocation9 + $0x30] sm:$0xf0]  ;;  %v2305_v17 = vor.u32 %v2621_v5, %v2304_v52  ;;  %v2536_v31 = vld [vmem:[#allocation11 + $0xe8] sm:$0xf]  ;;  %v2676_v52 = vld [vmem:[#allocation11 + $0xec] sm:$0xf] }
 0x1a0   : > { %v2530_v63 = vld [vmem:[#allocation11 + $0xf0] sm:$0xf0] }
 0x1a2   : > { %1315 = vmatpush.bf16.msrb.mxu0 %v2369_v24  ;;  %1334 = vmatpush.bf16.msrb.mxu1 %v2373_v37  ;;  %v2312_v24 = vld [vmem:[#allocation9 + $0x28] sm:$0xf] }
 0x1a3   : > { %1353 = vmatpush.bf16.msrb.mxu2 %v2377_v38  ;;  %1372 = vmatpush.bf16.msrb.mxu3 %v2381_v49  ;;  %v2309_v38 = vor.u32 %v2619_v40, %v2306_v43  ;;  %v2313_v41 = vor.u32 %v2622_v26, %v2312_v24  ;;  %v2288_v49 = vld [vmem:[#allocation9] sm:$0xf]  ;;  %v2673_v43 = vld [vmem:[#allocation11 + $0xcc] sm:$0xf0]  ;;  %v2520_v24 = vld [vmem:[#allocation11 + $0xc8] sm:$0xf] }
 0x1a4   : > { %v2512_v40 = vld [vmem:[#allocation11 + $0xc0] sm:$0xf]  ;;  %v2674_v26 = vld [vmem:[#allocation11 + $0xd4] sm:$0xf0] }
 0x1a6   : > { %1316 = vmatpush.bf16.msrb.mxu0 %v2353_v61  ;;  %1335 = vmatpush.bf16.msrb.mxu1 %v2357_v11  ;;  %v2296_v11 = vld [vmem:[#allocation9 + $0x8] sm:$0xf] }
 0x1a7   : > { %1354 = vmatpush.bf16.msrb.mxu2 %v2361_v12  ;;  %1373 = vmatpush.bf16.msrb.mxu3 %v2365_v25  ;;  %v2618_v12 = vld [vmem:[#allocation9 + $0x14] sm:$0xf0] }
 0x1a8   : > { %v2297_v44 = vor.u32 %v2618_v12, %v2296_v11  ;;  %v2670_v11 = vld [vmem:[#allocation11 + $0xb4] sm:$0xf0] }
 0x1aa   : > { %1317 = vmatpush.bf16.msrb.mxu0 %v2337_v58  ;;  %1336 = vmatpush.bf16.msrb.mxu1 %v2341_v18 }
 0x1ab   : > { %1355 = vmatpush.bf16.msrb.mxu2 %v2345_v59  ;;  %1374 = vmatpush.bf16.msrb.mxu3 %v2349_v8 }
 0x1ae   : > { %1318 = vmatpush.bf16.msrb.mxu0 %v2321_v28  ;;  %1337 = vmatpush.bf16.msrb.mxu1 %v2325_v60  ;;  %v2675_v28 = vld [vmem:[#allocation11 + $0xe4] sm:$0xf] }
 0x1af   : > { %1356 = vmatpush.bf16.msrb.mxu2 %v2329_v34  ;;  %1375 = vmatpush.bf16.msrb.mxu3 %v2333_v1  ;;  %v2678_v34 = vld [vmem:[#allocation11 + $0xf4] sm:$0xf0]  ;;  %v3418_v35 = vor.u32 %v2675_v28, %v2530_v63  ;;  %v2538_v1 = vld [vmem:[#allocation11 + $0xf8] sm:$0xf0]  ;;  %v2464_v28 = vld [vmem:[#allocation11 + $0x60] sm:$0xf] }
 0x1b0   : > { %v3420_v46 = vor.u32 %v2678_v34, %v2536_v31  ;;  %v3423_v5 = vor.u32 %v2676_v52, %v2538_v1  ;;  %v2661_v63 = vld [vmem:[#allocation11 + $0x6c] sm:$0xf0]  ;;  %v2659_v31 = vld [vmem:[#allocation11 + $0x64] sm:$0xf]  ;;  %v2472_v52 = vld [vmem:[#allocation11 + $0x68] sm:$0xf] }
 0x1b1   : > { %v3468_v34 = vor.u32 %v2661_v63, %v2464_v28  ;;  %v2662_v1 = vld [vmem:[#allocation11 + $0x74] sm:$0xf0] }
 0x1b2   : > { %1319 = vmatpush.bf16.msrb.mxu0 %v2305_v17  ;;  %1338 = vmatpush.bf16.msrb.mxu1 %v2309_v38  ;;  %v2514_v17 = vld [vmem:[#allocation11 + $0xd0] sm:$0xf0]  ;;  %v2522_v38 = vld [vmem:[#allocation11 + $0xd8] sm:$0xf0] }
 0x1b3   : > { %1357 = vmatpush.bf16.msrb.mxu2 %v2313_v41  ;;  %1376 = vmatpush.bf16.msrb.mxu3 %v2317_v9 }
 0x1b6   : > { %1339 = vmatpush.bf16.msrb.mxu1 %v2293_v33  ;;  %v2480_v33 = vld [vmem:[#allocation11 + $0x80] sm:$0xf] }
 0x1b7   : > { %1358 = vmatpush.bf16.msrb.mxu2 %v2297_v44  ;;  %v2665_v44 = vld [vmem:[#allocation11 + $0x8c] sm:$0xf0] }
 0x215   : > { %v941_v48 = vpop.f32.mrf.mxu0  ;;  %v954_v56 = vpop.f32.mrf.mxu1 }
 0x216   : > { %v984_v47 = vadd.f32 %v941_v48, %v928_v27  ;;  %v985_v57 = vadd.f32 %v954_v56, %v929_v32  ;;  %v2289_v27 = vor.u32 %v2617_v50, %v2288_v49  ;;  %v2301_v56 = vor.u32 %v2616_v15, %v2298_v16  ;;  %v2496_v50 = vld [vmem:[#allocation11 + $0xa0] sm:$0xf] }
 0x217   : > { %v1013_v49 = vunpack.c.h.bf16 %v3361_v13  ;;  %v3446_v13 = vor.u32 %v2670_v11, %v2504_v3  ;;  %v2658_v11 = vld [vmem:[#allocation11 + $0x54] sm:$0xf0] }
 0x218   : > { %v988_v22 = vmul.f32 0.5, %v984_v47  ;;  %v992_v23 = vmul.f32 0.5, %v985_v57  ;;  %1320 = vmatpush.bf16.msrb.mxu0 %v2289_v27  ;;  %1377 = vmatpush.bf16.msrb.mxu3 %v2301_v56  ;;  %v2506_v27 = vld [vmem:[#allocation11 + $0xb8] sm:$0xf0] }
 0x21a   : > { %2784 = vtanh.f32 %v988_v22  ;;  %v2613_v22 = vld [vmem:[#allocation3] sm:$0xff] }
 0x21b   : > { %2786 = vtanh.f32 %v992_v23  ;;  %v2677_v23 = vld [vmem:[#allocation11 + $0xec] sm:$0xf0] }
 0x21c   : > { %v967_v30 = vpop.f32.mrf.mxu2  ;;  %v980_v37 = vpop.f32.mrf.mxu3 }
 0x21d   : > { %v986_v53 = vadd.f32 %v967_v30, %v930_v4  ;;  %v987_v54 = vadd.f32 %v980_v37, %v931_v10  ;;  %v943_v61 = vpop.f32.mrf.mxu0  ;;  %v956_v62 = vpop.f32.mrf.mxu1  ;;  %v2671_v4 = vld [vmem:[#allocation11 + $0xc4] sm:$0xf]  ;;  %v3428_v10 = vor.u32 %v2673_v43, %v2512_v40  ;;  %v3432_v30 = vor.u32 %v2674_v26, %v2520_v24  ;;  %v2672_v37 = vld [vmem:[#allocation11 + $0xcc] sm:$0xf]  ;;  %v2474_v24 = vld [vmem:[#allocation11 + $0x78] sm:$0xf0] }
 0x21e   : > { %v3430_v29 = vor.u32 %v2671_v4, %v2514_v17  ;;  %v3435_v41 = vor.u32 %v2672_v37, %v2522_v38  ;;  %v3472_v4 = vor.u32 %v2662_v1, %v2472_v52  ;;  %v2660_v17 = vld [vmem:[#allocation11 + $0x6c] sm:$0xf]  ;;  %v2448_v38 = vld [vmem:[#allocation11 + $0x40] sm:$0xf]  ;;  %v2418_v52 = vld [vmem:[#allocation11 + $0x10] sm:$0xf0] }
 0x21f   : > { %2788 = vtanh.f32 %v986_v53  ;;  %v997_v25 = vmul.f32 0.5, %v987_v54  ;;  %v2669_v53 = vld [vmem:[#allocation11 + $0xac] sm:$0xf0]  ;;  %v2667_v54 = vld [vmem:[#allocation11 + $0xa4] sm:$0xf]  ;;  %v3475_v37 = vor.u32 %v2660_v17, %v2474_v24 }
 0x220   : > { %v2785_v32 = vpop.eup %2784  ;;  %v3442_v9 = vor.u32 %v2669_v53, %v2496_v50  ;;  %v3444_v16 = vor.u32 %v2667_v54, %v2498_v2  ;;  %v2424_v17 = vld [vmem:[#allocation11 + $0x8] sm:$0xf]  ;;  %v2650_v24 = vld [vmem:[#allocation11 + $0x14] sm:$0xf0] }
 0x221   : > { %v2787_v45 = vpop.eup %2786  ;;  %v990_v48 = vmul.f32 0.5, %v2785_v32  ;;  %2790 = vtanh.f32 %v997_v25  ;;  %v2668_v25 = vld [vmem:[#allocation11 + $0xac] sm:$0xf] }
 0x222   : > { %v994_v58 = vmul.f32 0.5, %v2787_v45  ;;  %v3449_v32 = vor.u32 %v2668_v25, %v2506_v27  ;;  %v2663_v45 = vld [vmem:[#allocation11 + $0x84] sm:$0xf]  ;;  %v2458_v27 = vld [vmem:[#allocation11 + $0x58] sm:$0xf0] }
 0x223   : > { %v991_v14 = vadd.f32 0.5, %v990_v48 }
 0x224   : > { %v995_v36 = vadd.f32 0.5, %v994_v58  ;;  %v969_v6 = vpop.f32.mrf.mxu2  ;;  %v982_v47 = vpop.f32.mrf.mxu3  ;;  %v3453_v58 = vor.u32 %v2665_v44, %v2480_v33  ;;  %v2432_v33 = vld [vmem:[#allocation11 + $0x20] sm:$0xf] }
 0x225   : > { %v2789_v57 = vpop.eup %2788  ;;  %v2666_v47 = vld [vmem:[#allocation11 + $0x94] sm:$0xf0] }
 0x226   : > { %v1001_v18 = vmul.f32 %v995_v36, %v3405_v51  ;;  %v1002_v59 = vmul.f32 %v2789_v57, %v991_v14  ;;  %v2528_v51 = vld [vmem:[#allocation11 + $0xe0] sm:$0xf]  ;;  %v2482_v14 = vld [vmem:[#allocation11 + $0x90] sm:$0xf0]  ;;  %v2488_v36 = vld [vmem:[#allocation11 + $0x88] sm:$0xf] }
 0x227   : > { %v2791_v0 = vpop.eup %2790  ;;  %v3416_v60 = vor.u32 %v2677_v23, %v2528_v51  ;;  %v3456_v6 = vor.u32 %v2663_v45, %v2482_v14  ;;  %v2664_v57 = vld [vmem:[#allocation11 + $0x8c] sm:$0xf]  ;;  %v2653_v14 = vld [vmem:[#allocation11 + $0x2c] sm:$0xf0] }
 0x228   : > { %v3413_v19 = vadd.f32 %v1002_v59, %v1001_v18  ;;  %v999_v7 = vmul.f32 0.5, %v2791_v0  ;;  %v2490_v18 = vld [vmem:[#allocation11 + $0x98] sm:$0xf0]  ;;  %v3458_v59 = vor.u32 %v2666_v47, %v2488_v36  ;;  %v2651_v36 = vld [vmem:[#allocation11 + $0x24] sm:$0xf] }
 0x229   : > { %v3460_v0 = vor.u32 %v2664_v57, %v2490_v18  ;;  %v3491_v57 = vor.u32 %v2653_v14, %v2432_v33  ;;  %v2434_v18 = vld [vmem:[#allocation11 + $0x30] sm:$0xf0] }
 0x22a   : > { %2792 = vtanh.f32 %v3413_v19  ;;  %v1000_v8 = vadd.f32 0.5, %v999_v7  ;;  %v1014_v7 = vunpack.c.l.bf16 %v3363_v55 }
 0x230   : > { %v2793_v39 = vpop.eup %2792 }
 0x231   : > { %v1005_v20 = vmul.f32 %v2793_v39, %v1000_v8  ;;  %v1015_v8 = vunpack.c.h.bf16 %v3363_v55  ;;  %v2466_v55 = vld [vmem:[#allocation11 + $0x70] sm:$0xf0] }
 0x232   : > { %v3470_v43 = vor.u32 %v2659_v31, %v2466_v55  ;;  %v2649_v31 = vld [vmem:[#allocation11 + $0xc] sm:$0xf0]  ;;  %v2647_v55 = vld [vmem:[#allocation11 + $0x4] sm:$0xf] }
 0x233   : > { %v1006_v21 = vpack.c.bf16 %v1005_v20, %v1005_v20 }
 0x235   : > { %1008 = vst [vmem:[#allocation3 + $0x8] sm:$0xf] %v1006_v21  ;;  %1024 = vmatmul.bf16.vlgmr.msra.gmra.mxu0 %v1006_v21  ;;  %1037 = vmatmul.bf16.vlgmr.msra.gmra.mxu1 %v1006_v21 }
 0x236   : > { %1050 = vmatmul.bf16.vlgmr.msra.gmra.mxu2 %v1006_v21  ;;  %1063 = vmatmul.bf16.vlgmr.msra.gmra.mxu3 %v1006_v21 }
 0x237   : > { %1608 = vmatpush.bf16.msra.mxu0 %v3416_v60  ;;  %1621 = vmatpush.bf16.msra.mxu1 %v3418_v35 }
 0x238   : > { %1634 = vmatpush.bf16.msra.mxu2 %v3420_v46  ;;  %1647 = vmatpush.bf16.msra.mxu3 %v3423_v5 }
 0x23b   : > { %1609 = vmatpush.bf16.msra.mxu0 %v3428_v10  ;;  %1622 = vmatpush.bf16.msra.mxu1 %v3430_v29 }
 0x23c   : > { %1635 = vmatpush.bf16.msra.mxu2 %v3432_v30  ;;  %1648 = vmatpush.bf16.msra.mxu3 %v3435_v41 }
 0x23f   : > { %1610 = vmatpush.bf16.msra.mxu0 %v3442_v9  ;;  %1623 = vmatpush.bf16.msra.mxu1 %v3444_v16 }
 0x240   : > { %1636 = vmatpush.bf16.msra.mxu2 %v3446_v13  ;;  %1649 = vmatpush.bf16.msra.mxu3 %v3449_v32 }
 0x243   : > { %1611 = vmatpush.bf16.msra.mxu0 %v3453_v58  ;;  %1624 = vmatpush.bf16.msra.mxu1 %v3456_v6 }
 0x244   : > { %1637 = vmatpush.bf16.msra.mxu2 %v3458_v59  ;;  %1650 = vmatpush.bf16.msra.mxu3 %v3460_v0 }
 0x245   : > { %1321 = vmatmul.bf16.vlgmr.msrb.gmra.mxu0 %v2613_v22  ;;  %1340 = vmatmul.bf16.vlgmr.msrb.gmra.mxu1 %v2613_v22 }
 0x246   : > { %1359 = vmatmul.bf16.vlgmr.msrb.gmra.mxu2 %v2613_v22  ;;  %1378 = vmatmul.bf16.vlgmr.msrb.gmra.mxu3 %v2613_v22 }
 0x247   : > { %1612 = vmatpush.bf16.msra.mxu0 %v3468_v34  ;;  %1625 = vmatpush.bf16.msra.mxu1 %v3470_v43 }
 0x248   : > { %1638 = vmatpush.bf16.msra.mxu2 %v3472_v4  ;;  %1651 = vmatpush.bf16.msra.mxu3 %v3475_v37 }
 0x2b2   : > { %v1025_v61 = vpop.f32.mrf.mxu0  ;;  %v1038_v62 = vpop.f32.mrf.mxu1 }
 0x2b3   : > { %v1068_v12 = vadd.f32 %v1025_v61, %v1012_v42  ;;  %v1069_v15 = vadd.f32 %v1038_v62, %v1013_v49  ;;  %v2657_v42 = vld [vmem:[#allocation11 + $0x4c] sm:$0xf0]  ;;  %v2655_v49 = vld [vmem:[#allocation11 + $0x44] sm:$0xf]  ;;  %v2450_v61 = vld [vmem:[#allocation11 + $0x50] sm:$0xf0] }
 0x2b4   : > { %v3479_v54 = vor.u32 %v2657_v42, %v2448_v38  ;;  %v2456_v62 = vld [vmem:[#allocation11 + $0x48] sm:$0xf]  ;;  %v3482_v3 = vor.u32 %v2655_v49, %v2450_v61  ;;  %v3508_v38 = vor.u32 %v2650_v24, %v2424_v17  ;;  %v2648_v42 = vld [vmem:[#allocation11 + $0xc] sm:$0xf]  ;;  %v2426_v49 = vld [vmem:[#allocation11 + $0x18] sm:$0xf0] }
 0x2b5   : > { %v1072_v48 = vmul.f32 0.5, %v1068_v12  ;;  %v1076_v56 = vmul.f32 0.5, %v1069_v15  ;;  %v2656_v12 = vld [vmem:[#allocation11 + $0x4c] sm:$0xf]  ;;  %v3484_v25 = vor.u32 %v2658_v11, %v2456_v62 }
 0x2b6   : > { %1613 = vmatpush.bf16.msra.mxu0 %v3479_v54  ;;  %1626 = vmatpush.bf16.msra.mxu1 %v3482_v3 }
 0x2b7   : > { %2794 = vtanh.f32 %v1072_v48  ;;  %1639 = vmatpush.bf16.msra.mxu2 %v3484_v25 }
 0x2b8   : > { %2796 = vtanh.f32 %v1076_v56  ;;  %v3487_v56 = vor.u32 %v2656_v12, %v2458_v27 }
 0x2b9   : > { %v1051_v39 = vpop.f32.mrf.mxu2  ;;  %v1064_v20 = vpop.f32.mrf.mxu3 }
 0x2ba   : > { %v1070_v21 = vadd.f32 %v1051_v39, %v1014_v7  ;;  %v1071_v22 = vadd.f32 %v1064_v20, %v1015_v8  ;;  %v1027_v51 = vpop.f32.mrf.mxu0  ;;  %v1040_v23 = vpop.f32.mrf.mxu1  ;;  %v2440_v7 = vld [vmem:[#allocation11 + $0x28] sm:$0xf]  ;;  %v2654_v8 = vld [vmem:[#allocation11 + $0x34] sm:$0xf0]  ;;  %1652 = vmatpush.bf16.msra.mxu3 %v3487_v56  ;;  %1614 = vmatpush.bf16.msra.mxu0 %v3491_v57 }
 0x2bb   : > { %v2416_v51 = vld [vmem:[#allocation11] sm:$0xf]  ;;  %v3495_v23 = vor.u32 %v2651_v36, %v2434_v18  ;;  %v3497_v28 = vor.u32 %v2654_v8, %v2440_v7 }
 0x2bc   : > { %2798 = vtanh.f32 %v1070_v21  ;;  %v1081_v40 = vmul.f32 0.5, %v1071_v22  ;;  %v2652_v21 = vld [vmem:[#allocation11 + $0x2c] sm:$0xf]  ;;  %v2442_v22 = vld [vmem:[#allocation11 + $0x38] sm:$0xf0] }
 0x2bd   : > { %v2795_v26 = vpop.eup %2794  ;;  %v3499_v63 = vor.u32 %v2652_v21, %v2442_v22  ;;  %1627 = vmatpush.bf16.msra.mxu1 %v3495_v23  ;;  %1640 = vmatpush.bf16.msra.mxu2 %v3497_v28 }
 0x2be   : > { %v2797_v50 = vpop.eup %2796  ;;  %v1074_v53 = vmul.f32 0.5, %v2795_v26  ;;  %2800 = vtanh.f32 %v1081_v40  ;;  %v3506_v26 = vor.u32 %v2647_v55, %v2418_v52 }
 0x2bf   : > { %v1078_v2 = vmul.f32 0.5, %v2797_v50  ;;  %1653 = vmatpush.bf16.msra.mxu3 %v3499_v63  ;;  %v3511_v50 = vor.u32 %v2648_v42, %v2426_v49 }
 0x2c0   : > { %v1075_v15 = vadd.f32 0.5, %v1074_v53 }
 0x2c1   : > { %v1079_v44 = vadd.f32 0.5, %v1078_v2  ;;  %v1053_v45 = vpop.f32.mrf.mxu2  ;;  %v1066_v48 = vpop.f32.mrf.mxu3  ;;  %1628 = vmatpush.bf16.msra.mxu1 %v3506_v26  ;;  %1641 = vmatpush.bf16.msra.mxu2 %v3508_v38 }
 0x2c2   : > { %v2799_v47 = vpop.eup %2798  ;;  %v1322_v33 = vpop.f32.mrf.mxu0 }
 0x2c3   : > { %v1085_v39 = vmul.f32 %v1079_v44, %v3413_v19  ;;  %v1086_v20 = vmul.f32 %v2799_v47, %v1075_v15  ;;  %v3502_v19 = vor.u32 %v2649_v31, %v2416_v51  ;;  %1654 = vmatpush.bf16.msra.mxu3 %v3511_v50  ;;  %v1438_v15 = vld [vmem:[#allocation4 + $0x8] sm:$0xff]  ;;  %v1341_v44 = vpop.f32.mrf.mxu1 }
 0x2c4   : > { %v2801_v1 = vpop.eup %2800  ;;  %v1447_v27 = vpack.c.bf16 %v1438_v15, %v1438_v15  ;;  %v1131_v47 = vld [vmem:[%s3696_s6] sm:$0xf] }
 0x2c5   : > { %v1087_v40 = vadd.f32 %v1086_v20, %v1085_v39  ;;  %v1083_v53 = vmul.f32 0.5, %v2801_v1  ;;  %1615 = vmatpush.bf16.msra.mxu0 %v3502_v19  ;;  %1702 = vmatpush.bf16.msrb.mxu1 %v3418_v35  ;;  %v3588_v18 = vperm.slane %v1131_v47, 0  ;;  %v3590_v7 = vperm.slane %v1131_v47, 1 }
 0x2c6   : > { %1715 = vmatpush.bf16.msrb.mxu2 %v3420_v46  ;;  %v3600_v55 = vperm.slane %v1131_v47, 2  ;;  %v3602_v52 = vperm.slane %v1131_v47, 3 }
 0x2c7   : > { %2802 = vtanh.f32 %v1087_v40  ;;  %1094 = vst [vmem:[#allocation5 + $0x8] sm:$0xff] %v1087_v40  ;;  %v1084_v61 = vadd.f32 0.5, %v1083_v53  ;;  %1728 = vmatpush.bf16.msrb.mxu3 %v3423_v5  ;;  %v1323_v1 = vadd.f32 %v1322_v33, %v3588_v18  ;;  %v1342_v40 = vadd.f32 %v1341_v44, %v3590_v7 }
 0x2c9   : > { %1689 = vmatpush.bf16.msrb.mxu0 %v3416_v60  ;;  %1703 = vmatpush.bf16.msrb.mxu1 %v3430_v29  ;;  %v1360_v45 = vpop.f32.mrf.mxu2  ;;  %v1379_v48 = vpop.f32.mrf.mxu3 }
 0x2ca   : > { %1716 = vmatpush.bf16.msrb.mxu2 %v3432_v30  ;;  %v3581_v14 = vpop.f32.mrf.mxu0  ;;  %v1380_v33 = vadd.f32 %v1379_v48, %v3602_v52 }
 0x2cb   : > { %1729 = vmatpush.bf16.msrb.mxu3 %v3435_v41  ;;  %v3583_v36 = vpop.f32.mrf.mxu1 }
 0x2cd   : > { %v2803_v62 = vpop.eup %2802  ;;  %1690 = vmatpush.bf16.msrb.mxu0 %v3428_v10  ;;  %1704 = vmatpush.bf16.msrb.mxu1 %v3444_v16 }
 0x2ce   : > { %v1089_v2 = vmul.f32 %v2803_v62, %v1084_v61  ;;  %1717 = vmatpush.bf16.msrb.mxu2 %v3446_v13 }
 0x2cf   : > { %1730 = vmatpush.bf16.msrb.mxu3 %v3449_v32 }
 0x2d0   : > { %v1090_v11 = vpack.c.bf16 %v1089_v2, %v1089_v2  ;;  %1093 = vst [vmem:[#allocation4] sm:$0xff] %v1089_v2 }
 0x2d1   : > { %1691 = vmatpush.bf16.msrb.mxu0 %v3442_v9  ;;  %1705 = vmatpush.bf16.msrb.mxu1 %v3456_v6  ;;  %v3592_v8 = vpop.f32.mrf.mxu2  ;;  %v3594_v39 = vpop.f32.mrf.mxu3 }
 0x2d2   : > { %1092 = vst [vmem:[#allocation3 + $0xc] sm:$0xf] %v1090_v11  ;;  %1718 = vmatpush.bf16.msrb.mxu2 %v3458_v59 }
 0x2d3   : > { %1731 = vmatpush.bf16.msrb.mxu3 %v3460_v0 }
 0x2d5   : > { %1692 = vmatpush.bf16.msrb.mxu0 %v3453_v58  ;;  %1706 = vmatpush.bf16.msrb.mxu1 %v3470_v43 }
 0x2d6   : > { %1719 = vmatpush.bf16.msrb.mxu2 %v3472_v4 }
 0x2d7   : > { %1732 = vmatpush.bf16.msrb.mxu3 %v3475_v37 }
 0x2d9   : > { %v2614_v12 = vld [vmem:[#allocation3 + $0x8] sm:$0xff]  ;;  %1693 = vmatpush.bf16.msrb.mxu0 %v3468_v34  ;;  %1707 = vmatpush.bf16.msrb.mxu1 %v3482_v3 }
 0x2da   : > { %1326 = vmatmul.bf16.gmra.mxu0 %v2614_v12  ;;  %1345 = vmatmul.bf16.gmra.mxu1 %v2614_v12 }
 0x2db   : > { %1364 = vmatmul.bf16.gmra.mxu2 %v2614_v12  ;;  %1383 = vmatmul.bf16.gmra.mxu3 %v2614_v12  ;;  %v1389_v12 = vpack.c.bf16 %v1342_v40, %v1323_v1 }
 0x2dc   : > { %1720 = vmatpush.bf16.msrb.mxu2 %v3484_v25  ;;  %1733 = vmatpush.bf16.msrb.mxu3 %v3487_v56 }
 0x2dd   : > { %1694 = vmatpush.bf16.msrb.mxu0 %v3479_v54  ;;  %1708 = vmatpush.bf16.msrb.mxu1 %v3495_v23 }
 0x2e0   : > { %1721 = vmatpush.bf16.msrb.mxu2 %v3497_v28  ;;  %1734 = vmatpush.bf16.msrb.mxu3 %v3499_v63 }
 0x2e1   : > { %1695 = vmatpush.bf16.msrb.mxu0 %v3491_v57  ;;  %1709 = vmatpush.bf16.msrb.mxu1 %v3506_v26 }
 0x2e4   : > { %1722 = vmatpush.bf16.msrb.mxu2 %v3508_v38  ;;  %1735 = vmatpush.bf16.msrb.mxu3 %v3511_v50 }
 0x2e5   : > { %1696 = vmatpush.bf16.msrb.mxu0 %v3502_v19 }
 0x2ea   : > { %1616 = vmatmul.bf16.vlgmr.msra.gmra.mxu0 %v1447_v27  ;;  %1629 = vmatmul.bf16.vlgmr.msra.gmra.mxu1 %v1447_v27 }
 0x2eb   : > { %1642 = vmatmul.bf16.vlgmr.msra.gmra.mxu2 %v1447_v27  ;;  %1655 = vmatmul.bf16.vlgmr.msra.gmra.mxu3 %v1447_v27  ;;  %v1361_v27 = vadd.f32 %v1360_v45, %v3600_v55 }
 0x2ec   : > { %1770 = vmatpush.bf16.msra.mxu0 %v3416_v60  ;;  %1783 = vmatpush.bf16.msra.mxu1 %v3418_v35 }
 0x2ed   : > { %1796 = vmatpush.bf16.msra.mxu2 %v3420_v46  ;;  %1809 = vmatpush.bf16.msra.mxu3 %v3423_v5 }
 0x2f0   : > { %1771 = vmatpush.bf16.msra.mxu0 %v3428_v10  ;;  %1784 = vmatpush.bf16.msra.mxu1 %v3430_v29 }
 0x2f1   : > { %1797 = vmatpush.bf16.msra.mxu2 %v3432_v30  ;;  %1810 = vmatpush.bf16.msra.mxu3 %v3435_v41 }
 0x2f4   : > { %1772 = vmatpush.bf16.msra.mxu0 %v3442_v9  ;;  %1785 = vmatpush.bf16.msra.mxu1 %v3444_v16 }
 0x2f5   : > { %1798 = vmatpush.bf16.msra.mxu2 %v3446_v13  ;;  %1811 = vmatpush.bf16.msra.mxu3 %v3449_v32 }
 0x2f8   : > { %1773 = vmatpush.bf16.msra.mxu0 %v3453_v58  ;;  %1786 = vmatpush.bf16.msra.mxu1 %v3456_v6 }
 0x2f9   : > { %1799 = vmatpush.bf16.msra.mxu2 %v3458_v59  ;;  %1812 = vmatpush.bf16.msra.mxu3 %v3460_v0 }
 0x2fc   : > { %1774 = vmatpush.bf16.msra.mxu0 %v3468_v34  ;;  %1787 = vmatpush.bf16.msra.mxu1 %v3470_v43 }
 0x2fd   : > { %1800 = vmatpush.bf16.msra.mxu2 %v3472_v4  ;;  %1813 = vmatpush.bf16.msra.mxu3 %v3475_v37 }
 0x300   : > { %1775 = vmatpush.bf16.msra.mxu0 %v3479_v54  ;;  %1788 = vmatpush.bf16.msra.mxu1 %v3482_v3 }
 0x301   : > { %1801 = vmatpush.bf16.msra.mxu2 %v3484_v25  ;;  %1814 = vmatpush.bf16.msra.mxu3 %v3487_v56 }
 0x304   : > { %1776 = vmatpush.bf16.msra.mxu0 %v3491_v57  ;;  %1789 = vmatpush.bf16.msra.mxu1 %v3495_v23 }
 0x305   : > { %1802 = vmatpush.bf16.msra.mxu2 %v3497_v28  ;;  %1815 = vmatpush.bf16.msra.mxu3 %v3499_v63 }
 0x308   : > { %1777 = vmatpush.bf16.msra.mxu0 %v3502_v19  ;;  %1790 = vmatpush.bf16.msra.mxu1 %v3506_v26 }
 0x309   : > { %1803 = vmatpush.bf16.msra.mxu2 %v3508_v38  ;;  %1816 = vmatpush.bf16.msra.mxu3 %v3511_v50 }
 0x357   : > { %v1327_v20 = vpop.f32.mrf.mxu0  ;;  %v1346_v21 = vpop.f32.mrf.mxu1 }
 0x358   : > { %v1328_v22 = vadd.f32 %v1327_v20, %v3588_v18  ;;  %v1347_v51 = vadd.f32 %v1346_v21, %v3590_v7  ;;  %v1443_v20 = vunpack.c.l.bf16 %v1389_v12  ;;  %v1444_v21 = vunpack.c.h.bf16 %v1389_v12 }
 0x35a   : > { %v3598_v31 = vpack.c.bf16 %v1347_v51, %v1328_v22 }
 0x35c   : > { %3711 = vst [vmem:[#allocation19_spill] sm:$0xff] %v3598_v31 }
 0x35e   : > { %v1365_v17 = vpop.f32.mrf.mxu2  ;;  %v1384_v24 = vpop.f32.mrf.mxu3 }
 0x35f   : > { %v1366_v42 = vadd.f32 %v1365_v17, %v3600_v55  ;;  %v1385_v49 = vadd.f32 %v1384_v24, %v3602_v52  ;;  %v1329_v53 = vpop.f32.mrf.mxu0  ;;  %v1348_v61 = vpop.f32.mrf.mxu1 }
 0x360   : > { %v1330_v62 = vadd.f32 %v1329_v53, %v3588_v18  ;;  %v1349_v2 = vadd.f32 %v1348_v61, %v3590_v7 }
 0x361   : > { %v3610_v11 = vpack.c.bf16 %v1385_v49, %v1366_v42  ;;  %v1390_v49 = vpack.c.bf16 %v1380_v33, %v1361_v27 }
 0x362   : > { %v3612_v15 = vpack.c.bf16 %v1349_v2, %v1330_v62 }
 0x363   : > { %3712 = vst [vmem:[#allocation20_spill] sm:$0xff] %v3610_v11  ;;  %v1445_v45 = vunpack.c.l.bf16 %v1390_v49  ;;  %v1446_v48 = vunpack.c.h.bf16 %v1390_v49 }
 0x364   : > { %3713 = vst [vmem:[#allocation21_spill] sm:$0xff] %v3612_v15 }
 0x366   : > { %v1367_v44 = vpop.f32.mrf.mxu2  ;;  %v1386_v47 = vpop.f32.mrf.mxu3 }
 0x367   : > { %v1368_v22 = vadd.f32 %v1367_v44, %v3600_v55  ;;  %v1387_v51 = vadd.f32 %v1386_v47, %v3602_v52  ;;  %v1617_v17 = vpop.f32.mrf.mxu0  ;;  %v1630_v24 = vpop.f32.mrf.mxu1 }
 0x368   : > { %v1660_v53 = vadd.f32 %v1617_v17, %v1443_v20  ;;  %v1661_v42 = vadd.f32 %v1630_v24, %v1444_v21 }
 0x369   : > { %v3618_v1 = vpack.c.bf16 %v1387_v51, %v1368_v22  ;;  %v1440_v22 = vld [vmem:[#allocation5] sm:$0xff] }
 0x36a   : > { %v1664_v40 = vmul.f32 0.5, %v1660_v53  ;;  %v1668_v61 = vmul.f32 0.5, %v1661_v42 }
 0x36c   : > { %2804 = vtanh.f32 %v1664_v40 }
 0x36d   : > { %2806 = vtanh.f32 %v1668_v61 }
 0x36e   : > { %v1643_v62 = vpop.f32.mrf.mxu2  ;;  %v1656_v2 = vpop.f32.mrf.mxu3 }
 0x36f   : > { %v1662_v12 = vadd.f32 %v1643_v62, %v1445_v45  ;;  %v1663_v15 = vadd.f32 %v1656_v2, %v1446_v48  ;;  %v1619_v44 = vpop.f32.mrf.mxu0  ;;  %v1632_v11 = vpop.f32.mrf.mxu1  ;;  %v3714_v2 = vld [vmem:[#allocation19_spill] sm:$0xff] }
 0x370   : > { %v1766_v44 = vunpack.c.h.bf16 %v3714_v2 }
 0x371   : > { %2808 = vtanh.f32 %v1662_v12  ;;  %v1673_v47 = vmul.f32 0.5, %v1663_v15  ;;  %v1765_v12 = vunpack.c.l.bf16 %v3714_v2 }
 0x372   : > { %v2805_v31 = vpop.eup %2804 }
 0x373   : > { %v2807_v20 = vpop.eup %2806  ;;  %v1666_v21 = vmul.f32 0.5, %v2805_v31  ;;  %2810 = vtanh.f32 %v1673_v47 }
 0x374   : > { %v1670_v27 = vmul.f32 0.5, %v2807_v20 }
 0x375   : > { %v1667_v33 = vadd.f32 0.5, %v1666_v21 }
 0x376   : > { %v1671_v51 = vadd.f32 0.5, %v1670_v27  ;;  %v1645_v17 = vpop.f32.mrf.mxu2  ;;  %v1658_v24 = vpop.f32.mrf.mxu3 }
 0x377   : > { %v2809_v53 = vpop.eup %2808 }
 0x378   : > { %v1677_v42 = vmul.f32 %v1671_v51, %v1440_v22  ;;  %v1678_v49 = vmul.f32 %v2809_v53, %v1667_v33  ;;  %v3715_v51 = vld [vmem:[#allocation20_spill] sm:$0xff] }
 0x379   : > { %v2811_v40 = vpop.eup %2810  ;;  %v1767_v17 = vunpack.c.l.bf16 %v3715_v51  ;;  %v1768_v24 = vunpack.c.h.bf16 %v3715_v51 }
 0x37a   : > { %v3620_v61 = vadd.f32 %v1678_v49, %v1677_v42  ;;  %v1675_v11 = vmul.f32 0.5, %v2811_v40 }
 0x37c   : > { %2812 = vtanh.f32 %v3620_v61  ;;  %v1676_v15 = vadd.f32 0.5, %v1675_v11 }
 0x382   : > { %v2813_v45 = vpop.eup %2812 }
 0x383   : > { %v1681_v48 = vmul.f32 %v2813_v45, %v1676_v15 }
 0x385   : > { %v1688_v31 = vpack.c.bf16 %v1681_v48, %v1681_v48 }
 0x387   : > { %1697 = vmatmul.bf16.vlgmr.msrb.gmra.mxu0 %v1688_v31  ;;  %1710 = vmatmul.bf16.vlgmr.msrb.gmra.mxu1 %v1688_v31 }
 0x388   : > { %1723 = vmatmul.bf16.vlgmr.msrb.gmra.mxu2 %v1688_v31  ;;  %1736 = vmatmul.bf16.vlgmr.msrb.gmra.mxu3 %v1688_v31 }
 0x389   : > { %1851 = vmatpush.bf16.msrb.mxu0 %v3416_v60  ;;  %1864 = vmatpush.bf16.msrb.mxu1 %v3418_v35  ;;  %v1325_v60 = vadd.f32 %v3581_v14, %v3588_v18  ;;  %v1344_v35 = vadd.f32 %v3583_v36, %v3590_v7 }
 0x38a   : > { %1877 = vmatpush.bf16.msrb.mxu2 %v3420_v46  ;;  %1890 = vmatpush.bf16.msrb.mxu3 %v3423_v5  ;;  %v1363_v5 = vadd.f32 %v3592_v8, %v3600_v55 }
 0x38b   : > { %v1391_v46 = vpack.c.bf16 %v1344_v35, %v1325_v60 }
 0x38d   : > { %1852 = vmatpush.bf16.msrb.mxu0 %v3428_v10  ;;  %1865 = vmatpush.bf16.msrb.mxu1 %v3430_v29  ;;  %v1382_v10 = vadd.f32 %v3594_v39, %v3602_v52  ;;  %v1684_v29 = vunpack.c.l.bf16 %v1391_v46 }
 0x38e   : > { %1878 = vmatpush.bf16.msrb.mxu2 %v3432_v30  ;;  %1891 = vmatpush.bf16.msrb.mxu3 %v3435_v41  ;;  %v1685_v30 = vunpack.c.h.bf16 %v1391_v46 }
 0x391   : > { %1853 = vmatpush.bf16.msrb.mxu0 %v3442_v9  ;;  %1866 = vmatpush.bf16.msrb.mxu1 %v3444_v16 }
 0x392   : > { %1879 = vmatpush.bf16.msrb.mxu2 %v3446_v13  ;;  %1892 = vmatpush.bf16.msrb.mxu3 %v3449_v32  ;;  %v1392_v32 = vpack.c.bf16 %v1382_v10, %v1363_v5 }
 0x395   : > { %1854 = vmatpush.bf16.msrb.mxu0 %v3453_v58  ;;  %1867 = vmatpush.bf16.msrb.mxu1 %v3456_v6 }
 0x396   : > { %1880 = vmatpush.bf16.msrb.mxu2 %v3458_v59  ;;  %1893 = vmatpush.bf16.msrb.mxu3 %v3460_v0  ;;  %v1686_v59 = vunpack.c.l.bf16 %v1392_v32  ;;  %v1687_v0 = vunpack.c.h.bf16 %v1392_v32 }
 0x399   : > { %1855 = vmatpush.bf16.msrb.mxu0 %v3468_v34  ;;  %1868 = vmatpush.bf16.msrb.mxu1 %v3470_v43 }
 0x39a   : > { %1881 = vmatpush.bf16.msrb.mxu2 %v3472_v4  ;;  %1894 = vmatpush.bf16.msrb.mxu3 %v3475_v37 }
 0x39d   : > { %1856 = vmatpush.bf16.msrb.mxu0 %v3479_v54  ;;  %1869 = vmatpush.bf16.msrb.mxu1 %v3482_v3 }
 0x39e   : > { %1882 = vmatpush.bf16.msrb.mxu2 %v3484_v25  ;;  %1895 = vmatpush.bf16.msrb.mxu3 %v3487_v56 }
 0x3a1   : > { %1857 = vmatpush.bf16.msrb.mxu0 %v3491_v57  ;;  %1870 = vmatpush.bf16.msrb.mxu1 %v3495_v23 }
 0x3a2   : > { %1883 = vmatpush.bf16.msrb.mxu2 %v3497_v28  ;;  %1896 = vmatpush.bf16.msrb.mxu3 %v3499_v63 }
 0x3a5   : > { %1858 = vmatpush.bf16.msrb.mxu0 %v3502_v19  ;;  %1871 = vmatpush.bf16.msrb.mxu1 %v3506_v26 }
 0x3a6   : > { %1884 = vmatpush.bf16.msrb.mxu2 %v3508_v38  ;;  %1897 = vmatpush.bf16.msrb.mxu3 %v3511_v50 }
 0x404   : > { %v1698_v41 = vpop.f32.mrf.mxu0  ;;  %v1711_v9 = vpop.f32.mrf.mxu1 }
 0x405   : > { %v1741_v16 = vadd.f32 %v1698_v41, %v1684_v29  ;;  %v1742_v13 = vadd.f32 %v1711_v9, %v1685_v30 }
 0x407   : > { %v1745_v58 = vmul.f32 0.5, %v1741_v16  ;;  %v1749_v6 = vmul.f32 0.5, %v1742_v13 }
 0x409   : > { %2814 = vtanh.f32 %v1745_v58 }
 0x40a   : > { %2816 = vtanh.f32 %v1749_v6 }
 0x40b   : > { %v1724_v34 = vpop.f32.mrf.mxu2  ;;  %v1737_v43 = vpop.f32.mrf.mxu3 }
 0x40c   : > { %v1743_v4 = vadd.f32 %v1724_v34, %v1686_v59  ;;  %v1744_v37 = vadd.f32 %v1737_v43, %v1687_v0  ;;  %v1700_v54 = vpop.f32.mrf.mxu0  ;;  %v1713_v3 = vpop.f32.mrf.mxu1  ;;  %v3716_v0 = vld [vmem:[#allocation21_spill] sm:$0xff] }
 0x40d   : > { %v1846_v34 = vunpack.c.l.bf16 %v3716_v0  ;;  %v1847_v43 = vunpack.c.h.bf16 %v3716_v0 }
 0x40e   : > { %2818 = vtanh.f32 %v1743_v4  ;;  %v1754_v25 = vmul.f32 0.5, %v1744_v37 }
 0x40f   : > { %v2815_v56 = vpop.eup %2814 }
 0x410   : > { %v2817_v57 = vpop.eup %2816  ;;  %v1747_v23 = vmul.f32 0.5, %v2815_v56  ;;  %2820 = vtanh.f32 %v1754_v25 }
 0x411   : > { %v1751_v28 = vmul.f32 0.5, %v2817_v57  ;;  %v1848_v57 = vunpack.c.l.bf16 %v3618_v1 }
 0x412   : > { %v1748_v63 = vadd.f32 0.5, %v1747_v23  ;;  %v1849_v23 = vunpack.c.h.bf16 %v3618_v1 }
 0x413   : > { %v1752_v19 = vadd.f32 0.5, %v1751_v28  ;;  %v1726_v26 = vpop.f32.mrf.mxu2  ;;  %v1739_v38 = vpop.f32.mrf.mxu3 }
 0x414   : > { %v2819_v50 = vpop.eup %2818 }
 0x415   : > { %v1758_v14 = vmul.f32 %v1752_v19, %v3620_v61  ;;  %v1759_v36 = vmul.f32 %v2819_v50, %v1748_v63 }
 0x416   : > { %v2821_v18 = vpop.eup %2820 }
 0x417   : > { %v1760_v7 = vadd.f32 %v1759_v36, %v1758_v14  ;;  %v1756_v8 = vmul.f32 0.5, %v2821_v18 }
 0x419   : > { %2822 = vtanh.f32 %v1760_v7  ;;  %v1757_v39 = vadd.f32 0.5, %v1756_v8 }
 0x41f   : > { %v2823_v55 = vpop.eup %2822 }
 0x420   : > { %v1762_v52 = vmul.f32 %v2823_v55, %v1757_v39 }
 0x422   : > { %v1769_v62 = vpack.c.bf16 %v1762_v52, %v1762_v52 }
 0x424   : > { %1778 = vmatmul.bf16.vlgmr.msra.gmra.mxu0 %v1769_v62  ;;  %1791 = vmatmul.bf16.vlgmr.msra.gmra.mxu1 %v1769_v62 }
 0x425   : > { %1804 = vmatmul.bf16.vlgmr.msra.gmra.mxu2 %v1769_v62  ;;  %1817 = vmatmul.bf16.vlgmr.msra.gmra.mxu3 %v1769_v62 }
 0x4a1   : > { %v1779_v47 = vpop.f32.mrf.mxu0  ;;  %v1792_v20 = vpop.f32.mrf.mxu1 }
 0x4a2   : > { %v1822_v21 = vadd.f32 %v1779_v47, %v1765_v12  ;;  %v1823_v27 = vadd.f32 %v1792_v20, %v1766_v44 }
 0x4a4   : > { %v1826_v33 = vmul.f32 0.5, %v1822_v21  ;;  %v1830_v22 = vmul.f32 0.5, %v1823_v27 }
 0x4a6   : > { %2824 = vtanh.f32 %v1826_v33 }
 0x4a7   : > { %2826 = vtanh.f32 %v1830_v22 }
 0x4a8   : > { %v1805_v53 = vpop.f32.mrf.mxu2  ;;  %v1818_v42 = vpop.f32.mrf.mxu3 }
 0x4a9   : > { %v1824_v49 = vadd.f32 %v1805_v53, %v1767_v17  ;;  %v1825_v40 = vadd.f32 %v1818_v42, %v1768_v24  ;;  %v1781_v61 = vpop.f32.mrf.mxu0  ;;  %v1794_v11 = vpop.f32.mrf.mxu1 }
 0x4ab   : > { %2828 = vtanh.f32 %v1824_v49  ;;  %v1835_v15 = vmul.f32 0.5, %v1825_v40 }
 0x4ac   : > { %v2825_v45 = vpop.eup %2824 }
 0x4ad   : > { %v2827_v48 = vpop.eup %2826  ;;  %v1828_v31 = vmul.f32 0.5, %v2825_v45  ;;  %2830 = vtanh.f32 %v1835_v15 }
 0x4ae   : > { %v1832_v60 = vmul.f32 0.5, %v2827_v48 }
 0x4af   : > { %v1829_v35 = vadd.f32 0.5, %v1828_v31 }
 0x4b0   : > { %v1833_v46 = vadd.f32 0.5, %v1832_v60  ;;  %v1807_v5 = vpop.f32.mrf.mxu2  ;;  %v1820_v10 = vpop.f32.mrf.mxu3 }
 0x4b1   : > { %v2829_v29 = vpop.eup %2828 }
 0x4b2   : > { %v1839_v30 = vmul.f32 %v1833_v46, %v1760_v7  ;;  %v1840_v41 = vmul.f32 %v2829_v29, %v1829_v35 }
 0x4b3   : > { %v2831_v9 = vpop.eup %2830 }
 0x4b4   : > { %v1841_v16 = vadd.f32 %v1840_v41, %v1839_v30  ;;  %v1837_v13 = vmul.f32 0.5, %v2831_v9 }
 0x4b6   : > { %2832 = vtanh.f32 %v1841_v16  ;;  %v1838_v32 = vadd.f32 0.5, %v1837_v13 }
 0x4bc   : > { %v2833_v58 = vpop.eup %2832 }
 0x4bd   : > { %v1843_v6 = vmul.f32 %v2833_v58, %v1838_v32 }
 0x4bf   : > { %v1850_v59 = vpack.c.bf16 %v1843_v6, %v1843_v6 }
 0x4c1   : > { %1859 = vmatmul.bf16.vlgmr.msrb.gmra.mxu0 %v1850_v59  ;;  %1872 = vmatmul.bf16.vlgmr.msrb.gmra.mxu1 %v1850_v59 }
 0x4c2   : > { %1885 = vmatmul.bf16.vlgmr.msrb.gmra.mxu2 %v1850_v59  ;;  %1898 = vmatmul.bf16.vlgmr.msrb.gmra.mxu3 %v1850_v59 }
 0x53e   : > { %v1860_v4 = vpop.f32.mrf.mxu0  ;;  %v1873_v37 = vpop.f32.mrf.mxu1 }
 0x53f   : > { %v1903_v54 = vadd.f32 %v1860_v4, %v1846_v34  ;;  %v1904_v3 = vadd.f32 %v1873_v37, %v1847_v43 }
 0x541   : > { %v1907_v25 = vmul.f32 0.5, %v1903_v54  ;;  %v1911_v56 = vmul.f32 0.5, %v1904_v3 }
 0x543   : > { %2834 = vtanh.f32 %v1907_v25 }
 0x544   : > { %2836 = vtanh.f32 %v1911_v56 }
 0x545   : > { %v1886_v28 = vpop.f32.mrf.mxu2  ;;  %v1899_v63 = vpop.f32.mrf.mxu3 }
 0x546   : > { %v1905_v19 = vadd.f32 %v1886_v28, %v1848_v57  ;;  %v1906_v26 = vadd.f32 %v1899_v63, %v1849_v23  ;;  %v1862_v38 = vpop.f32.mrf.mxu0  ;;  %v1875_v50 = vpop.f32.mrf.mxu1 }
 0x548   : > { %2838 = vtanh.f32 %v1905_v19  ;;  %v1916_v14 = vmul.f32 0.5, %v1906_v26 }
 0x549   : > { %v2835_v36 = vpop.eup %2834 }
 0x54a   : > { %v2837_v18 = vpop.eup %2836  ;;  %v1909_v7 = vmul.f32 0.5, %v2835_v36  ;;  %2840 = vtanh.f32 %v1916_v14 }
 0x54b   : > { %v1913_v8 = vmul.f32 0.5, %v2837_v18 }
 0x54c   : > { %v1910_v39 = vadd.f32 0.5, %v1909_v7 }
 0x54d   : > { %v1914_v55 = vadd.f32 0.5, %v1913_v8  ;;  %v1888_v52 = vpop.f32.mrf.mxu2  ;;  %v1901_v62 = vpop.f32.mrf.mxu3 }
 0x54e   : > { %v2839_v2 = vpop.eup %2838 }
 0x54f   : > { %v1920_v12 = vmul.f32 %v1914_v55, %v1841_v16  ;;  %v1921_v1 = vmul.f32 %v2839_v2, %v1910_v39 }
 0x550   : > { %v2841_v44 = vpop.eup %2840 }
 0x551   : > { %v1922_v47 = vadd.f32 %v1921_v1, %v1920_v12  ;;  %v1918_v20 = vmul.f32 0.5, %v2841_v44 }
 0x553   : > { %2842 = vtanh.f32 %v1922_v47  ;;  %1926 = vst [vmem:[#allocation5] sm:$0xff] %v1922_v47  ;;  %v1919_v21 = vadd.f32 0.5, %v1918_v20 }
 0x558   : > { %1930 = sbr.rel (%p2542_p9) target bundleno = 1539 (0x603), region = 80 }
 0x559   : > { %v2843_v27 = vpop.eup %2842 }
 0x55a   : > { %v1924_v33 = vmul.f32 %v2843_v27, %v1919_v21 }
 0x55c   : > { %1925 = vst [vmem:[#allocation4 + $0x8] sm:$0xff] %v1924_v33 }
 0x55d   : > { %v2686_v22 = vld [vmem:[#allocation12 + $0x38] sm:$0xff]  ;;  %v2685_v51 = vld [vmem:[#allocation12 + $0x30] sm:$0xff]  ;;  %v2684_v17 = vld [vmem:[#allocation12 + $0x28] sm:$0xff]  ;;  %v1931_v61 = vpack.c.bf16 %v1924_v33, %v1924_v33 }
 0x55e   : > { %2000 = vmatpush.bf16.msra.mxu0 %v2686_v22  ;;  %v2683_v24 = vld [vmem:[#allocation12 + $0x20] sm:$0xff]  ;;  %v2682_v53 = vld [vmem:[#allocation12 + $0x18] sm:$0xff]  ;;  %v2681_v42 = vld [vmem:[#allocation12 + $0x10] sm:$0xff] }
 0x55f   : > { %v2680_v49 = vld [vmem:[#allocation12 + $0x8] sm:$0xff]  ;;  %v2679_v40 = vld [vmem:[#allocation12] sm:$0xff] }
 0x560   : > { %v2844_v11 = vld [vmem:[%s3698_s8] ss:$0 sm:$0xff] }
 0x562   : > { %2001 = vmatpush.bf16.msra.mxu0 %v2685_v51 }
 0x566   : > { %2002 = vmatpush.bf16.msra.mxu0 %v2684_v17 }
 0x56a   : > { %2003 = vmatpush.bf16.msra.mxu0 %v2683_v24 }
 0x56e   : > { %2004 = vmatpush.bf16.msra.mxu0 %v2682_v53 }
 0x572   : > { %2005 = vmatpush.bf16.msra.mxu0 %v2681_v42 }
 0x576   : > { %2006 = vmatpush.bf16.msra.mxu0 %v2680_v49 }
 0x57a   : > { %2007 = vmatpush.bf16.msra.mxu0 %v2679_v40 }
 0x57d   : > { %2008 = vmatmul.bf16.vlgmr.msra.gmra.mxu0 %v1931_v61 }
 0x5fa   : > { %v2009_v15 = vpop.f32.mrf.mxu0 }
 0x5fb   : > { %v2010_v45 = vadd.f32 %v2844_v11, %v2009_v15 }
 0x5fd   : > { %2013 = vst [vmem:[#allocation14] sm:$0xff] %v2010_v45 }
 0x602   : > { %v2011_v48 = vpop.f32.mrf.mxu0 }
 0x603 PF: > { %s3717_s15 = sadd.s32 4294967295, %s3031_s11   ;;  %s2024_s19 = sshll.u32 %s3699_s9, 4  ;;  %s2025_s19 = int_to_ptr.hbm [resolvable:$true] %s2024_s19 }
 0x604   : > { %p2728_p10 = scmp.eq.s32.totalorder %s3717_s15, 1  ;;  %s3042_s24 = smov [#allocation14]  }
 0x605   : > { %s2022_s25 = sshll.u32 %s3042_s24, 4  ;;  %s2023_s25 = int_to_ptr.vmem [resolvable:$true] %s2022_s25 }
 0x606   : > { %2704 = dma.vmem_to_hbm [thread:$0]  (%p2728_p10), %s2023_s25, 128, %s2025_s19, [#allocation8]  }
 0x607   : > { %3018 = dma.done.wait (%p2728_p10), [#allocation8], 128  }
 0x608   : > { %3020 = vsyncadd (%p2728_p10), [#allocation8], 4294967168 }
 0x609 PF: > { %s23_s11 = sadd.s32 1, %s3031_s11   ;;  %s3718_s30 = smov %s3027_s10 }
 0x60a   : > { %p20_p11 = scmp.ge.s32.totalorder %s23_s11, 4   ;;  %s3719_s10 = smov %s3721_s21 }
 0x60c   :  { %22 = sbr.rel (!%p20_p11) target bundleno = 8 (0x8), region = 117 }
 0x611   :  { %2038 = vsyncpa [#allocation7], 1 }
 0x612   :  { %2040 = vsyncpa [#allocation7 + $0x1], 1 }
 0x613   :  { %2041 = vsyncpa [#allocation10], 1 }
 0x614   :  { %2042 = vsyncpa [#allocation13], 1 }
 0x615   :  { %2043 = vsyncpa [#allocation8], 1 }
 0x616   :  { %2045 = vsyncpa [#allocation8 + $0x1], 1 }

// kernel: tpu_custom_call.1
= control target key start
LH: loop header
LB: loop body
LE: loop exit
PB: predicated region body
PF: predicated region fallthrough
CT: control target
= control target key end

     0   :  { %s3690_s0 = inlined_call_operand.vmem [shape: bf16[8,8,4], index: 0, kind: input, shape index: {}]   ;;  %s3691_s1 = inlined_call_operand.vmem [shape: bf16[4,512], index: 1, kind: input, shape index: {}]   ;;  %s3692_s2 = inlined_call_operand.hbm [shape: bf16[128,512], index: 2, kind: input, shape index: {}]   ;;  %s3693_s3 = inlined_call_operand.vmem [shape: f32[1,512], index: 3, kind: input, shape index: {}]   ;;  %s3694_s4 = inlined_call_operand.hbm [shape: bf16[128,512], index: 4, kind: input, shape index: {}]   ;;  %s3695_s5 = inlined_call_operand.hbm [shape: bf16[128,512], index: 5, kind: input, shape index: {}]   ;;  %s3696_s6 = inlined_call_operand.vmem [shape: f32[1,512], index: 6, kind: input, shape index: {}]   ;;  %s3697_s7 = inlined_call_operand.hbm [shape: bf16[128,128], index: 7, kind: input, shape index: {}]   ;;  %s3698_s8 = inlined_call_operand.vmem [shape: f32[1,128], index: 8, kind: input, shape index: {}]   ;;  %s3699_s9 = inlined_call_operand.hbm [shape: f32[8,128], index: 9, kind: output, shape index: {}]  }
   0x1   :  { %3704 = sst [smem:[#allocation22_spill]] %s3692_s2 }
   0x2   :  { %3705 = sst [smem:[#allocation23_spill]] %s3694_s4 }
   0x3   :  { %14 = vsyncpa [#allocation7], 0 }
   0x4   :  { %15 = vsyncpa [#allocation10], 0 }
   0x5   :  { %16 = vsyncpa [#allocation13], 0 }
   0x6   :  { %17 = vsyncpa [#allocation8], 0  ;;  %s3093_s30 = smov 0   ;;  %s3095_s10 = smov 0  }
   0x7   :  { %s3097_s11 = smov 0  }
   0x8 LB: > { %s3700_s12 = sadd.s32 4294967295, %s3031_s11   ;;  %p2120_p0 = scmp.ge.s32.totalorder %s3031_s11, 1  ;;  %s3031_s11 = sphi %s3097_s11, %s23_s11   ;;  %s3027_s10 = sphi %s3095_s10, %s3719_s10   ;;  %s3023_s30 = sphi %s3093_s30, %s3718_s30  }
   0x9   : > { %p262_p1 = scmp.lt.s32.totalorder %s3031_s11, 3  ;;  %p3113_p2 = scmp.eq.s32.totalorder %s3700_s12, 0 }
   0xa   : > { %s3707_s4 = sld [smem:[#allocation23_spill]]  ;;  %s3033_s18 = smov [#allocation9]  }
   0xb   : > { %p3120_p3 = pnand %p2120_p0, %p262_p1  ;;  %s295_s19 = sshll.u32 %s3033_s18, 4  ;;  %s296_s19 = int_to_ptr.vmem [resolvable:$true] %s295_s19 }
   0xc   : > { %s32_s21 = sadd.s32 1, %s3027_s10  ;;  %s3034_s22 = smov 256  }
   0xd   : > { %p2707_p4 = pneg %p3120_p3  ;;  %p33_p6 = scmp.ge.s32.totalorder %s32_s21, 2 }
   0xe   : > { %s3035_s23 = smov 16   ;;  %s3710_s2 = sld [smem:[#allocation22_spill]] }
   0xf   : > { %p3128_p5 = pnand %p3113_p2, %p2707_p4  ;;  %s3721_s21 = smov (%p33_p6, %s32_s21), 0 }
  0x10   : > { %s293_s16 = sshll.u32 %s3707_s4, 4  ;;  %s3036_s27 = smov [#allocation6]   ;;  %s294_s16 = int_to_ptr.hbm [resolvable:$true] %s293_s16 }
  0x11   : > { %2713 = dma.hbm_to_vmem [thread:$0]  (!%p3128_p5), %s294_s16, 4096, %s296_s19, [#allocation10], %s3034_s22, %s3034_s22, %s3035_s23  }
  0x12   : > { %s278_s28 = sshll.u32 %s3036_s27, 4  ;;  %s307_s15 = sshll.u32 %s3695_s5, 4  ;;  %s279_s28 = int_to_ptr.vmem [resolvable:$true] %s278_s28  ;;  %s308_s15 = int_to_ptr.hbm [resolvable:$true] %s307_s15 }
  0x13   : > { %s3037_s18 = smov [#allocation11]   ;;  %s324_s4 = sshll.u32 %s3697_s7, 4  ;;  %s325_s4 = int_to_ptr.hbm [resolvable:$true] %s324_s4 }
  0x14   : > { %s276_s26 = sshll.u32 %s3710_s2, 4  ;;  %s309_s16 = sshll.u32 %s3037_s18, 4  ;;  %s277_s26 = int_to_ptr.hbm [resolvable:$true] %s276_s26  ;;  %s310_s16 = int_to_ptr.vmem [resolvable:$true] %s309_s16 }
  0x15   : > { %2710 = dma.hbm_to_vmem [thread:$0]  (!%p3128_p5), %s277_s26, 4096, %s279_s28, [#allocation7], %s3034_s22, %s3034_s22, %s3035_s23  }
  0x16   : > { %2716 = dma.hbm_to_vmem [thread:$0]  (!%p3128_p5), %s308_s15, 4096, %s310_s16, [#allocation10], %s3034_s22, %s3034_s22, %s3035_s23  }
  0x17   : > { %s3038_s24 = smov [#allocation12]   ;;  %s3039_s27 = smov 64  }
  0x18   : > { %s326_s25 = sshll.u32 %s3038_s24, 4  ;;  %s3040_s2 = smov 4   ;;  %s327_s25 = int_to_ptr.vmem [resolvable:$true] %s326_s25 }
  0x19   : > { %2719 = dma.hbm_to_vmem [thread:$0]  (!%p3128_p5), %s325_s4, 1024, %s327_s25, [#allocation13], %s3039_s27, %s3039_s27, %s3040_s2  }
  0x1a   : > { %357 = sbr.rel (%p3120_p3) target bundleno = 1545 (0x609), region = 56 }
  0x1f   : > { %3006 = dma.done.wait (%p3113_p2), [#allocation7], 4096  }
  0x20   : > { %3008 = vsyncadd (%p3113_p2), [#allocation7], 4294963200 }
  0x21   : > { %3010 = dma.done.wait (%p3113_p2), [#allocation10], 8192  }
  0x22   : > { %3012 = vsyncadd (%p3113_p2), [#allocation10], 4294959104 }
  0x23   : > { %3014 = dma.done.wait (%p3113_p2), [#allocation13], 1024  }
  0x24   : > { %3016 = vsyncadd (%p3113_p2), [#allocation13], 4294966272  ;;  %s2131_s2 = sshll.u32 %s3023_s30, 2  ;;  %p2133_p8 = scmp.ne.s32.totalorder %s3023_s30, 0 }
  0x25   : > { %p408_p7 = scmp.lt.s32.totalorder %s2131_s2, 7 }
  0x26   : > { %420 = sbr.rel (%p2133_p8) target bundleno = 48 (0x30), region = 76 }
  0x27   : > { %s3723_s2 = smov (!%p408_p7, %s2131_s2), 7 }
  0x28   : > { %s2132_s4 = sshll.u32 %s3723_s2, 2 }
  0x29   : > { %s3170_s20 = scalar_lea.vmem %s3690_s0, %s2132_s4 }
  0x2b   : > { %v3041_v0 = vmov 0.0  }
  0x2c   : > { %421 = vst [vmem:[#allocation4] sm:$0xff] %v3041_v0 }
  0x2d   : > { %422 = vst [vmem:[#allocation4 + $0x8] sm:$0xff] %v3041_v0 }
  0x2e   : > { %423 = vst [vmem:[#allocation5 + $0x8] sm:$0xff] %v3041_v0 }
  0x2f   : > { %424 = vst [vmem:[#allocation5] sm:$0xff] %v3041_v0 }
  0x30 PF: > { %v429_v1 = vld [vmem:[%s3691_s1] sm:$0xff]  ;;  %v2264_v2 = vld [vmem:[#allocation6 + $0xe0] sm:$0xf]  ;;  %v2611_v3 = vld [vmem:[#allocation6 + $0xec] sm:$0xf0]  ;;  %vm463_vm0 = vcmask 1041408  }
  0x31   : > { %451 = vst [vmem:[#allocation1] ss:$4 sm:$0xff] %v429_v1  ;;  %v2609_v4 = vld [vmem:[#allocation6 + $0xe4] sm:$0xf]  ;;  %v2266_v5 = vld [vmem:[#allocation6 + $0xf0] sm:$0xf0]  ;;  %v3176_v10 = vor.u32 %v2611_v3, %v2264_v2 }
  0x32   : > { %v2272_v6 = vld [vmem:[#allocation6 + $0xe8] sm:$0xf]  ;;  %v2612_v7 = vld [vmem:[#allocation6 + $0xf4] sm:$0xf0]  ;;  %v2610_v8 = vld [vmem:[#allocation6 + $0xec] sm:$0xf]  ;;  %v3178_v17 = vor.u32 %v2609_v4, %v2266_v5 }
  0x33   : > { %v2274_v9 = vld [vmem:[#allocation6 + $0xf8] sm:$0xf0]  ;;  %v2248_v11 = vld [vmem:[#allocation6 + $0xc0] sm:$0xf]  ;;  %v2607_v12 = vld [vmem:[#allocation6 + $0xcc] sm:$0xf0]  ;;  %v3188_v26 = vor.u32 %v2612_v7, %v2272_v6 }
  0x34   : > { %v2605_v13 = vld [vmem:[#allocation6 + $0xc4] sm:$0xf]  ;;  %v2250_v14 = vld [vmem:[#allocation6 + $0xd0] sm:$0xf0]  ;;  %v2579_v21 = vld [vmem:[%s3170_s20] sm:$0xff]  ;;  %vm456_vm1 = vcmask 31744   ;;  %v3184_v24 = vor.u32 %v2610_v8, %v2274_v9  ;;  %v3191_v29 = vor.u32 %v2607_v12, %v2248_v11 }
  0x35   : > { %v2606_v27 = vld [vmem:[#allocation6 + $0xcc] sm:$0xf]  ;;  %v2258_v28 = vld [vmem:[#allocation6 + $0xd8] sm:$0xf0]  ;;  %v3193_v30 = vor.u32 %v2605_v13, %v2250_v14  ;;  %v2256_v31 = vld [vmem:[#allocation6 + $0xc8] sm:$0xf] }
  0x36   : > { %v2608_v32 = vld [vmem:[#allocation6 + $0xd4] sm:$0xf0]  ;;  %v2232_v33 = vld [vmem:[#allocation6 + $0xa0] sm:$0xf]  ;;  %v2603_v34 = vld [vmem:[#allocation6 + $0xac] sm:$0xf0]  ;;  %v3199_v37 = vor.u32 %v2606_v27, %v2258_v28 }
  0x37   : > { %v2601_v35 = vld [vmem:[#allocation6 + $0xa4] sm:$0xf]  ;;  %v2234_v36 = vld [vmem:[#allocation6 + $0xb0] sm:$0xf0]  ;;  %v3203_v38 = vor.u32 %v2608_v32, %v2256_v31  ;;  %v2602_v39 = vld [vmem:[#allocation6 + $0xac] sm:$0xf]  ;;  %v3207_v41 = vor.u32 %v2603_v34, %v2232_v33 }
  0x38   : > { %v452_v15 = vld.sshfl [vmem:[#allocation1] sm:$0xff pattern:$0x73625140]  ;;  %v453_v16 = vld.sshfl [vmem:[#allocation1 + $0x8] sm:$0xff pattern:$0x73625140]  ;;  %v3209_v42 = vor.u32 %v2601_v35, %v2234_v36 }
  0x39   : > { %v464_v18 = vsel %vm463_vm0, %v452_v15, 0  ;;  %v466_v19 = vsel %vm463_vm0, %v453_v16, 0  ;;  %v454_v20 = vld.sshfl [vmem:[#allocation1 + $0x10] sm:$0xff pattern:$0x73625140]  ;;  %v2580_v63 = vld [vmem:[%s3170_s20 + $0x8] sm:$0xff] }
  0x3a   : > { %479 = vmatpush.bf16.msra.mxu0 %v464_v18  ;;  %498 = vmatpush.bf16.msra.mxu1 %v466_v19  ;;  %v468_v22 = vsel %vm463_vm0, %v454_v20, 0  ;;  %v455_v23 = vld.sshfl [vmem:[#allocation1 + $0x18] sm:$0xff pattern:$0x73625140]  ;;  %v2242_v40 = vld [vmem:[#allocation6 + $0xb8] sm:$0xf0] }
  0x3b   : > { %517 = vmatpush.bf16.msra.mxu2 %v468_v22  ;;  %v470_v25 = vsel %vm463_vm0, %v455_v23, 0  ;;  %v2240_v43 = vld [vmem:[#allocation6 + $0xa8] sm:$0xf]  ;;  %v2604_v44 = vld [vmem:[#allocation6 + $0xb4] sm:$0xf0]  ;;  %v3212_v49 = vor.u32 %v2602_v39, %v2242_v40  ;;  %p2542_p9 = scmp.ne.s32.totalorder %s3023_s30, 1 }
  0x3c   : > { %536 = vmatpush.bf16.msra.mxu3 %v470_v25  ;;  %v2216_v45 = vld [vmem:[#allocation6 + $0x80] sm:$0xf]  ;;  %v2599_v46 = vld [vmem:[#allocation6 + $0x8c] sm:$0xf0]  ;;  %v2597_v47 = vld [vmem:[#allocation6 + $0x84] sm:$0xf]  ;;  %v3215_v50 = vor.u32 %v2604_v44, %v2240_v43 }
  0x3d   : > { %2142 = vmatmul.msk.bf16.vlgmr.msra.gmra.mxu0 %vm456_vm1, %v2579_v21  ;;  %2144 = vmatmul.msk.bf16.vlgmr.msra.gmra.mxu1 %vm456_vm1, %v2579_v21  ;;  %v2218_v48 = vld [vmem:[#allocation6 + $0x90] sm:$0xf0]  ;;  %v2598_v51 = vld [vmem:[#allocation6 + $0x8c] sm:$0xf]  ;;  %v2226_v52 = vld [vmem:[#allocation6 + $0x98] sm:$0xf0]  ;;  %v3219_v53 = vor.u32 %v2599_v46, %v2216_v45 }
  0x3e   : > { %765 = vmatpush.bf16.msrb.mxu0 %v3176_v10  ;;  %778 = vmatpush.bf16.msrb.mxu1 %v3178_v17  ;;  %v3221_v54 = vor.u32 %v2597_v47, %v2218_v48  ;;  %v2224_v55 = vld [vmem:[#allocation6 + $0x88] sm:$0xf]  ;;  %v2600_v56 = vld [vmem:[#allocation6 + $0x94] sm:$0xf0]  ;;  %v2200_v57 = vld [vmem:[#allocation6 + $0x60] sm:$0xf]  ;;  %v3224_v61 = vor.u32 %v2598_v51, %v2226_v52 }
  0x3f   : > { %2146 = vmatmul.msk.bf16.vlgmr.msra.gmra.mxu2 %vm456_vm1, %v2579_v21  ;;  %2148 = vmatmul.msk.bf16.vlgmr.msra.gmra.mxu3 %vm456_vm1, %v2579_v21  ;;  %v2595_v58 = vld [vmem:[#allocation6 + $0x6c] sm:$0xf0]  ;;  %v2593_v59 = vld [vmem:[#allocation6 + $0x64] sm:$0xf]  ;;  %v2202_v60 = vld [vmem:[#allocation6 + $0x70] sm:$0xf0]  ;;  %v3227_v62 = vor.u32 %v2600_v56, %v2224_v55 }
  0x40   : > { %804 = vmatpush.bf16.msrb.mxu3 %v3184_v24  ;;  %791 = vmatpush.bf16.msrb.mxu2 %v3188_v26  ;;  %v2594_v0 = vld [vmem:[#allocation6 + $0x6c] sm:$0xf]  ;;  %v2210_v1 = vld [vmem:[#allocation6 + $0x78] sm:$0xf0]  ;;  %v3232_v2 = vor.u32 %v2595_v58, %v2200_v57  ;;  %v3234_v3 = vor.u32 %v2593_v59, %v2202_v60  ;;  %v2208_v4 = vld [vmem:[#allocation6 + $0x68] sm:$0xf] }
  0x41   : > { %v2596_v5 = vld [vmem:[#allocation6 + $0x74] sm:$0xf0]  ;;  %v2184_v6 = vld [vmem:[#allocation6 + $0x40] sm:$0xf]  ;;  %v2591_v7 = vld [vmem:[#allocation6 + $0x4c] sm:$0xf0]  ;;  %v3237_v11 = vor.u32 %v2594_v0, %v2210_v1 }
  0x42   : > { %766 = vmatpush.bf16.msrb.mxu0 %v3191_v29  ;;  %779 = vmatpush.bf16.msrb.mxu1 %v3193_v30  ;;  %v2589_v8 = vld [vmem:[#allocation6 + $0x44] sm:$0xf]  ;;  %v2186_v9 = vld [vmem:[#allocation6 + $0x50] sm:$0xf0]  ;;  %v3240_v12 = vor.u32 %v2596_v5, %v2208_v4  ;;  %v2590_v13 = vld [vmem:[#allocation6 + $0x4c] sm:$0xf]  ;;  %v3244_v15 = vor.u32 %v2591_v7, %v2184_v6 }
  0x43   : > { %v2194_v14 = vld [vmem:[#allocation6 + $0x58] sm:$0xf0]  ;;  %v3246_v16 = vor.u32 %v2589_v8, %v2186_v9  ;;  %v2192_v18 = vld [vmem:[#allocation6 + $0x48] sm:$0xf]  ;;  %v2592_v19 = vld [vmem:[#allocation6 + $0x54] sm:$0xf0] }
  0x44   : > { %805 = vmatpush.bf16.msrb.mxu3 %v3199_v37  ;;  %792 = vmatpush.bf16.msrb.mxu2 %v3203_v38  ;;  %v2168_v20 = vld [vmem:[#allocation6 + $0x20] sm:$0xf]  ;;  %v2587_v21 = vld [vmem:[#allocation6 + $0x2c] sm:$0xf0]  ;;  %v2585_v22 = vld [vmem:[#allocation6 + $0x24] sm:$0xf]  ;;  %v3252_v25 = vor.u32 %v2590_v13, %v2194_v14  ;;  %v3256_v27 = vor.u32 %v2592_v19, %v2192_v18 }
  0x45   : > { %v2170_v23 = vld [vmem:[#allocation6 + $0x30] sm:$0xf0]  ;;  %v2586_v28 = vld [vmem:[#allocation6 + $0x2c] sm:$0xf]  ;;  %v2178_v31 = vld [vmem:[#allocation6 + $0x38] sm:$0xf0]  ;;  %v3260_v32 = vor.u32 %v2587_v21, %v2168_v20 }
  0x46   : > { %767 = vmatpush.bf16.msrb.mxu0 %v3207_v41  ;;  %780 = vmatpush.bf16.msrb.mxu1 %v3209_v42  ;;  %v3262_v33 = vor.u32 %v2585_v22, %v2170_v23  ;;  %v2176_v34 = vld [vmem:[#allocation6 + $0x28] sm:$0xf]  ;;  %v2588_v35 = vld [vmem:[#allocation6 + $0x34] sm:$0xf0]  ;;  %v2152_v36 = vld [vmem:[#allocation6] sm:$0xf]  ;;  %v3265_v44 = vor.u32 %v2586_v28, %v2178_v31 }
  0x47   : > { %v2583_v39 = vld [vmem:[#allocation6 + $0xc] sm:$0xf0]  ;;  %v2581_v40 = vld [vmem:[#allocation6 + $0x4] sm:$0xf]  ;;  %v2154_v43 = vld [vmem:[#allocation6 + $0x10] sm:$0xf0]  ;;  %v3268_v45 = vor.u32 %v2588_v35, %v2176_v34 }
  0x48   : > { %806 = vmatpush.bf16.msrb.mxu3 %v3212_v49  ;;  %793 = vmatpush.bf16.msrb.mxu2 %v3215_v50  ;;  %v2582_v46 = vld [vmem:[#allocation6 + $0xc] sm:$0xf]  ;;  %v2162_v47 = vld [vmem:[#allocation6 + $0x18] sm:$0xf0]  ;;  %v3272_v48 = vor.u32 %v2583_v39, %v2152_v36  ;;  %v3274_v51 = vor.u32 %v2581_v40, %v2154_v43  ;;  %v2160_v52 = vld [vmem:[#allocation6 + $0x8] sm:$0xf] }
  0x49   : > { %v2584_v55 = vld [vmem:[#allocation6 + $0x14] sm:$0xf0]  ;;  %v3277_v56 = vor.u32 %v2582_v46, %v2162_v47  ;;  %v596_v57 = vld [vmem:[#allocation4] sm:$0xff]  ;;  %v430_v0 = vld [vmem:[%s3693_s3] sm:$0xf] }
  0x4a   : > { %768 = vmatpush.bf16.msrb.mxu0 %v3219_v53  ;;  %781 = vmatpush.bf16.msrb.mxu1 %v3221_v54  ;;  %v3280_v58 = vor.u32 %v2584_v55, %v2160_v52  ;;  %v604_v59 = vpack.c.bf16 %v596_v57, %v596_v57  ;;  %v432_v1 = vperm.slane %v430_v0, 0  ;;  %v433_v5 = vperm.slane %v430_v0, 1 }
  0x4b   : > { %v434_v18 = vperm.slane %v430_v0, 2  ;;  %v435_v19 = vperm.slane %v430_v0, 3 }
  0x4c   : > { %807 = vmatpush.bf16.msrb.mxu3 %v3224_v61  ;;  %794 = vmatpush.bf16.msrb.mxu2 %v3227_v62 }
  0x4d   : > { %2143 = vmatmul.msk.bf16.gmra.mxu0 %vm456_vm1, %v2580_v63  ;;  %2145 = vmatmul.msk.bf16.gmra.mxu1 %vm456_vm1, %v2580_v63 }
  0x4e   : > { %769 = vmatpush.bf16.msrb.mxu0 %v3232_v2  ;;  %782 = vmatpush.bf16.msrb.mxu1 %v3234_v3 }
  0x4f   : > { %2147 = vmatmul.msk.bf16.gmra.mxu2 %vm456_vm1, %v2580_v63  ;;  %2149 = vmatmul.msk.bf16.gmra.mxu3 %vm456_vm1, %v2580_v63 }
  0x50   : > { %808 = vmatpush.bf16.msrb.mxu3 %v3237_v11  ;;  %795 = vmatpush.bf16.msrb.mxu2 %v3240_v12 }
  0x52   : > { %770 = vmatpush.bf16.msrb.mxu0 %v3244_v15  ;;  %783 = vmatpush.bf16.msrb.mxu1 %v3246_v16 }
  0x54   : > { %809 = vmatpush.bf16.msrb.mxu3 %v3252_v25  ;;  %796 = vmatpush.bf16.msrb.mxu2 %v3256_v27 }
  0x56   : > { %771 = vmatpush.bf16.msrb.mxu0 %v3260_v32  ;;  %784 = vmatpush.bf16.msrb.mxu1 %v3262_v33 }
  0x58   : > { %810 = vmatpush.bf16.msrb.mxu3 %v3265_v44  ;;  %797 = vmatpush.bf16.msrb.mxu2 %v3268_v45 }
  0x5a   : > { %772 = vmatpush.bf16.msrb.mxu0 %v3272_v48  ;;  %785 = vmatpush.bf16.msrb.mxu1 %v3274_v51 }
  0x5c   : > { %811 = vmatpush.bf16.msrb.mxu3 %v3277_v56  ;;  %798 = vmatpush.bf16.msrb.mxu2 %v3280_v58 }
  0x5d   : > { %773 = vmatmul.bf16.vlgmr.msrb.gmra.mxu0 %v604_v59  ;;  %786 = vmatmul.bf16.vlgmr.msrb.gmra.mxu1 %v604_v59 }
  0x5e   : > { %848 = vmatpush.bf16.msra.mxu0 %v3176_v10  ;;  %861 = vmatpush.bf16.msra.mxu1 %v3178_v17 }
  0x5f   : > { %799 = vmatmul.bf16.vlgmr.msrb.gmra.mxu2 %v604_v59  ;;  %812 = vmatmul.bf16.vlgmr.msrb.gmra.mxu3 %v604_v59 }
  0x60   : > { %887 = vmatpush.bf16.msra.mxu3 %v3184_v24  ;;  %874 = vmatpush.bf16.msra.mxu2 %v3188_v26 }
  0x62   : > { %849 = vmatpush.bf16.msra.mxu0 %v3191_v29  ;;  %862 = vmatpush.bf16.msra.mxu1 %v3193_v30 }
  0x64   : > { %875 = vmatpush.bf16.msra.mxu2 %v3203_v38  ;;  %888 = vmatpush.bf16.msra.mxu3 %v3199_v37 }
  0x66   : > { %850 = vmatpush.bf16.msra.mxu0 %v3207_v41  ;;  %863 = vmatpush.bf16.msra.mxu1 %v3209_v42 }
  0x68   : > { %876 = vmatpush.bf16.msra.mxu2 %v3215_v50  ;;  %889 = vmatpush.bf16.msra.mxu3 %v3212_v49 }
  0x6a   : > { %851 = vmatpush.bf16.msra.mxu0 %v3219_v53  ;;  %864 = vmatpush.bf16.msra.mxu1 %v3221_v54 }
  0x6c   : > { %877 = vmatpush.bf16.msra.mxu2 %v3227_v62  ;;  %890 = vmatpush.bf16.msra.mxu3 %v3224_v61 }
  0x6e   : > { %852 = vmatpush.bf16.msra.mxu0 %v3232_v2  ;;  %865 = vmatpush.bf16.msra.mxu1 %v3234_v3 }
  0x70   : > { %878 = vmatpush.bf16.msra.mxu2 %v3240_v12  ;;  %891 = vmatpush.bf16.msra.mxu3 %v3237_v11 }
  0x72   : > { %853 = vmatpush.bf16.msra.mxu0 %v3244_v15  ;;  %866 = vmatpush.bf16.msra.mxu1 %v3246_v16 }
  0x74   : > { %879 = vmatpush.bf16.msra.mxu2 %v3256_v27  ;;  %892 = vmatpush.bf16.msra.mxu3 %v3252_v25 }
  0x76   : > { %854 = vmatpush.bf16.msra.mxu0 %v3260_v32  ;;  %867 = vmatpush.bf16.msra.mxu1 %v3262_v33 }
  0x78   : > { %880 = vmatpush.bf16.msra.mxu2 %v3268_v45  ;;  %893 = vmatpush.bf16.msra.mxu3 %v3265_v44 }
  0x7a   : > { %855 = vmatpush.bf16.msra.mxu0 %v3272_v48  ;;  %868 = vmatpush.bf16.msra.mxu1 %v3274_v51 }
  0x7c   : > { %881 = vmatpush.bf16.msra.mxu2 %v3280_v58  ;;  %894 = vmatpush.bf16.msra.mxu3 %v3277_v56 }
  0x7e   : > { %932 = vmatpush.bf16.msrb.mxu0 %v3176_v10  ;;  %945 = vmatpush.bf16.msrb.mxu1 %v3178_v17 }
  0x80   : > { %958 = vmatpush.bf16.msrb.mxu2 %v3188_v26  ;;  %971 = vmatpush.bf16.msrb.mxu3 %v3184_v24 }
  0x82   : > { %933 = vmatpush.bf16.msrb.mxu0 %v3191_v29  ;;  %946 = vmatpush.bf16.msrb.mxu1 %v3193_v30 }
  0x84   : > { %959 = vmatpush.bf16.msrb.mxu2 %v3203_v38  ;;  %972 = vmatpush.bf16.msrb.mxu3 %v3199_v37 }
  0x86   : > { %934 = vmatpush.bf16.msrb.mxu0 %v3207_v41  ;;  %947 = vmatpush.bf16.msrb.mxu1 %v3209_v42 }
  0x88   : > { %960 = vmatpush.bf16.msrb.mxu2 %v3215_v50  ;;  %973 = vmatpush.bf16.msrb.mxu3 %v3212_v49 }
  0x8a   : > { %935 = vmatpush.bf16.msrb.mxu0 %v3219_v53  ;;  %948 = vmatpush.bf16.msrb.mxu1 %v3221_v54 }
  0x8c   : > { %961 = vmatpush.bf16.msrb.mxu2 %v3227_v62  ;;  %974 = vmatpush.bf16.msrb.mxu3 %v3224_v61 }
  0x8e   : > { %936 = vmatpush.bf16.msrb.mxu0 %v3232_v2  ;;  %949 = vmatpush.bf16.msrb.mxu1 %v3234_v3 }
  0x90   : > { %962 = vmatpush.bf16.msrb.mxu2 %v3240_v12  ;;  %975 = vmatpush.bf16.msrb.mxu3 %v3237_v11 }
  0x92   : > { %937 = vmatpush.bf16.msrb.mxu0 %v3244_v15  ;;  %950 = vmatpush.bf16.msrb.mxu1 %v3246_v16 }
  0x94   : > { %963 = vmatpush.bf16.msrb.mxu2 %v3256_v27  ;;  %976 = vmatpush.bf16.msrb.mxu3 %v3252_v25 }
  0x96   : > { %938 = vmatpush.bf16.msrb.mxu0 %v3260_v32  ;;  %951 = vmatpush.bf16.msrb.mxu1 %v3262_v33 }
  0x98   : > { %964 = vmatpush.bf16.msrb.mxu2 %v3268_v45  ;;  %977 = vmatpush.bf16.msrb.mxu3 %v3265_v44 }
  0x9a   : > { %939 = vmatpush.bf16.msrb.mxu0 %v3272_v48  ;;  %952 = vmatpush.bf16.msrb.mxu1 %v3274_v51 }
  0x9c   : > { %965 = vmatpush.bf16.msrb.mxu2 %v3280_v58  ;;  %978 = vmatpush.bf16.msrb.mxu3 %v3277_v56 }
  0xba   : > { %v481_v60 = vpop.f32.mrf.mxu0  ;;  %v500_v63 = vpop.f32.mrf.mxu1 }
  0xbb   : > { %v482_v40 = vadd.f32 %v481_v60, %v432_v1  ;;  %v501_v43 = vadd.f32 %v500_v63, %v433_v5 }
  0xc2   : > { %v519_v4 = vpop.f32.mrf.mxu2  ;;  %v538_v6 = vpop.f32.mrf.mxu3 }
  0xc3   : > { %v483_v7 = vpop.f32.mrf.mxu0  ;;  %v502_v9 = vpop.f32.mrf.mxu1 }
  0xc4   : > { %v484_v8 = vadd.f32 %v483_v7, %v432_v1  ;;  %v503_v13 = vadd.f32 %v502_v9, %v433_v5 }
  0xc6   : > { %v3353_v14 = vpack.c.bf16 %v503_v13, %v484_v8  ;;  %v548_v8 = vpack.c.bf16 %v501_v43, %v482_v40 }
  0xca   : > { %v521_v20 = vpop.f32.mrf.mxu2  ;;  %v540_v22 = vpop.f32.mrf.mxu3 }
  0xcb   : > { %v522_v21 = vadd.f32 %v521_v20, %v434_v18  ;;  %v486_v23 = vpop.f32.mrf.mxu0  ;;  %v541_v28 = vadd.f32 %v540_v22, %v435_v19  ;;  %v505_v34 = vpop.f32.mrf.mxu1  ;;  %v520_v20 = vadd.f32 %v519_v4, %v434_v18 }
  0xcc   : > { %v487_v31 = vadd.f32 %v486_v23, %v432_v1  ;;  %v506_v35 = vadd.f32 %v505_v34, %v433_v5  ;;  %v600_v23 = vunpack.c.l.bf16 %v548_v8 }
  0xcd   : > { %v3355_v36 = vpack.c.bf16 %v541_v28, %v522_v21  ;;  %v539_v21 = vadd.f32 %v538_v6, %v435_v19 }
  0xce   : > { %v3357_v39 = vpack.c.bf16 %v506_v35, %v487_v31  ;;  %v601_v31 = vunpack.c.h.bf16 %v548_v8 }
  0xd2   : > { %v524_v46 = vpop.f32.mrf.mxu2  ;;  %v543_v52 = vpop.f32.mrf.mxu3 }
  0xd3   : > { %v525_v47 = vadd.f32 %v524_v46, %v434_v18  ;;  %v488_v55 = vpop.f32.mrf.mxu0  ;;  %v544_v57 = vadd.f32 %v543_v52, %v435_v19  ;;  %v507_v0 = vpop.f32.mrf.mxu1  ;;  %v549_v52 = vpack.c.bf16 %v539_v21, %v520_v20 }
  0xd4   : > { %v489_v59 = vadd.f32 %v488_v55, %v432_v1  ;;  %v508_v7 = vadd.f32 %v507_v0, %v433_v5 }
  0xd5   : > { %v3359_v9 = vpack.c.bf16 %v544_v57, %v525_v47  ;;  %v602_v43 = vunpack.c.l.bf16 %v549_v52  ;;  %v603_v6 = vunpack.c.h.bf16 %v549_v52 }
  0xd6   : > { %v3361_v13 = vpack.c.bf16 %v508_v7, %v489_v59 }
  0xda   : > { %v526_v22 = vpop.f32.mrf.mxu2  ;;  %v545_v60 = vpop.f32.mrf.mxu3 }
  0xdb   : > { %v527_v28 = vadd.f32 %v526_v22, %v434_v18  ;;  %v774_v63 = vpop.f32.mrf.mxu0  ;;  %v546_v34 = vadd.f32 %v545_v60, %v435_v19  ;;  %v787_v46 = vpop.f32.mrf.mxu1 }
  0xdc   : > { %v817_v35 = vadd.f32 %v774_v63, %v600_v23  ;;  %v818_v1 = vadd.f32 %v787_v46, %v601_v31  ;;  %v597_v23 = vld [vmem:[#allocation5 + $0x8] sm:$0xff] }
  0xdd   : > { %v3363_v55 = vpack.c.bf16 %v546_v34, %v527_v28 }
  0xde   : > { %v821_v5 = vmul.f32 0.5, %v817_v35  ;;  %v825_v40 = vmul.f32 0.5, %v818_v1 }
  0xe0   : > { %2764 = vtanh.f32 %v821_v5 }
  0xe1   : > { %2766 = vtanh.f32 %v825_v40 }
  0xe2   : > { %v800_v4 = vpop.f32.mrf.mxu2  ;;  %v813_v57 = vpop.f32.mrf.mxu3 }
  0xe3   : > { %v819_v47 = vadd.f32 %v800_v4, %v602_v43  ;;  %v776_v18 = vpop.f32.mrf.mxu0  ;;  %v820_v59 = vadd.f32 %v813_v57, %v603_v6  ;;  %v789_v0 = vpop.f32.mrf.mxu1  ;;  %v2645_v57 = vld [vmem:[#allocation9 + $0xec] sm:$0xf0] }
  0xe4   : > { %v2643_v18 = vld [vmem:[#allocation9 + $0xe4] sm:$0xf]  ;;  %v2402_v0 = vld [vmem:[#allocation9 + $0xf0] sm:$0xf0] }
  0xe5   : > { %2768 = vtanh.f32 %v819_v47  ;;  %v830_v7 = vmul.f32 0.5, %v820_v59  ;;  %v2400_v47 = vld [vmem:[#allocation9 + $0xe0] sm:$0xf] }
  0xe6   : > { %v2765_v19 = vpop.eup %2764  ;;  %v2401_v59 = vor.u32 %v2645_v57, %v2400_v47 }
  0xe7   : > { %v2767_v8 = vpop.eup %2766  ;;  %v823_v20 = vmul.f32 0.5, %v2765_v19  ;;  %2770 = vtanh.f32 %v830_v7  ;;  %v2408_v19 = vld [vmem:[#allocation9 + $0xe8] sm:$0xf]  ;;  %v2646_v7 = vld [vmem:[#allocation9 + $0xf4] sm:$0xf0] }
  0xe8   : > { %v827_v21 = vmul.f32 0.5, %v2767_v8  ;;  %v2405_v8 = vor.u32 %v2643_v18, %v2402_v0  ;;  %v2628_v0 = vld [vmem:[#allocation9 + $0x6c] sm:$0xf] }
  0xe9   : > { %v824_v22 = vadd.f32 0.5, %v823_v20  ;;  %v2409_v20 = vor.u32 %v2646_v7, %v2408_v19  ;;  %v2346_v19 = vld [vmem:[#allocation9 + $0x78] sm:$0xf0]  ;;  %v2320_v7 = vld [vmem:[#allocation9 + $0x40] sm:$0xf] }
  0xea   : > { %v828_v28 = vadd.f32 0.5, %v827_v21  ;;  %v802_v60 = vpop.f32.mrf.mxu2  ;;  %v815_v31 = vpop.f32.mrf.mxu3  ;;  %v2644_v21 = vld [vmem:[#allocation9 + $0xec] sm:$0xf] }
  0xeb   : > { %v2769_v63 = vpop.eup %2768  ;;  %v2641_v60 = vld [vmem:[#allocation9 + $0xcc] sm:$0xf0] }
  0xec   : > { %v834_v34 = vmul.f32 %v828_v28, %v597_v23  ;;  %v835_v35 = vmul.f32 %v2769_v63, %v824_v22  ;;  %v2410_v22 = vld [vmem:[#allocation9 + $0xf8] sm:$0xf0]  ;;  %v2384_v28 = vld [vmem:[#allocation9 + $0xc0] sm:$0xf]  ;;  %v2639_v63 = vld [vmem:[#allocation9 + $0xc4] sm:$0xf] }
  0xed   : > { %v2771_v46 = vpop.eup %2770  ;;  %v2413_v23 = vor.u32 %v2644_v21, %v2410_v22  ;;  %v2385_v31 = vor.u32 %v2641_v60, %v2384_v28  ;;  %v2322_v21 = vld [vmem:[#allocation9 + $0x50] sm:$0xf0] }
  0xee   : > { %v3365_v52 = vadd.f32 %v835_v35, %v834_v34  ;;  %v832_v1 = vmul.f32 0.5, %v2771_v46  ;;  %v2386_v34 = vld [vmem:[#allocation9 + $0xd0] sm:$0xf0]  ;;  %v2392_v35 = vld [vmem:[#allocation9 + $0xc8] sm:$0xf] }
  0xef   : > { %v2642_v46 = vld [vmem:[#allocation9 + $0xd4] sm:$0xf0] }
  0xf0   : > { %2772 = vtanh.f32 %v3365_v52  ;;  %v833_v5 = vadd.f32 0.5, %v832_v1  ;;  %v2393_v1 = vor.u32 %v2642_v46, %v2392_v35  ;;  %v2624_v35 = vld [vmem:[#allocation9 + $0x4c] sm:$0xf]  ;;  %v2330_v46 = vld [vmem:[#allocation9 + $0x58] sm:$0xf0] }
  0xf6   : > { %v2773_v40 = vpop.eup %2772 }
  0xf7   : > { %v838_v43 = vmul.f32 %v2773_v40, %v833_v5  ;;  %v2640_v5 = vld [vmem:[#allocation9 + $0xcc] sm:$0xf]  ;;  %v2394_v40 = vld [vmem:[#allocation9 + $0xd8] sm:$0xf0] }
  0xf9   : > { %v839_v4 = vpack.c.bf16 %v838_v43, %v838_v43  ;;  %v2397_v43 = vor.u32 %v2640_v5, %v2394_v40  ;;  %v2621_v5 = vld [vmem:[#allocation9 + $0x2c] sm:$0xf0]  ;;  %v2619_v40 = vld [vmem:[#allocation9 + $0x24] sm:$0xf] }
  0xfb   : > { %840 = vst [vmem:[#allocation3] sm:$0xf] %v839_v4  ;;  %856 = vmatmul.bf16.vlgmr.msra.gmra.mxu0 %v839_v4  ;;  %869 = vmatmul.bf16.vlgmr.msra.gmra.mxu1 %v839_v4 }
  0xfc   : > { %882 = vmatmul.bf16.vlgmr.msra.gmra.mxu2 %v839_v4  ;;  %895 = vmatmul.bf16.vlgmr.msra.gmra.mxu3 %v839_v4  ;;  %v2368_v4 = vld [vmem:[#allocation9 + $0xa0] sm:$0xf] }
  0xfd   : > { %1016 = vmatpush.bf16.msra.mxu0 %v3176_v10  ;;  %1029 = vmatpush.bf16.msra.mxu1 %v3178_v17  ;;  %v844_v10 = vunpack.c.l.bf16 %v3353_v14  ;;  %v845_v17 = vunpack.c.h.bf16 %v3353_v14 }
  0xfe   : > { %1042 = vmatpush.bf16.msra.mxu2 %v3188_v26  ;;  %1055 = vmatpush.bf16.msra.mxu3 %v3184_v24 }
 0x101   : > { %1017 = vmatpush.bf16.msra.mxu0 %v3191_v29  ;;  %1030 = vmatpush.bf16.msra.mxu1 %v3193_v30 }
 0x102   : > { %1043 = vmatpush.bf16.msra.mxu2 %v3203_v38  ;;  %1056 = vmatpush.bf16.msra.mxu3 %v3199_v37 }
 0x105   : > { %1018 = vmatpush.bf16.msra.mxu0 %v3207_v41  ;;  %1031 = vmatpush.bf16.msra.mxu1 %v3209_v42  ;;  %v846_v41 = vunpack.c.l.bf16 %v3355_v36  ;;  %v847_v42 = vunpack.c.h.bf16 %v3355_v36 }
 0x106   : > { %1044 = vmatpush.bf16.msra.mxu2 %v3215_v50  ;;  %1057 = vmatpush.bf16.msra.mxu3 %v3212_v49 }
 0x109   : > { %1019 = vmatpush.bf16.msra.mxu0 %v3219_v53  ;;  %1032 = vmatpush.bf16.msra.mxu1 %v3221_v54 }
 0x10a   : > { %1045 = vmatpush.bf16.msra.mxu2 %v3227_v62  ;;  %1058 = vmatpush.bf16.msra.mxu3 %v3224_v61 }
 0x10d   : > { %1020 = vmatpush.bf16.msra.mxu0 %v3232_v2  ;;  %1033 = vmatpush.bf16.msra.mxu1 %v3234_v3 }
 0x10e   : > { %1046 = vmatpush.bf16.msra.mxu2 %v3240_v12  ;;  %1059 = vmatpush.bf16.msra.mxu3 %v3237_v11 }
 0x111   : > { %1021 = vmatpush.bf16.msra.mxu0 %v3244_v15  ;;  %1034 = vmatpush.bf16.msra.mxu1 %v3246_v16 }
 0x112   : > { %1047 = vmatpush.bf16.msra.mxu2 %v3256_v27  ;;  %1060 = vmatpush.bf16.msra.mxu3 %v3252_v25 }
 0x115   : > { %1022 = vmatpush.bf16.msra.mxu0 %v3260_v32  ;;  %1035 = vmatpush.bf16.msra.mxu1 %v3262_v33 }
 0x116   : > { %1048 = vmatpush.bf16.msra.mxu2 %v3268_v45  ;;  %1061 = vmatpush.bf16.msra.mxu3 %v3265_v44 }
 0x119   : > { %1023 = vmatpush.bf16.msra.mxu0 %v3272_v48  ;;  %1036 = vmatpush.bf16.msra.mxu1 %v3274_v51 }
 0x11a   : > { %1049 = vmatpush.bf16.msra.mxu2 %v3280_v58  ;;  %1062 = vmatpush.bf16.msra.mxu3 %v3277_v56 }
 0x178   : > { %v857_v24 = vpop.f32.mrf.mxu0  ;;  %v870_v26 = vpop.f32.mrf.mxu1 }
 0x179   : > { %v900_v29 = vadd.f32 %v857_v24, %v844_v10  ;;  %v901_v30 = vadd.f32 %v870_v26, %v845_v17  ;;  %v2637_v10 = vld [vmem:[#allocation9 + $0xac] sm:$0xf0]  ;;  %v2635_v17 = vld [vmem:[#allocation9 + $0xa4] sm:$0xf]  ;;  %v2370_v26 = vld [vmem:[#allocation9 + $0xb0] sm:$0xf0] }
 0x17a   : > { %v2369_v24 = vor.u32 %v2637_v10, %v2368_v4  ;;  %v930_v4 = vunpack.c.l.bf16 %v3359_v9  ;;  %v931_v10 = vunpack.c.h.bf16 %v3359_v9 }
 0x17b   : > { %v904_v37 = vmul.f32 0.5, %v900_v29  ;;  %v908_v38 = vmul.f32 0.5, %v901_v30  ;;  %v2376_v29 = vld [vmem:[#allocation9 + $0xa8] sm:$0xf]  ;;  %v2638_v30 = vld [vmem:[#allocation9 + $0xb4] sm:$0xf0] }
 0x17d   : > { %2774 = vtanh.f32 %v904_v37  ;;  %v2373_v37 = vor.u32 %v2635_v17, %v2370_v26  ;;  %v2622_v26 = vld [vmem:[#allocation9 + $0x34] sm:$0xf0] }
 0x17e   : > { %2776 = vtanh.f32 %v908_v38  ;;  %v2377_v38 = vor.u32 %v2638_v30, %v2376_v29  ;;  %v2620_v29 = vld [vmem:[#allocation9 + $0x2c] sm:$0xf] }
 0x17f   : > { %v883_v49 = vpop.f32.mrf.mxu2  ;;  %v896_v50 = vpop.f32.mrf.mxu3 }
 0x180   : > { %v902_v53 = vadd.f32 %v883_v49, %v846_v41  ;;  %v903_v54 = vadd.f32 %v896_v50, %v847_v42  ;;  %v859_v61 = vpop.f32.mrf.mxu0  ;;  %v872_v62 = vpop.f32.mrf.mxu1  ;;  %v2636_v41 = vld [vmem:[#allocation9 + $0xac] sm:$0xf]  ;;  %v2378_v42 = vld [vmem:[#allocation9 + $0xb8] sm:$0xf0]  ;;  %v2352_v50 = vld [vmem:[#allocation9 + $0x80] sm:$0xf] }
 0x181   : > { %v2381_v49 = vor.u32 %v2636_v41, %v2378_v42  ;;  %v2354_v62 = vld [vmem:[#allocation9 + $0x90] sm:$0xf0]  ;;  %v2314_v42 = vld [vmem:[#allocation9 + $0x38] sm:$0xf0] }
 0x182   : > { %2778 = vtanh.f32 %v902_v53  ;;  %v913_v2 = vmul.f32 0.5, %v903_v54  ;;  %v2633_v53 = vld [vmem:[#allocation9 + $0x8c] sm:$0xf0]  ;;  %v2631_v54 = vld [vmem:[#allocation9 + $0x84] sm:$0xf]  ;;  %v2317_v9 = vor.u32 %v2620_v29, %v2314_v42  ;;  %v1012_v42 = vunpack.c.l.bf16 %v3361_v13 }
 0x183   : > { %v2775_v3 = vpop.eup %2774  ;;  %v2353_v61 = vor.u32 %v2633_v53, %v2352_v50  ;;  %v2617_v50 = vld [vmem:[#allocation9 + $0xc] sm:$0xf0] }
 0x184   : > { %v2777_v11 = vpop.eup %2776  ;;  %v906_v12 = vmul.f32 0.5, %v2775_v3  ;;  %2780 = vtanh.f32 %v913_v2  ;;  %v2360_v2 = vld [vmem:[#allocation9 + $0x88] sm:$0xf]  ;;  %v2634_v3 = vld [vmem:[#allocation9 + $0x94] sm:$0xf0] }
 0x185   : > { %v910_v15 = vmul.f32 0.5, %v2777_v11  ;;  %v2357_v11 = vor.u32 %v2631_v54, %v2354_v62 }
 0x186   : > { %v907_v16 = vadd.f32 0.5, %v906_v12  ;;  %v2361_v12 = vor.u32 %v2634_v3, %v2360_v2  ;;  %v2615_v2 = vld [vmem:[#allocation9 + $0x4] sm:$0xf]  ;;  %v2290_v3 = vld [vmem:[#allocation9 + $0x10] sm:$0xf0] }
 0x187   : > { %v911_v25 = vadd.f32 0.5, %v910_v15  ;;  %v885_v27 = vpop.f32.mrf.mxu2  ;;  %v898_v32 = vpop.f32.mrf.mxu3  ;;  %v2632_v15 = vld [vmem:[#allocation9 + $0x8c] sm:$0xf] }
 0x188   : > { %v2779_v33 = vpop.eup %2778  ;;  %v928_v27 = vunpack.c.l.bf16 %v3357_v39  ;;  %v929_v32 = vunpack.c.h.bf16 %v3357_v39  ;;  %v2625_v39 = vld [vmem:[#allocation9 + $0x4c] sm:$0xf0] }
 0x189   : > { %v917_v44 = vmul.f32 %v911_v25, %v3365_v52  ;;  %v918_v45 = vmul.f32 %v2779_v33, %v907_v16  ;;  %v2389_v52 = vor.u32 %v2639_v63, %v2386_v34  ;;  %v2362_v16 = vld [vmem:[#allocation9 + $0x98] sm:$0xf0]  ;;  %v2336_v33 = vld [vmem:[#allocation9 + $0x60] sm:$0xf]  ;;  %v2321_v28 = vor.u32 %v2625_v39, %v2320_v7  ;;  %v2328_v63 = vld [vmem:[#allocation9 + $0x48] sm:$0xf] }
 0x18a   : > { %v2781_v48 = vpop.eup %2780  ;;  %v2365_v25 = vor.u32 %v2632_v15, %v2362_v16  ;;  %v2616_v15 = vld [vmem:[#allocation9 + $0xc] sm:$0xf]  ;;  %v2298_v16 = vld [vmem:[#allocation9 + $0x18] sm:$0xf0] }
 0x18b   : > { %v3405_v51 = vadd.f32 %v918_v45, %v917_v44  ;;  %v915_v56 = vmul.f32 0.5, %v2781_v48  ;;  %v2629_v44 = vld [vmem:[#allocation9 + $0x6c] sm:$0xf0]  ;;  %v2627_v45 = vld [vmem:[#allocation9 + $0x64] sm:$0xf] }
 0x18d   : > { %2782 = vtanh.f32 %v3405_v51  ;;  %v916_v58 = vadd.f32 0.5, %v915_v56 }
 0x193   : > { %v2783_v14 = vpop.eup %2782 }
 0x194   : > { %v921_v36 = vmul.f32 %v2783_v14, %v916_v58  ;;  %v2337_v58 = vor.u32 %v2629_v44, %v2336_v33  ;;  %v2338_v14 = vld [vmem:[#allocation9 + $0x70] sm:$0xf0]  ;;  %v2293_v33 = vor.u32 %v2615_v2, %v2290_v3  ;;  %v2504_v3 = vld [vmem:[#allocation11 + $0xa8] sm:$0xf] }
 0x195   : > { %v2341_v18 = vor.u32 %v2627_v45, %v2338_v14  ;;  %v2498_v2 = vld [vmem:[#allocation11 + $0xb0] sm:$0xf0] }
 0x196   : > { %v922_v6 = vpack.c.bf16 %v921_v36, %v921_v36  ;;  %v2344_v36 = vld [vmem:[#allocation9 + $0x68] sm:$0xf] }
 0x198   : > { %924 = vst [vmem:[#allocation3 + $0x4] sm:$0xf] %v922_v6  ;;  %940 = vmatmul.bf16.vlgmr.msrb.gmra.mxu0 %v922_v6  ;;  %953 = vmatmul.bf16.vlgmr.msrb.gmra.mxu1 %v922_v6 }
 0x199   : > { %966 = vmatmul.bf16.vlgmr.msrb.gmra.mxu2 %v922_v6  ;;  %979 = vmatmul.bf16.vlgmr.msrb.gmra.mxu3 %v922_v6  ;;  %v2630_v6 = vld [vmem:[#allocation9 + $0x74] sm:$0xf0] }
 0x19a   : > { %1313 = vmatpush.bf16.msrb.mxu0 %v2401_v59  ;;  %1332 = vmatpush.bf16.msrb.mxu1 %v2405_v8  ;;  %v2345_v59 = vor.u32 %v2630_v6, %v2344_v36  ;;  %v2349_v8 = vor.u32 %v2628_v0, %v2346_v19 }
 0x19b   : > { %1351 = vmatpush.bf16.msrb.mxu2 %v2409_v20  ;;  %1370 = vmatpush.bf16.msrb.mxu3 %v2413_v23  ;;  %v2623_v20 = vld [vmem:[#allocation9 + $0x44] sm:$0xf] }
 0x19c   : > { %v2325_v60 = vor.u32 %v2623_v20, %v2322_v21 }
 0x19e   : > { %1314 = vmatpush.bf16.msrb.mxu0 %v2385_v31  ;;  %1333 = vmatpush.bf16.msrb.mxu1 %v2389_v52  ;;  %v2626_v31 = vld [vmem:[#allocation9 + $0x54] sm:$0xf0]  ;;  %v2304_v52 = vld [vmem:[#allocation9 + $0x20] sm:$0xf] }
 0x19f   : > { %1352 = vmatpush.bf16.msrb.mxu2 %v2393_v1  ;;  %1371 = vmatpush.bf16.msrb.mxu3 %v2397_v43  ;;  %v2329_v34 = vor.u32 %v2626_v31, %v2328_v63  ;;  %v2333_v1 = vor.u32 %v2624_v35, %v2330_v46  ;;  %v2306_v43 = vld [vmem:[#allocation9 + $0x30] sm:$0xf0]  ;;  %v2305_v17 = vor.u32 %v2621_v5, %v2304_v52  ;;  %v2536_v31 = vld [vmem:[#allocation11 + $0xe8] sm:$0xf]  ;;  %v2676_v52 = vld [vmem:[#allocation11 + $0xec] sm:$0xf] }
 0x1a0   : > { %v2530_v63 = vld [vmem:[#allocation11 + $0xf0] sm:$0xf0] }
 0x1a2   : > { %1315 = vmatpush.bf16.msrb.mxu0 %v2369_v24  ;;  %1334 = vmatpush.bf16.msrb.mxu1 %v2373_v37  ;;  %v2312_v24 = vld [vmem:[#allocation9 + $0x28] sm:$0xf] }
 0x1a3   : > { %1353 = vmatpush.bf16.msrb.mxu2 %v2377_v38  ;;  %1372 = vmatpush.bf16.msrb.mxu3 %v2381_v49  ;;  %v2309_v38 = vor.u32 %v2619_v40, %v2306_v43  ;;  %v2313_v41 = vor.u32 %v2622_v26, %v2312_v24  ;;  %v2288_v49 = vld [vmem:[#allocation9] sm:$0xf]  ;;  %v2673_v43 = vld [vmem:[#allocation11 + $0xcc] sm:$0xf0]  ;;  %v2520_v24 = vld [vmem:[#allocation11 + $0xc8] sm:$0xf] }
 0x1a4   : > { %v2512_v40 = vld [vmem:[#allocation11 + $0xc0] sm:$0xf]  ;;  %v2674_v26 = vld [vmem:[#allocation11 + $0xd4] sm:$0xf0] }
 0x1a6   : > { %1316 = vmatpush.bf16.msrb.mxu0 %v2353_v61  ;;  %1335 = vmatpush.bf16.msrb.mxu1 %v2357_v11  ;;  %v2296_v11 = vld [vmem:[#allocation9 + $0x8] sm:$0xf] }
 0x1a7   : > { %1354 = vmatpush.bf16.msrb.mxu2 %v2361_v12  ;;  %1373 = vmatpush.bf16.msrb.mxu3 %v2365_v25  ;;  %v2618_v12 = vld [vmem:[#allocation9 + $0x14] sm:$0xf0] }
 0x1a8   : > { %v2297_v44 = vor.u32 %v2618_v12, %v2296_v11  ;;  %v2670_v11 = vld [vmem:[#allocation11 + $0xb4] sm:$0xf0] }
 0x1aa   : > { %1317 = vmatpush.bf16.msrb.mxu0 %v2337_v58  ;;  %1336 = vmatpush.bf16.msrb.mxu1 %v2341_v18 }
 0x1ab   : > { %1355 = vmatpush.bf16.msrb.mxu2 %v2345_v59  ;;  %1374 = vmatpush.bf16.msrb.mxu3 %v2349_v8 }
 0x1ae   : > { %1318 = vmatpush.bf16.msrb.mxu0 %v2321_v28  ;;  %1337 = vmatpush.bf16.msrb.mxu1 %v2325_v60  ;;  %v2675_v28 = vld [vmem:[#allocation11 + $0xe4] sm:$0xf] }
 0x1af   : > { %1356 = vmatpush.bf16.msrb.mxu2 %v2329_v34  ;;  %1375 = vmatpush.bf16.msrb.mxu3 %v2333_v1  ;;  %v2678_v34 = vld [vmem:[#allocation11 + $0xf4] sm:$0xf0]  ;;  %v3418_v35 = vor.u32 %v2675_v28, %v2530_v63  ;;  %v2538_v1 = vld [vmem:[#allocation11 + $0xf8] sm:$0xf0]  ;;  %v2464_v28 = vld [vmem:[#allocation11 + $0x60] sm:$0xf] }
 0x1b0   : > { %v3420_v46 = vor.u32 %v2678_v34, %v2536_v31  ;;  %v3423_v5 = vor.u32 %v2676_v52, %v2538_v1  ;;  %v2661_v63 = vld [vmem:[#allocation11 + $0x6c] sm:$0xf0]  ;;  %v2659_v31 = vld [vmem:[#allocation11 + $0x64] sm:$0xf]  ;;  %v2472_v52 = vld [vmem:[#allocation11 + $0x68] sm:$0xf] }
 0x1b1   : > { %v3468_v34 = vor.u32 %v2661_v63, %v2464_v28  ;;  %v2662_v1 = vld [vmem:[#allocation11 + $0x74] sm:$0xf0] }
 0x1b2   : > { %1319 = vmatpush.bf16.msrb.mxu0 %v2305_v17  ;;  %1338 = vmatpush.bf16.msrb.mxu1 %v2309_v38  ;;  %v2514_v17 = vld [vmem:[#allocation11 + $0xd0] sm:$0xf0]  ;;  %v2522_v38 = vld [vmem:[#allocation11 + $0xd8] sm:$0xf0] }
 0x1b3   : > { %1357 = vmatpush.bf16.msrb.mxu2 %v2313_v41  ;;  %1376 = vmatpush.bf16.msrb.mxu3 %v2317_v9 }
 0x1b6   : > { %1339 = vmatpush.bf16.msrb.mxu1 %v2293_v33  ;;  %v2480_v33 = vld [vmem:[#allocation11 + $0x80] sm:$0xf] }
 0x1b7   : > { %1358 = vmatpush.bf16.msrb.mxu2 %v2297_v44  ;;  %v2665_v44 = vld [vmem:[#allocation11 + $0x8c] sm:$0xf0] }
 0x215   : > { %v941_v48 = vpop.f32.mrf.mxu0  ;;  %v954_v56 = vpop.f32.mrf.mxu1 }
 0x216   : > { %v984_v47 = vadd.f32 %v941_v48, %v928_v27  ;;  %v985_v57 = vadd.f32 %v954_v56, %v929_v32  ;;  %v2289_v27 = vor.u32 %v2617_v50, %v2288_v49  ;;  %v2301_v56 = vor.u32 %v2616_v15, %v2298_v16  ;;  %v2496_v50 = vld [vmem:[#allocation11 + $0xa0] sm:$0xf] }
 0x217   : > { %v1013_v49 = vunpack.c.h.bf16 %v3361_v13  ;;  %v3446_v13 = vor.u32 %v2670_v11, %v2504_v3  ;;  %v2658_v11 = vld [vmem:[#allocation11 + $0x54] sm:$0xf0] }
 0x218   : > { %v988_v22 = vmul.f32 0.5, %v984_v47  ;;  %v992_v23 = vmul.f32 0.5, %v985_v57  ;;  %1320 = vmatpush.bf16.msrb.mxu0 %v2289_v27  ;;  %1377 = vmatpush.bf16.msrb.mxu3 %v2301_v56  ;;  %v2506_v27 = vld [vmem:[#allocation11 + $0xb8] sm:$0xf0] }
 0x21a   : > { %2784 = vtanh.f32 %v988_v22  ;;  %v2613_v22 = vld [vmem:[#allocation3] sm:$0xff] }
 0x21b   : > { %2786 = vtanh.f32 %v992_v23  ;;  %v2677_v23 = vld [vmem:[#allocation11 + $0xec] sm:$0xf0] }
 0x21c   : > { %v967_v30 = vpop.f32.mrf.mxu2  ;;  %v980_v37 = vpop.f32.mrf.mxu3 }
 0x21d   : > { %v986_v53 = vadd.f32 %v967_v30, %v930_v4  ;;  %v987_v54 = vadd.f32 %v980_v37, %v931_v10  ;;  %v943_v61 = vpop.f32.mrf.mxu0  ;;  %v956_v62 = vpop.f32.mrf.mxu1  ;;  %v2671_v4 = vld [vmem:[#allocation11 + $0xc4] sm:$0xf]  ;;  %v3428_v10 = vor.u32 %v2673_v43, %v2512_v40  ;;  %v3432_v30 = vor.u32 %v2674_v26, %v2520_v24  ;;  %v2672_v37 = vld [vmem:[#allocation11 + $0xcc] sm:$0xf]  ;;  %v2474_v24 = vld [vmem:[#allocation11 + $0x78] sm:$0xf0] }
 0x21e   : > { %v3430_v29 = vor.u32 %v2671_v4, %v2514_v17  ;;  %v3435_v41 = vor.u32 %v2672_v37, %v2522_v38  ;;  %v3472_v4 = vor.u32 %v2662_v1, %v2472_v52  ;;  %v2660_v17 = vld [vmem:[#allocation11 + $0x6c] sm:$0xf]  ;;  %v2448_v38 = vld [vmem:[#allocation11 + $0x40] sm:$0xf]  ;;  %v2418_v52 = vld [vmem:[#allocation11 + $0x10] sm:$0xf0] }
 0x21f   : > { %2788 = vtanh.f32 %v986_v53  ;;  %v997_v25 = vmul.f32 0.5, %v987_v54  ;;  %v2669_v53 = vld [vmem:[#allocation11 + $0xac] sm:$0xf0]  ;;  %v2667_v54 = vld [vmem:[#allocation11 + $0xa4] sm:$0xf]  ;;  %v3475_v37 = vor.u32 %v2660_v17, %v2474_v24 }
 0x220   : > { %v2785_v32 = vpop.eup %2784  ;;  %v3442_v9 = vor.u32 %v2669_v53, %v2496_v50  ;;  %v3444_v16 = vor.u32 %v2667_v54, %v2498_v2  ;;  %v2424_v17 = vld [vmem:[#allocation11 + $0x8] sm:$0xf]  ;;  %v2650_v24 = vld [vmem:[#allocation11 + $0x14] sm:$0xf0] }
 0x221   : > { %v2787_v45 = vpop.eup %2786  ;;  %v990_v48 = vmul.f32 0.5, %v2785_v32  ;;  %2790 = vtanh.f32 %v997_v25  ;;  %v2668_v25 = vld [vmem:[#allocation11 + $0xac] sm:$0xf] }
 0x222   : > { %v994_v58 = vmul.f32 0.5, %v2787_v45  ;;  %v3449_v32 = vor.u32 %v2668_v25, %v2506_v27  ;;  %v2663_v45 = vld [vmem:[#allocation11 + $0x84] sm:$0xf]  ;;  %v2458_v27 = vld [vmem:[#allocation11 + $0x58] sm:$0xf0] }
 0x223   : > { %v991_v14 = vadd.f32 0.5, %v990_v48 }
 0x224   : > { %v995_v36 = vadd.f32 0.5, %v994_v58  ;;  %v969_v6 = vpop.f32.mrf.mxu2  ;;  %v982_v47 = vpop.f32.mrf.mxu3  ;;  %v3453_v58 = vor.u32 %v2665_v44, %v2480_v33  ;;  %v2432_v33 = vld [vmem:[#allocation11 + $0x20] sm:$0xf] }
 0x225   : > { %v2789_v57 = vpop.eup %2788  ;;  %v2666_v47 = vld [vmem:[#allocation11 + $0x94] sm:$0xf0] }
 0x226   : > { %v1001_v18 = vmul.f32 %v995_v36, %v3405_v51  ;;  %v1002_v59 = vmul.f32 %v2789_v57, %v991_v14  ;;  %v2528_v51 = vld [vmem:[#allocation11 + $0xe0] sm:$0xf]  ;;  %v2482_v14 = vld [vmem:[#allocation11 + $0x90] sm:$0xf0]  ;;  %v2488_v36 = vld [vmem:[#allocation11 + $0x88] sm:$0xf] }
 0x227   : > { %v2791_v0 = vpop.eup %2790  ;;  %v3416_v60 = vor.u32 %v2677_v23, %v2528_v51  ;;  %v3456_v6 = vor.u32 %v2663_v45, %v2482_v14  ;;  %v2664_v57 = vld [vmem:[#allocation11 + $0x8c] sm:$0xf]  ;;  %v2653_v14 = vld [vmem:[#allocation11 + $0x2c] sm:$0xf0] }
 0x228   : > { %v3413_v19 = vadd.f32 %v1002_v59, %v1001_v18  ;;  %v999_v7 = vmul.f32 0.5, %v2791_v0  ;;  %v2490_v18 = vld [vmem:[#allocation11 + $0x98] sm:$0xf0]  ;;  %v3458_v59 = vor.u32 %v2666_v47, %v2488_v36  ;;  %v2651_v36 = vld [vmem:[#allocation11 + $0x24] sm:$0xf] }
 0x229   : > { %v3460_v0 = vor.u32 %v2664_v57, %v2490_v18  ;;  %v3491_v57 = vor.u32 %v2653_v14, %v2432_v33  ;;  %v2434_v18 = vld [vmem:[#allocation11 + $0x30] sm:$0xf0] }
 0x22a   : > { %2792 = vtanh.f32 %v3413_v19  ;;  %v1000_v8 = vadd.f32 0.5, %v999_v7  ;;  %v1014_v7 = vunpack.c.l.bf16 %v3363_v55 }
 0x230   : > { %v2793_v39 = vpop.eup %2792 }
 0x231   : > { %v1005_v20 = vmul.f32 %v2793_v39, %v1000_v8  ;;  %v1015_v8 = vunpack.c.h.bf16 %v3363_v55  ;;  %v2466_v55 = vld [vmem:[#allocation11 + $0x70] sm:$0xf0] }
 0x232   : > { %v3470_v43 = vor.u32 %v2659_v31, %v2466_v55  ;;  %v2649_v31 = vld [vmem:[#allocation11 + $0xc] sm:$0xf0]  ;;  %v2647_v55 = vld [vmem:[#allocation11 + $0x4] sm:$0xf] }
 0x233   : > { %v1006_v21 = vpack.c.bf16 %v1005_v20, %v1005_v20 }
 0x235   : > { %1008 = vst [vmem:[#allocation3 + $0x8] sm:$0xf] %v1006_v21  ;;  %1024 = vmatmul.bf16.vlgmr.msra.gmra.mxu0 %v1006_v21  ;;  %1037 = vmatmul.bf16.vlgmr.msra.gmra.mxu1 %v1006_v21 }
 0x236   : > { %1050 = vmatmul.bf16.vlgmr.msra.gmra.mxu2 %v1006_v21  ;;  %1063 = vmatmul.bf16.vlgmr.msra.gmra.mxu3 %v1006_v21 }
 0x237   : > { %1608 = vmatpush.bf16.msra.mxu0 %v3416_v60  ;;  %1621 = vmatpush.bf16.msra.mxu1 %v3418_v35 }
 0x238   : > { %1634 = vmatpush.bf16.msra.mxu2 %v3420_v46  ;;  %1647 = vmatpush.bf16.msra.mxu3 %v3423_v5 }
 0x23b   : > { %1609 = vmatpush.bf16.msra.mxu0 %v3428_v10  ;;  %1622 = vmatpush.bf16.msra.mxu1 %v3430_v29 }
 0x23c   : > { %1635 = vmatpush.bf16.msra.mxu2 %v3432_v30  ;;  %1648 = vmatpush.bf16.msra.mxu3 %v3435_v41 }
 0x23f   : > { %1610 = vmatpush.bf16.msra.mxu0 %v3442_v9  ;;  %1623 = vmatpush.bf16.msra.mxu1 %v3444_v16 }
 0x240   : > { %1636 = vmatpush.bf16.msra.mxu2 %v3446_v13  ;;  %1649 = vmatpush.bf16.msra.mxu3 %v3449_v32 }
 0x243   : > { %1611 = vmatpush.bf16.msra.mxu0 %v3453_v58  ;;  %1624 = vmatpush.bf16.msra.mxu1 %v3456_v6 }
 0x244   : > { %1637 = vmatpush.bf16.msra.mxu2 %v3458_v59  ;;  %1650 = vmatpush.bf16.msra.mxu3 %v3460_v0 }
 0x245   : > { %1321 = vmatmul.bf16.vlgmr.msrb.gmra.mxu0 %v2613_v22  ;;  %1340 = vmatmul.bf16.vlgmr.msrb.gmra.mxu1 %v2613_v22 }
 0x246   : > { %1359 = vmatmul.bf16.vlgmr.msrb.gmra.mxu2 %v2613_v22  ;;  %1378 = vmatmul.bf16.vlgmr.msrb.gmra.mxu3 %v2613_v22 }
 0x247   : > { %1612 = vmatpush.bf16.msra.mxu0 %v3468_v34  ;;  %1625 = vmatpush.bf16.msra.mxu1 %v3470_v43 }
 0x248   : > { %1638 = vmatpush.bf16.msra.mxu2 %v3472_v4  ;;  %1651 = vmatpush.bf16.msra.mxu3 %v3475_v37 }
 0x2b2   : > { %v1025_v61 = vpop.f32.mrf.mxu0  ;;  %v1038_v62 = vpop.f32.mrf.mxu1 }
 0x2b3   : > { %v1068_v12 = vadd.f32 %v1025_v61, %v1012_v42  ;;  %v1069_v15 = vadd.f32 %v1038_v62, %v1013_v49  ;;  %v2657_v42 = vld [vmem:[#allocation11 + $0x4c] sm:$0xf0]  ;;  %v2655_v49 = vld [vmem:[#allocation11 + $0x44] sm:$0xf]  ;;  %v2450_v61 = vld [vmem:[#allocation11 + $0x50] sm:$0xf0] }
 0x2b4   : > { %v3479_v54 = vor.u32 %v2657_v42, %v2448_v38  ;;  %v2456_v62 = vld [vmem:[#allocation11 + $0x48] sm:$0xf]  ;;  %v3482_v3 = vor.u32 %v2655_v49, %v2450_v61  ;;  %v3508_v38 = vor.u32 %v2650_v24, %v2424_v17  ;;  %v2648_v42 = vld [vmem:[#allocation11 + $0xc] sm:$0xf]  ;;  %v2426_v49 = vld [vmem:[#allocation11 + $0x18] sm:$0xf0] }
 0x2b5   : > { %v1072_v48 = vmul.f32 0.5, %v1068_v12  ;;  %v1076_v56 = vmul.f32 0.5, %v1069_v15  ;;  %v2656_v12 = vld [vmem:[#allocation11 + $0x4c] sm:$0xf]  ;;  %v3484_v25 = vor.u32 %v2658_v11, %v2456_v62 }
 0x2b6   : > { %1613 = vmatpush.bf16.msra.mxu0 %v3479_v54  ;;  %1626 = vmatpush.bf16.msra.mxu1 %v3482_v3 }
 0x2b7   : > { %2794 = vtanh.f32 %v1072_v48  ;;  %1639 = vmatpush.bf16.msra.mxu2 %v3484_v25 }
 0x2b8   : > { %2796 = vtanh.f32 %v1076_v56  ;;  %v3487_v56 = vor.u32 %v2656_v12, %v2458_v27 }
 0x2b9   : > { %v1051_v39 = vpop.f32.mrf.mxu2  ;;  %v1064_v20 = vpop.f32.mrf.mxu3 }
 0x2ba   : > { %v1070_v21 = vadd.f32 %v1051_v39, %v1014_v7  ;;  %v1071_v22 = vadd.f32 %v1064_v20, %v1015_v8  ;;  %v1027_v51 = vpop.f32.mrf.mxu0  ;;  %v1040_v23 = vpop.f32.mrf.mxu1  ;;  %v2440_v7 = vld [vmem:[#allocation11 + $0x28] sm:$0xf]  ;;  %v2654_v8 = vld [vmem:[#allocation11 + $0x34] sm:$0xf0]  ;;  %1652 = vmatpush.bf16.msra.mxu3 %v3487_v56  ;;  %1614 = vmatpush.bf16.msra.mxu0 %v3491_v57 }
 0x2bb   : > { %v2416_v51 = vld [vmem:[#allocation11] sm:$0xf]  ;;  %v3495_v23 = vor.u32 %v2651_v36, %v2434_v18  ;;  %v3497_v28 = vor.u32 %v2654_v8, %v2440_v7 }
 0x2bc   : > { %2798 = vtanh.f32 %v1070_v21  ;;  %v1081_v40 = vmul.f32 0.5, %v1071_v22  ;;  %v2652_v21 = vld [vmem:[#allocation11 + $0x2c] sm:$0xf]  ;;  %v2442_v22 = vld [vmem:[#allocation11 + $0x38] sm:$0xf0] }
 0x2bd   : > { %v2795_v26 = vpop.eup %2794  ;;  %v3499_v63 = vor.u32 %v2652_v21, %v2442_v22  ;;  %1627 = vmatpush.bf16.msra.mxu1 %v3495_v23  ;;  %1640 = vmatpush.bf16.msra.mxu2 %v3497_v28 }
 0x2be   : > { %v2797_v50 = vpop.eup %2796  ;;  %v1074_v53 = vmul.f32 0.5, %v2795_v26  ;;  %2800 = vtanh.f32 %v1081_v40  ;;  %v3506_v26 = vor.u32 %v2647_v55, %v2418_v52 }
 0x2bf   : > { %v1078_v2 = vmul.f32 0.5, %v2797_v50  ;;  %1653 = vmatpush.bf16.msra.mxu3 %v3499_v63  ;;  %v3511_v50 = vor.u32 %v2648_v42, %v2426_v49 }
 0x2c0   : > { %v1075_v15 = vadd.f32 0.5, %v1074_v53 }
 0x2c1   : > { %v1079_v44 = vadd.f32 0.5, %v1078_v2  ;;  %v1053_v45 = vpop.f32.mrf.mxu2  ;;  %v1066_v48 = vpop.f32.mrf.mxu3  ;;  %1628 = vmatpush.bf16.msra.mxu1 %v3506_v26  ;;  %1641 = vmatpush.bf16.msra.mxu2 %v3508_v38 }
 0x2c2   : > { %v2799_v47 = vpop.eup %2798  ;;  %v1322_v33 = vpop.f32.mrf.mxu0 }
 0x2c3   : > { %v1085_v39 = vmul.f32 %v1079_v44, %v3413_v19  ;;  %v1086_v20 = vmul.f32 %v2799_v47, %v1075_v15  ;;  %v3502_v19 = vor.u32 %v2649_v31, %v2416_v51  ;;  %1654 = vmatpush.bf16.msra.mxu3 %v3511_v50  ;;  %v1438_v15 = vld [vmem:[#allocation4 + $0x8] sm:$0xff]  ;;  %v1341_v44 = vpop.f32.mrf.mxu1 }
 0x2c4   : > { %v2801_v1 = vpop.eup %2800  ;;  %v1447_v27 = vpack.c.bf16 %v1438_v15, %v1438_v15  ;;  %v1131_v47 = vld [vmem:[%s3696_s6] sm:$0xf] }
 0x2c5   : > { %v1087_v40 = vadd.f32 %v1086_v20, %v1085_v39  ;;  %v1083_v53 = vmul.f32 0.5, %v2801_v1  ;;  %1615 = vmatpush.bf16.msra.mxu0 %v3502_v19  ;;  %1702 = vmatpush.bf16.msrb.mxu1 %v3418_v35  ;;  %v3588_v18 = vperm.slane %v1131_v47, 0  ;;  %v3590_v7 = vperm.slane %v1131_v47, 1 }
 0x2c6   : > { %1715 = vmatpush.bf16.msrb.mxu2 %v3420_v46  ;;  %v3600_v55 = vperm.slane %v1131_v47, 2  ;;  %v3602_v52 = vperm.slane %v1131_v47, 3 }
 0x2c7   : > { %2802 = vtanh.f32 %v1087_v40  ;;  %1094 = vst [vmem:[#allocation5 + $0x8] sm:$0xff] %v1087_v40  ;;  %v1084_v61 = vadd.f32 0.5, %v1083_v53  ;;  %1728 = vmatpush.bf16.msrb.mxu3 %v3423_v5  ;;  %v1323_v1 = vadd.f32 %v1322_v33, %v3588_v18  ;;  %v1342_v40 = vadd.f32 %v1341_v44, %v3590_v7 }
 0x2c9   : > { %1689 = vmatpush.bf16.msrb.mxu0 %v3416_v60  ;;  %1703 = vmatpush.bf16.msrb.mxu1 %v3430_v29  ;;  %v1360_v45 = vpop.f32.mrf.mxu2  ;;  %v1379_v48 = vpop.f32.mrf.mxu3 }
 0x2ca   : > { %1716 = vmatpush.bf16.msrb.mxu2 %v3432_v30  ;;  %v3581_v14 = vpop.f32.mrf.mxu0  ;;  %v1380_v33 = vadd.f32 %v1379_v48, %v3602_v52 }
 0x2cb   : > { %1729 = vmatpush.bf16.msrb.mxu3 %v3435_v41  ;;  %v3583_v36 = vpop.f32.mrf.mxu1 }
 0x2cd   : > { %v2803_v62 = vpop.eup %2802  ;;  %1690 = vmatpush.bf16.msrb.mxu0 %v3428_v10  ;;  %1704 = vmatpush.bf16.msrb.mxu1 %v3444_v16 }
 0x2ce   : > { %v1089_v2 = vmul.f32 %v2803_v62, %v1084_v61  ;;  %1717 = vmatpush.bf16.msrb.mxu2 %v3446_v13 }
 0x2cf   : > { %1730 = vmatpush.bf16.msrb.mxu3 %v3449_v32 }
 0x2d0   : > { %v1090_v11 = vpack.c.bf16 %v1089_v2, %v1089_v2  ;;  %1093 = vst [vmem:[#allocation4] sm:$0xff] %v1089_v2 }
 0x2d1   : > { %1691 = vmatpush.bf16.msrb.mxu0 %v3442_v9  ;;  %1705 = vmatpush.bf16.msrb.mxu1 %v3456_v6  ;;  %v3592_v8 = vpop.f32.mrf.mxu2  ;;  %v3594_v39 = vpop.f32.mrf.mxu3 }
 0x2d2   : > { %1092 = vst [vmem:[#allocation3 + $0xc] sm:$0xf] %v1090_v11  ;;  %1718 = vmatpush.bf16.msrb.mxu2 %v3458_v59 }
 0x2d3   : > { %1731 = vmatpush.bf16.msrb.mxu3 %v3460_v0 }
 0x2d5   : > { %1692 = vmatpush.bf16.msrb.mxu0 %v3453_v58  ;;  %1706 = vmatpush.bf16.msrb.mxu1 %v3470_v43 }
 0x2d6   : > { %1719 = vmatpush.bf16.msrb.mxu2 %v3472_v4 }
 0x2d7   : > { %1732 = vmatpush.bf16.msrb.mxu3 %v3475_v37 }
 0x2d9   : > { %v2614_v12 = vld [vmem:[#allocation3 + $0x8] sm:$0xff]  ;;  %1693 = vmatpush.bf16.msrb.mxu0 %v3468_v34  ;;  %1707 = vmatpush.bf16.msrb.mxu1 %v3482_v3 }
 0x2da   : > { %1326 = vmatmul.bf16.gmra.mxu0 %v2614_v12  ;;  %1345 = vmatmul.bf16.gmra.mxu1 %v2614_v12 }
 0x2db   : > { %1364 = vmatmul.bf16.gmra.mxu2 %v2614_v12  ;;  %1383 = vmatmul.bf16.gmra.mxu3 %v2614_v12  ;;  %v1389_v12 = vpack.c.bf16 %v1342_v40, %v1323_v1 }
 0x2dc   : > { %1720 = vmatpush.bf16.msrb.mxu2 %v3484_v25  ;;  %1733 = vmatpush.bf16.msrb.mxu3 %v3487_v56 }
 0x2dd   : > { %1694 = vmatpush.bf16.msrb.mxu0 %v3479_v54  ;;  %1708 = vmatpush.bf16.msrb.mxu1 %v3495_v23 }
 0x2e0   : > { %1721 = vmatpush.bf16.msrb.mxu2 %v3497_v28  ;;  %1734 = vmatpush.bf16.msrb.mxu3 %v3499_v63 }
 0x2e1   : > { %1695 = vmatpush.bf16.msrb.mxu0 %v3491_v57  ;;  %1709 = vmatpush.bf16.msrb.mxu1 %v3506_v26 }
 0x2e4   : > { %1722 = vmatpush.bf16.msrb.mxu2 %v3508_v38  ;;  %1735 = vmatpush.bf16.msrb.mxu3 %v3511_v50 }
 0x2e5   : > { %1696 = vmatpush.bf16.msrb.mxu0 %v3502_v19 }
 0x2ea   : > { %1616 = vmatmul.bf16.vlgmr.msra.gmra.mxu0 %v1447_v27  ;;  %1629 = vmatmul.bf16.vlgmr.msra.gmra.mxu1 %v1447_v27 }
 0x2eb   : > { %1642 = vmatmul.bf16.vlgmr.msra.gmra.mxu2 %v1447_v27  ;;  %1655 = vmatmul.bf16.vlgmr.msra.gmra.mxu3 %v1447_v27  ;;  %v1361_v27 = vadd.f32 %v1360_v45, %v3600_v55 }
 0x2ec   : > { %1770 = vmatpush.bf16.msra.mxu0 %v3416_v60  ;;  %1783 = vmatpush.bf16.msra.mxu1 %v3418_v35 }
 0x2ed   : > { %1796 = vmatpush.bf16.msra.mxu2 %v3420_v46  ;;  %1809 = vmatpush.bf16.msra.mxu3 %v3423_v5 }
 0x2f0   : > { %1771 = vmatpush.bf16.msra.mxu0 %v3428_v10  ;;  %1784 = vmatpush.bf16.msra.mxu1 %v3430_v29 }
 0x2f1   : > { %1797 = vmatpush.bf16.msra.mxu2 %v3432_v30  ;;  %1810 = vmatpush.bf16.msra.mxu3 %v3435_v41 }
 0x2f4   : > { %1772 = vmatpush.bf16.msra.mxu0 %v3442_v9  ;;  %1785 = vmatpush.bf16.msra.mxu1 %v3444_v16 }
 0x2f5   : > { %1798 = vmatpush.bf16.msra.mxu2 %v3446_v13  ;;  %1811 = vmatpush.bf16.msra.mxu3 %v3449_v32 }
 0x2f8   : > { %1773 = vmatpush.bf16.msra.mxu0 %v3453_v58  ;;  %1786 = vmatpush.bf16.msra.mxu1 %v3456_v6 }
 0x2f9   : > { %1799 = vmatpush.bf16.msra.mxu2 %v3458_v59  ;;  %1812 = vmatpush.bf16.msra.mxu3 %v3460_v0 }
 0x2fc   : > { %1774 = vmatpush.bf16.msra.mxu0 %v3468_v34  ;;  %1787 = vmatpush.bf16.msra.mxu1 %v3470_v43 }
 0x2fd   : > { %1800 = vmatpush.bf16.msra.mxu2 %v3472_v4  ;;  %1813 = vmatpush.bf16.msra.mxu3 %v3475_v37 }
 0x300   : > { %1775 = vmatpush.bf16.msra.mxu0 %v3479_v54  ;;  %1788 = vmatpush.bf16.msra.mxu1 %v3482_v3 }
 0x301   : > { %1801 = vmatpush.bf16.msra.mxu2 %v3484_v25  ;;  %1814 = vmatpush.bf16.msra.mxu3 %v3487_v56 }
 0x304   : > { %1776 = vmatpush.bf16.msra.mxu0 %v3491_v57  ;;  %1789 = vmatpush.bf16.msra.mxu1 %v3495_v23 }
 0x305   : > { %1802 = vmatpush.bf16.msra.mxu2 %v3497_v28  ;;  %1815 = vmatpush.bf16.msra.mxu3 %v3499_v63 }
 0x308   : > { %1777 = vmatpush.bf16.msra.mxu0 %v3502_v19  ;;  %1790 = vmatpush.bf16.msra.mxu1 %v3506_v26 }
 0x309   : > { %1803 = vmatpush.bf16.msra.mxu2 %v3508_v38  ;;  %1816 = vmatpush.bf16.msra.mxu3 %v3511_v50 }
 0x357   : > { %v1327_v20 = vpop.f32.mrf.mxu0  ;;  %v1346_v21 = vpop.f32.mrf.mxu1 }
 0x358   : > { %v1328_v22 = vadd.f32 %v1327_v20, %v3588_v18  ;;  %v1347_v51 = vadd.f32 %v1346_v21, %v3590_v7  ;;  %v1443_v20 = vunpack.c.l.bf16 %v1389_v12  ;;  %v1444_v21 = vunpack.c.h.bf16 %v1389_v12 }
 0x35a   : > { %v3598_v31 = vpack.c.bf16 %v1347_v51, %v1328_v22 }
 0x35c   : > { %3711 = vst [vmem:[#allocation19_spill] sm:$0xff] %v3598_v31 }
 0x35e   : > { %v1365_v17 = vpop.f32.mrf.mxu2  ;;  %v1384_v24 = vpop.f32.mrf.mxu3 }
 0x35f   : > { %v1366_v42 = vadd.f32 %v1365_v17, %v3600_v55  ;;  %v1385_v49 = vadd.f32 %v1384_v24, %v3602_v52  ;;  %v1329_v53 = vpop.f32.mrf.mxu0  ;;  %v1348_v61 = vpop.f32.mrf.mxu1 }
 0x360   : > { %v1330_v62 = vadd.f32 %v1329_v53, %v3588_v18  ;;  %v1349_v2 = vadd.f32 %v1348_v61, %v3590_v7 }
 0x361   : > { %v3610_v11 = vpack.c.bf16 %v1385_v49, %v1366_v42  ;;  %v1390_v49 = vpack.c.bf16 %v1380_v33, %v1361_v27 }
 0x362   : > { %v3612_v15 = vpack.c.bf16 %v1349_v2, %v1330_v62 }
 0x363   : > { %3712 = vst [vmem:[#allocation20_spill] sm:$0xff] %v3610_v11  ;;  %v1445_v45 = vunpack.c.l.bf16 %v1390_v49  ;;  %v1446_v48 = vunpack.c.h.bf16 %v1390_v49 }
 0x364   : > { %3713 = vst [vmem:[#allocation21_spill] sm:$0xff] %v3612_v15 }
 0x366   : > { %v1367_v44 = vpop.f32.mrf.mxu2  ;;  %v1386_v47 = vpop.f32.mrf.mxu3 }
 0x367   : > { %v1368_v22 = vadd.f32 %v1367_v44, %v3600_v55  ;;  %v1387_v51 = vadd.f32 %v1386_v47, %v3602_v52  ;;  %v1617_v17 = vpop.f32.mrf.mxu0  ;;  %v1630_v24 = vpop.f32.mrf.mxu1 }
 0x368   : > { %v1660_v53 = vadd.f32 %v1617_v17, %v1443_v20  ;;  %v1661_v42 = vadd.f32 %v1630_v24, %v1444_v21 }
 0x369   : > { %v3618_v1 = vpack.c.bf16 %v1387_v51, %v1368_v22  ;;  %v1440_v22 = vld [vmem:[#allocation5] sm:$0xff] }
 0x36a   : > { %v1664_v40 = vmul.f32 0.5, %v1660_v53  ;;  %v1668_v61 = vmul.f32 0.5, %v1661_v42 }
 0x36c   : > { %2804 = vtanh.f32 %v1664_v40 }
 0x36d   : > { %2806 = vtanh.f32 %v1668_v61 }
 0x36e   : > { %v1643_v62 = vpop.f32.mrf.mxu2  ;;  %v1656_v2 = vpop.f32.mrf.mxu3 }
 0x36f   : > { %v1662_v12 = vadd.f32 %v1643_v62, %v1445_v45  ;;  %v1663_v15 = vadd.f32 %v1656_v2, %v1446_v48  ;;  %v1619_v44 = vpop.f32.mrf.mxu0  ;;  %v1632_v11 = vpop.f32.mrf.mxu1  ;;  %v3714_v2 = vld [vmem:[#allocation19_spill] sm:$0xff] }
 0x370   : > { %v1766_v44 = vunpack.c.h.bf16 %v3714_v2 }
 0x371   : > { %2808 = vtanh.f32 %v1662_v12  ;;  %v1673_v47 = vmul.f32 0.5, %v1663_v15  ;;  %v1765_v12 = vunpack.c.l.bf16 %v3714_v2 }
 0x372   : > { %v2805_v31 = vpop.eup %2804 }
 0x373   : > { %v2807_v20 = vpop.eup %2806  ;;  %v1666_v21 = vmul.f32 0.5, %v2805_v31  ;;  %2810 = vtanh.f32 %v1673_v47 }
 0x374   : > { %v1670_v27 = vmul.f32 0.5, %v2807_v20 }
 0x375   : > { %v1667_v33 = vadd.f32 0.5, %v1666_v21 }
 0x376   : > { %v1671_v51 = vadd.f32 0.5, %v1670_v27  ;;  %v1645_v17 = vpop.f32.mrf.mxu2  ;;  %v1658_v24 = vpop.f32.mrf.mxu3 }
 0x377   : > { %v2809_v53 = vpop.eup %2808 }
 0x378   : > { %v1677_v42 = vmul.f32 %v1671_v51, %v1440_v22  ;;  %v1678_v49 = vmul.f32 %v2809_v53, %v1667_v33  ;;  %v3715_v51 = vld [vmem:[#allocation20_spill] sm:$0xff] }
 0x379   : > { %v2811_v40 = vpop.eup %2810  ;;  %v1767_v17 = vunpack.c.l.bf16 %v3715_v51  ;;  %v1768_v24 = vunpack.c.h.bf16 %v3715_v51 }
 0x37a   : > { %v3620_v61 = vadd.f32 %v1678_v49, %v1677_v42  ;;  %v1675_v11 = vmul.f32 0.5, %v2811_v40 }
 0x37c   : > { %2812 = vtanh.f32 %v3620_v61  ;;  %v1676_v15 = vadd.f32 0.5, %v1675_v11 }
 0x382   : > { %v2813_v45 = vpop.eup %2812 }
 0x383   : > { %v1681_v48 = vmul.f32 %v2813_v45, %v1676_v15 }
 0x385   : > { %v1688_v31 = vpack.c.bf16 %v1681_v48, %v1681_v48 }
 0x387   : > { %1697 = vmatmul.bf16.vlgmr.msrb.gmra.mxu0 %v1688_v31  ;;  %1710 = vmatmul.bf16.vlgmr.msrb.gmra.mxu1 %v1688_v31 }
 0x388   : > { %1723 = vmatmul.bf16.vlgmr.msrb.gmra.mxu2 %v1688_v31  ;;  %1736 = vmatmul.bf16.vlgmr.msrb.gmra.mxu3 %v1688_v31 }
 0x389   : > { %1851 = vmatpush.bf16.msrb.mxu0 %v3416_v60  ;;  %1864 = vmatpush.bf16.msrb.mxu1 %v3418_v35  ;;  %v1325_v60 = vadd.f32 %v3581_v14, %v3588_v18  ;;  %v1344_v35 = vadd.f32 %v3583_v36, %v3590_v7 }
 0x38a   : > { %1877 = vmatpush.bf16.msrb.mxu2 %v3420_v46  ;;  %1890 = vmatpush.bf16.msrb.mxu3 %v3423_v5  ;;  %v1363_v5 = vadd.f32 %v3592_v8, %v3600_v55 }
 0x38b   : > { %v1391_v46 = vpack.c.bf16 %v1344_v35, %v1325_v60 }
 0x38d   : > { %1852 = vmatpush.bf16.msrb.mxu0 %v3428_v10  ;;  %1865 = vmatpush.bf16.msrb.mxu1 %v3430_v29  ;;  %v1382_v10 = vadd.f32 %v3594_v39, %v3602_v52  ;;  %v1684_v29 = vunpack.c.l.bf16 %v1391_v46 }
 0x38e   : > { %1878 = vmatpush.bf16.msrb.mxu2 %v3432_v30  ;;  %1891 = vmatpush.bf16.msrb.mxu3 %v3435_v41  ;;  %v1685_v30 = vunpack.c.h.bf16 %v1391_v46 }
 0x391   : > { %1853 = vmatpush.bf16.msrb.mxu0 %v3442_v9  ;;  %1866 = vmatpush.bf16.msrb.mxu1 %v3444_v16 }
 0x392   : > { %1879 = vmatpush.bf16.msrb.mxu2 %v3446_v13  ;;  %1892 = vmatpush.bf16.msrb.mxu3 %v3449_v32  ;;  %v1392_v32 = vpack.c.bf16 %v1382_v10, %v1363_v5 }
 0x395   : > { %1854 = vmatpush.bf16.msrb.mxu0 %v3453_v58  ;;  %1867 = vmatpush.bf16.msrb.mxu1 %v3456_v6 }
 0x396   : > { %1880 = vmatpush.bf16.msrb.mxu2 %v3458_v59  ;;  %1893 = vmatpush.bf16.msrb.mxu3 %v3460_v0  ;;  %v1686_v59 = vunpack.c.l.bf16 %v1392_v32  ;;  %v1687_v0 = vunpack.c.h.bf16 %v1392_v32 }
 0x399   : > { %1855 = vmatpush.bf16.msrb.mxu0 %v3468_v34  ;;  %1868 = vmatpush.bf16.msrb.mxu1 %v3470_v43 }
 0x39a   : > { %1881 = vmatpush.bf16.msrb.mxu2 %v3472_v4  ;;  %1894 = vmatpush.bf16.msrb.mxu3 %v3475_v37 }
 0x39d   : > { %1856 = vmatpush.bf16.msrb.mxu0 %v3479_v54  ;;  %1869 = vmatpush.bf16.msrb.mxu1 %v3482_v3 }
 0x39e   : > { %1882 = vmatpush.bf16.msrb.mxu2 %v3484_v25  ;;  %1895 = vmatpush.bf16.msrb.mxu3 %v3487_v56 }
 0x3a1   : > { %1857 = vmatpush.bf16.msrb.mxu0 %v3491_v57  ;;  %1870 = vmatpush.bf16.msrb.mxu1 %v3495_v23 }
 0x3a2   : > { %1883 = vmatpush.bf16.msrb.mxu2 %v3497_v28  ;;  %1896 = vmatpush.bf16.msrb.mxu3 %v3499_v63 }
 0x3a5   : > { %1858 = vmatpush.bf16.msrb.mxu0 %v3502_v19  ;;  %1871 = vmatpush.bf16.msrb.mxu1 %v3506_v26 }
 0x3a6   : > { %1884 = vmatpush.bf16.msrb.mxu2 %v3508_v38  ;;  %1897 = vmatpush.bf16.msrb.mxu3 %v3511_v50 }
 0x404   : > { %v1698_v41 = vpop.f32.mrf.mxu0  ;;  %v1711_v9 = vpop.f32.mrf.mxu1 }
 0x405   : > { %v1741_v16 = vadd.f32 %v1698_v41, %v1684_v29  ;;  %v1742_v13 = vadd.f32 %v1711_v9, %v1685_v30 }
 0x407   : > { %v1745_v58 = vmul.f32 0.5, %v1741_v16  ;;  %v1749_v6 = vmul.f32 0.5, %v1742_v13 }
 0x409   : > { %2814 = vtanh.f32 %v1745_v58 }
 0x40a   : > { %2816 = vtanh.f32 %v1749_v6 }
 0x40b   : > { %v1724_v34 = vpop.f32.mrf.mxu2  ;;  %v1737_v43 = vpop.f32.mrf.mxu3 }
 0x40c   : > { %v1743_v4 = vadd.f32 %v1724_v34, %v1686_v59  ;;  %v1744_v37 = vadd.f32 %v1737_v43, %v1687_v0  ;;  %v1700_v54 = vpop.f32.mrf.mxu0  ;;  %v1713_v3 = vpop.f32.mrf.mxu1  ;;  %v3716_v0 = vld [vmem:[#allocation21_spill] sm:$0xff] }
 0x40d   : > { %v1846_v34 = vunpack.c.l.bf16 %v3716_v0  ;;  %v1847_v43 = vunpack.c.h.bf16 %v3716_v0 }
 0x40e   : > { %2818 = vtanh.f32 %v1743_v4  ;;  %v1754_v25 = vmul.f32 0.5, %v1744_v37 }
 0x40f   : > { %v2815_v56 = vpop.eup %2814 }
 0x410   : > { %v2817_v57 = vpop.eup %2816  ;;  %v1747_v23 = vmul.f32 0.5, %v2815_v56  ;;  %2820 = vtanh.f32 %v1754_v25 }
 0x411   : > { %v1751_v28 = vmul.f32 0.5, %v2817_v57  ;;  %v1848_v57 = vunpack.c.l.bf16 %v3618_v1 }
 0x412   : > { %v1748_v63 = vadd.f32 0.5, %v1747_v23  ;;  %v1849_v23 = vunpack.c.h.bf16 %v3618_v1 }
 0x413   : > { %v1752_v19 = vadd.f32 0.5, %v1751_v28  ;;  %v1726_v26 = vpop.f32.mrf.mxu2  ;;  %v1739_v38 = vpop.f32.mrf.mxu3 }
 0x414   : > { %v2819_v50 = vpop.eup %2818 }
 0x415   : > { %v1758_v14 = vmul.f32 %v1752_v19, %v3620_v61  ;;  %v1759_v36 = vmul.f32 %v2819_v50, %v1748_v63 }
 0x416   : > { %v2821_v18 = vpop.eup %2820 }
 0x417   : > { %v1760_v7 = vadd.f32 %v1759_v36, %v1758_v14  ;;  %v1756_v8 = vmul.f32 0.5, %v2821_v18 }
 0x419   : > { %2822 = vtanh.f32 %v1760_v7  ;;  %v1757_v39 = vadd.f32 0.5, %v1756_v8 }
 0x41f   : > { %v2823_v55 = vpop.eup %2822 }
 0x420   : > { %v1762_v52 = vmul.f32 %v2823_v55, %v1757_v39 }
 0x422   : > { %v1769_v62 = vpack.c.bf16 %v1762_v52, %v1762_v52 }
 0x424   : > { %1778 = vmatmul.bf16.vlgmr.msra.gmra.mxu0 %v1769_v62  ;;  %1791 = vmatmul.bf16.vlgmr.msra.gmra.mxu1 %v1769_v62 }
 0x425   : > { %1804 = vmatmul.bf16.vlgmr.msra.gmra.mxu2 %v1769_v62  ;;  %1817 = vmatmul.bf16.vlgmr.msra.gmra.mxu3 %v1769_v62 }
 0x4a1   : > { %v1779_v47 = vpop.f32.mrf.mxu0  ;;  %v1792_v20 = vpop.f32.mrf.mxu1 }
 0x4a2   : > { %v1822_v21 = vadd.f32 %v1779_v47, %v1765_v12  ;;  %v1823_v27 = vadd.f32 %v1792_v20, %v1766_v44 }
 0x4a4   : > { %v1826_v33 = vmul.f32 0.5, %v1822_v21  ;;  %v1830_v22 = vmul.f32 0.5, %v1823_v27 }
 0x4a6   : > { %2824 = vtanh.f32 %v1826_v33 }
 0x4a7   : > { %2826 = vtanh.f32 %v1830_v22 }
 0x4a8   : > { %v1805_v53 = vpop.f32.mrf.mxu2  ;;  %v1818_v42 = vpop.f32.mrf.mxu3 }
 0x4a9   : > { %v1824_v49 = vadd.f32 %v1805_v53, %v1767_v17  ;;  %v1825_v40 = vadd.f32 %v1818_v42, %v1768_v24  ;;  %v1781_v61 = vpop.f32.mrf.mxu0  ;;  %v1794_v11 = vpop.f32.mrf.mxu1 }
 0x4ab   : > { %2828 = vtanh.f32 %v1824_v49  ;;  %v1835_v15 = vmul.f32 0.5, %v1825_v40 }
 0x4ac   : > { %v2825_v45 = vpop.eup %2824 }
 0x4ad   : > { %v2827_v48 = vpop.eup %2826  ;;  %v1828_v31 = vmul.f32 0.5, %v2825_v45  ;;  %2830 = vtanh.f32 %v1835_v15 }
 0x4ae   : > { %v1832_v60 = vmul.f32 0.5, %v2827_v48 }
 0x4af   : > { %v1829_v35 = vadd.f32 0.5, %v1828_v31 }
 0x4b0   : > { %v1833_v46 = vadd.f32 0.5, %v1832_v60  ;;  %v1807_v5 = vpop.f32.mrf.mxu2  ;;  %v1820_v10 = vpop.f32.mrf.mxu3 }
 0x4b1   : > { %v2829_v29 = vpop.eup %2828 }
 0x4b2   : > { %v1839_v30 = vmul.f32 %v1833_v46, %v1760_v7  ;;  %v1840_v41 = vmul.f32 %v2829_v29, %v1829_v35 }
 0x4b3   : > { %v2831_v9 = vpop.eup %2830 }
 0x4b4   : > { %v1841_v16 = vadd.f32 %v1840_v41, %v1839_v30  ;;  %v1837_v13 = vmul.f32 0.5, %v2831_v9 }
 0x4b6   : > { %2832 = vtanh.f32 %v1841_v16  ;;  %v1838_v32 = vadd.f32 0.5, %v1837_v13 }
 0x4bc   : > { %v2833_v58 = vpop.eup %2832 }
 0x4bd   : > { %v1843_v6 = vmul.f32 %v2833_v58, %v1838_v32 }
 0x4bf   : > { %v1850_v59 = vpack.c.bf16 %v1843_v6, %v1843_v6 }
 0x4c1   : > { %1859 = vmatmul.bf16.vlgmr.msrb.gmra.mxu0 %v1850_v59  ;;  %1872 = vmatmul.bf16.vlgmr.msrb.gmra.mxu1 %v1850_v59 }
 0x4c2   : > { %1885 = vmatmul.bf16.vlgmr.msrb.gmra.mxu2 %v1850_v59  ;;  %1898 = vmatmul.bf16.vlgmr.msrb.gmra.mxu3 %v1850_v59 }
 0x53e   : > { %v1860_v4 = vpop.f32.mrf.mxu0  ;;  %v1873_v37 = vpop.f32.mrf.mxu1 }
 0x53f   : > { %v1903_v54 = vadd.f32 %v1860_v4, %v1846_v34  ;;  %v1904_v3 = vadd.f32 %v1873_v37, %v1847_v43 }
 0x541   : > { %v1907_v25 = vmul.f32 0.5, %v1903_v54  ;;  %v1911_v56 = vmul.f32 0.5, %v1904_v3 }
 0x543   : > { %2834 = vtanh.f32 %v1907_v25 }
 0x544   : > { %2836 = vtanh.f32 %v1911_v56 }
 0x545   : > { %v1886_v28 = vpop.f32.mrf.mxu2  ;;  %v1899_v63 = vpop.f32.mrf.mxu3 }
 0x546   : > { %v1905_v19 = vadd.f32 %v1886_v28, %v1848_v57  ;;  %v1906_v26 = vadd.f32 %v1899_v63, %v1849_v23  ;;  %v1862_v38 = vpop.f32.mrf.mxu0  ;;  %v1875_v50 = vpop.f32.mrf.mxu1 }
 0x548   : > { %2838 = vtanh.f32 %v1905_v19  ;;  %v1916_v14 = vmul.f32 0.5, %v1906_v26 }
 0x549   : > { %v2835_v36 = vpop.eup %2834 }
 0x54a   : > { %v2837_v18 = vpop.eup %2836  ;;  %v1909_v7 = vmul.f32 0.5, %v2835_v36  ;;  %2840 = vtanh.f32 %v1916_v14 }
 0x54b   : > { %v1913_v8 = vmul.f32 0.5, %v2837_v18 }
 0x54c   : > { %v1910_v39 = vadd.f32 0.5, %v1909_v7 }
 0x54d   : > { %v1914_v55 = vadd.f32 0.5, %v1913_v8  ;;  %v1888_v52 = vpop.f32.mrf.mxu2  ;;  %v1901_v62 = vpop.f32.mrf.mxu3 }
 0x54e   : > { %v2839_v2 = vpop.eup %2838 }
 0x54f   : > { %v1920_v12 = vmul.f32 %v1914_v55, %v1841_v16  ;;  %v1921_v1 = vmul.f32 %v2839_v2, %v1910_v39 }
 0x550   : > { %v2841_v44 = vpop.eup %2840 }
 0x551   : > { %v1922_v47 = vadd.f32 %v1921_v1, %v1920_v12  ;;  %v1918_v20 = vmul.f32 0.5, %v2841_v44 }
 0x553   : > { %2842 = vtanh.f32 %v1922_v47  ;;  %1926 = vst [vmem:[#allocation5] sm:$0xff] %v1922_v47  ;;  %v1919_v21 = vadd.f32 0.5, %v1918_v20 }
 0x558   : > { %1930 = sbr.rel (%p2542_p9) target bundleno = 1539 (0x603), region = 80 }
 0x559   : > { %v2843_v27 = vpop.eup %2842 }
 0x55a   : > { %v1924_v33 = vmul.f32 %v2843_v27, %v1919_v21 }
 0x55c   : > { %1925 = vst [vmem:[#allocation4 + $0x8] sm:$0xff] %v1924_v33 }
 0x55d   : > { %v2686_v22 = vld [vmem:[#allocation12 + $0x38] sm:$0xff]  ;;  %v2685_v51 = vld [vmem:[#allocation12 + $0x30] sm:$0xff]  ;;  %v2684_v17 = vld [vmem:[#allocation12 + $0x28] sm:$0xff]  ;;  %v1931_v61 = vpack.c.bf16 %v1924_v33, %v1924_v33 }
 0x55e   : > { %2000 = vmatpush.bf16.msra.mxu0 %v2686_v22  ;;  %v2683_v24 = vld [vmem:[#allocation12 + $0x20] sm:$0xff]  ;;  %v2682_v53 = vld [vmem:[#allocation12 + $0x18] sm:$0xff]  ;;  %v2681_v42 = vld [vmem:[#allocation12 + $0x10] sm:$0xff] }
 0x55f   : > { %v2680_v49 = vld [vmem:[#allocation12 + $0x8] sm:$0xff]  ;;  %v2679_v40 = vld [vmem:[#allocation12] sm:$0xff] }
 0x560   : > { %v2844_v11 = vld [vmem:[%s3698_s8] ss:$0 sm:$0xff] }
 0x562   : > { %2001 = vmatpush.bf16.msra.mxu0 %v2685_v51 }
 0x566   : > { %2002 = vmatpush.bf16.msra.mxu0 %v2684_v17 }
 0x56a   : > { %2003 = vmatpush.bf16.msra.mxu0 %v2683_v24 }
 0x56e   : > { %2004 = vmatpush.bf16.msra.mxu0 %v2682_v53 }
 0x572   : > { %2005 = vmatpush.bf16.msra.mxu0 %v2681_v42 }
 0x576   : > { %2006 = vmatpush.bf16.msra.mxu0 %v2680_v49 }
 0x57a   : > { %2007 = vmatpush.bf16.msra.mxu0 %v2679_v40 }
 0x57d   : > { %2008 = vmatmul.bf16.vlgmr.msra.gmra.mxu0 %v1931_v61 }
 0x5fa   : > { %v2009_v15 = vpop.f32.mrf.mxu0 }
 0x5fb   : > { %v2010_v45 = vadd.f32 %v2844_v11, %v2009_v15 }
 0x5fd   : > { %2013 = vst [vmem:[#allocation14] sm:$0xff] %v2010_v45 }
 0x602   : > { %v2011_v48 = vpop.f32.mrf.mxu0 }
 0x603 PF: > { %s3717_s15 = sadd.s32 4294967295, %s3031_s11   ;;  %s2024_s19 = sshll.u32 %s3699_s9, 4  ;;  %s2025_s19 = int_to_ptr.hbm [resolvable:$true] %s2024_s19 }
 0x604   : > { %p2728_p10 = scmp.eq.s32.totalorder %s3717_s15, 1  ;;  %s3042_s24 = smov [#allocation14]  }
 0x605   : > { %s2022_s25 = sshll.u32 %s3042_s24, 4  ;;  %s2023_s25 = int_to_ptr.vmem [resolvable:$true] %s2022_s25 }
 0x606   : > { %2704 = dma.vmem_to_hbm [thread:$0]  (%p2728_p10), %s2023_s25, 128, %s2025_s19, [#allocation8]  }
 0x607   : > { %3018 = dma.done.wait (%p2728_p10), [#allocation8], 128  }
 0x608   : > { %3020 = vsyncadd (%p2728_p10), [#allocation8], 4294967168 }
 0x609 PF: > { %s23_s11 = sadd.s32 1, %s3031_s11   ;;  %s3718_s30 = smov %s3027_s10 }
 0x60a   : > { %p20_p11 = scmp.ge.s32.totalorder %s23_s11, 4   ;;  %s3719_s10 = smov %s3721_s21 }
 0x60c   :  { %22 = sbr.rel (!%p20_p11) target bundleno = 8 (0x8), region = 117 }
 0x611   :  { %2038 = vsyncpa [#allocation7], 1 }
 0x612   :  { %2040 = vsyncpa [#allocation7 + $0x1], 1 }
 0x613   :  { %2041 = vsyncpa [#allocation10], 1 }
 0x614   :  { %2042 = vsyncpa [#allocation13], 1 }
 0x615   :  { %2043 = vsyncpa [#allocation8], 1 }
 0x616   :  { %2045 = vsyncpa [#allocation8 + $0x1], 1 }

</bundles_post_ra>
